<compile_context>
chip_gen: v6e
topology: v6e:2x2x1
jax: 0.10.0
libtpu: 0.0.40
codegen_flags: <defaults>
</compile_context>

<pallas_src>
import functools

import jax
import jax.numpy as jnp
from jax.experimental import pallas as pl
from jax.experimental.pallas import tpu as pltpu

EPS = 1e-5  # nn.GroupNorm default eps


def _pick_tile(extent, target):
    t = max(1, min(int(target), int(extent)))
    while extent % t != 0:
        t -= 1
    return t


def _vmem_limit_bytes():
    # Raise the scoped-VMEM limit (defaults: ~16 MiB v5e / 32 MiB v6e+) but stay
    # well under physical capacity (64 MiB on v7x).
    try:
        phys = pltpu.get_tpu_info().vmem_capacity_bytes
        return int(min(0.75 * phys, 100 * 1024 * 1024))
    except Exception:
        return 64 * 1024 * 1024


_VMEM_LIMIT = _vmem_limit_bytes()


# -----------------------------------------------------------------------------
# Kernel 1: per-channel partial sum / sum-of-squares for GroupNorm.
# Each (sample, H-tile) writes its own partial block -> both axes "parallel".
# -----------------------------------------------------------------------------
def _stats_partial_kernel(x_ref, o_ref):
    c = x_ref.shape[-1]
    x = x_ref[0].astype(jnp.float32).reshape(-1, c)          # (D*TH*W, C)
    o_ref[0, 0, 0:1] = jnp.sum(x, axis=0, keepdims=True)
    o_ref[0, 0, 1:2] = jnp.sum(x * x, axis=0, keepdims=True)


def groupnorm_sums(x, *, tile_h=8):
    """Per-(sample, channel) sum and sum-of-squares, reduced host-side."""
    n, d, h, w, c = x.shape
    th = _pick_tile(h, tile_h)
    n_h = h // th
    part = pl.pallas_call(
        _stats_partial_kernel,
        out_shape=jax.ShapeDtypeStruct((n, n_h, 2, c), jnp.float32),
        grid=(n, n_h),
        in_specs=[pl.BlockSpec((1, d, th, w, c), lambda i, j: (i, 0, j, 0, 0))],
        out_specs=pl.BlockSpec((1, 1, 2, c), lambda i, j: (i, j, 0, 0)),
        compiler_params=pltpu.CompilerParams(
            dimension_semantics=("parallel", "parallel"),
            vmem_limit_bytes=_VMEM_LIMIT),
    )(x)
    return part.sum(axis=1)                                   # (N, 2, C)


def _scale_shift_from_sums(sums, gamma, beta, groups, count, *, eps=EPS):
    """Fold group statistics into per-channel scale/shift: GN(x)*g+b == x*s+t."""
    n, _, c = sums.shape
    cpg = c // groups
    s = sums[:, 0].reshape(n, groups, cpg).sum(-1)
    s2 = sums[:, 1].reshape(n, groups, cpg).sum(-1)
    mean = s / count
    # TODO(synk): E[x^2]-E[x]^2 in f32 can lose precision for large-mean inputs.
    var = jnp.maximum(s2 / count - mean * mean, 0.0)
    rstd = jax.lax.rsqrt(var + eps)
    mean_c = jnp.repeat(mean, cpg, axis=1)                    # (N, C)
    rstd_c = jnp.repeat(rstd, cpg, axis=1)
    scale_c = rstd_c * gamma[None, :]
    shift_c = beta[None, :] - mean_c * scale_c
    return (scale_c[:, None, :].astype(jnp.float32),
            shift_c[:, None, :].astype(jnp.float32))          # (N, 1, C) each


# -----------------------------------------------------------------------------
# Kernel 2: fused normalize + ReLU + threshold_func + conv3x3x3 (+ residual)
# -----------------------------------------------------------------------------
def _gn_thresh_conv(x_c_ref, x_p_ref, x_n_ref, sc_ref, sh_ref, w_ref, zbuf,
                    *, threshold):
    """Shared body; returns the f32 conv output (D*TH*W, Co) for this tile."""
    _, d, th, w, ci = x_c_ref.shape
    co = w_ref.shape[-1]
    ht = pl.program_id(1)
    n_h = pl.num_programs(1)
    t = abs(float(threshold))
    zdt = zbuf.dtype

    scale = sc_ref[...].astype(jnp.float32).reshape(1, 1, 1, ci)
    shift = sh_ref[...].astype(jnp.float32).reshape(1, 1, 1, ci)

    # Zero only the conv zero-padding borders of the scratch; all interior
    # elements are fully overwritten below every grid step.
    zbuf[0:1] = jnp.zeros((1, th + 2, w + 2, ci), zdt)
    zbuf[d + 1:d + 2] = jnp.zeros((1, th + 2, w + 2, ci), zdt)
    zbuf[:, :, 0:1, :] = jnp.zeros((d + 2, th + 2, 1, ci), zdt)
    zbuf[:, :, w + 1:w + 2, :] = jnp.zeros((d + 2, th + 2, 1, ci), zdt)

    def norm_thresh_into(x_raw, row0, rows):
        # GroupNorm affine + ReLU + D-threshold, written straight into zbuf.
        y = jnp.maximum(x_raw.astype(jnp.float32) * scale + shift, 0.0)
        zbuf[1:2, row0:row0 + rows, 1:w + 1, :] = y[0:1].astype(zdt)
        if d > 1:
            front, back = y[:-1], y[1:]
            diff = back - front
            # Hardshrink(1)(diff/t)*t == diff where |diff| > |t| else 0.
            z_rest = front + jnp.where(jnp.abs(diff) > t, diff, 0.0)
            zbuf[2:d + 1, row0:row0 + rows, 1:w + 1, :] = z_rest.astype(zdt)

    # Core rows of this H tile.
    norm_thresh_into(x_c_ref[0], 1, th)

    # H halo rows: real neighbours in the interior; at the volume boundary the
    # conv's zero padding applies to the *post-threshold* tensor -> zero row.
    @pl.when(ht > 0)
    def _():
        norm_thresh_into(x_p_ref[0], 0, 1)

    @pl.when(ht == 0)
    def _():
        zbuf[:, 0:1] = jnp.zeros((d + 2, 1, w + 2, ci), zdt)

    @pl.when(ht < n_h - 1)
    def _():
        norm_thresh_into(x_n_ref[0], th + 1, 1)

    @pl.when(ht == n_h - 1)
    def _():
        zbuf[:, th + 1:th + 2] = jnp.zeros((d + 2, 1, w + 2, ci), zdt)

    # 3x3x3 conv as ONE bf16 MXU matmul with all 27 taps folded into K:
    #   kw fold (W shifts) -> kh fold (H shifts) -> kd fold (D shifts).
    z = zbuf[...]                                            # (D+2, TH+2, W+2, Ci)
    zw = jnp.concatenate([z[:, :, 0:w], z[:, :, 1:w + 1], z[:, :, 2:w + 2]],
                         axis=-1)                            # (D+2, TH+2, W, 3Ci)
    z9 = jnp.concatenate([zw[:, 0:th], zw[:, 1:th + 1], zw[:, 2:th + 2]],
                         axis=-1)                            # (D+2, TH,   W, 9Ci)
    z27 = jnp.concatenate([z9[0:d], z9[1:d + 1], z9[2:d + 2]],
                          axis=-1)                           # (D,   TH,   W, 27Ci)
    res = jnp.dot(z27.reshape(d * th * w, 27 * ci), w_ref[...],
                  preferred_element_type=jnp.float32)        # (M, Co) f32
    return res


def _block_kernel(x_c, x_p, x_n, sc, sh, wf, o_ref, zbuf, *, threshold):
    _, d, th, w, _ = x_c.shape
    co = wf.shape[-1]
    res = _gn_thresh_conv(x_c, x_p, x_n, sc, sh, wf, zbuf, threshold=threshold)
    o_ref[0] = res.reshape(d, th, w, co).astype(o_ref.dtype)


def _block_kernel_stats(x_c, x_p, x_n, sc, sh, wf, o_ref, st_ref, zbuf,
                        *, threshold):
    _, d, th, w, _ = x_c.shape
    co = wf.shape[-1]
    res = _gn_thresh_conv(x_c, x_p, x_n, sc, sh, wf, zbuf, threshold=threshold)
    o_ref[0] = res.reshape(d, th, w, co).astype(o_ref.dtype)
    # Partial GroupNorm stats of THIS block's output (feeds the next block's
    # GroupNorm without re-reading the activation from HBM).
    st_ref[0, 0, 0:1] = jnp.sum(res, axis=0, keepdims=True)
    st_ref[0, 0, 1:2] = jnp.sum(res * res, axis=0, keepdims=True)


def _block_kernel_add(x_c, x_p, x_n, sc, sh, wf, idn, o_ref, zbuf, *, threshold):
    _, d, th, w, _ = x_c.shape
    co = wf.shape[-1]
    res = _gn_thresh_conv(x_c, x_p, x_n, sc, sh, wf, zbuf, threshold=threshold)
    out = res.reshape(d, th, w, co) + idn[0].astype(jnp.float32)
    o_ref[0] = out.astype(o_ref.dtype)


def _block_kernel_proj(x_c, x_p, x_n, sc, sh, wf, idn, pw, o_ref, zbuf,
                       *, threshold):
    _, d, th, w, _ = x_c.shape
    co = wf.shape[-1]
    cid = idn.shape[-1]
    res = _gn_thresh_conv(x_c, x_p, x_n, sc, sh, wf, zbuf, threshold=threshold)
    proj = jnp.dot(idn[0].astype(pw.dtype).reshape(d * th * w, cid), pw[...],
                   preferred_element_type=jnp.float32)
    o_ref[0] = (res + proj).reshape(d, th, w, co).astype(o_ref.dtype)


def fused_norm_thresh_conv(x, scale_c, shift_c, wfold, *, threshold,
                           identity=None, sample_w=None, emit_stats=False,
                           out_dtype=None, tile_h=8):
    n, d, h, w, ci = x.shape
    co = wfold.shape[-1]
    th = _pick_tile(h, tile_h)
    n_h = h // th
    out_dtype = x.dtype if out_dtype is None else out_dtype

    def core_map(i, j):
        return (i, 0, j, 0, 0)

    def prev_map(i, j):                       # row h0-1, clamped (re-zeroed in-kernel)
        return (i, 0, jnp.maximum(j * th - 1, 0), 0, 0)

    def next_map(i, j):                       # row h0+TH, clamped (re-zeroed in-kernel)
        return (i, 0, jnp.minimum(j * th + th, h - 1), 0, 0)

    in_specs = [
        pl.BlockSpec((1, d, th, w, ci), core_map),
        pl.BlockSpec((1, d, 1, w, ci), prev_map),
        pl.BlockSpec((1, d, 1, w, ci), next_map),
        pl.BlockSpec((1, 1, ci), lambda i, j: (i, 0, 0)),
        pl.BlockSpec((1, 1, ci), lambda i, j: (i, 0, 0)),
        # Constant block index: the folded weight is never re-fetched between
        # steps.  TODO(synk): pipeline_mode=pl.Buffered(1) would halve its VMEM.
        pl.BlockSpec((27 * ci, co), lambda i, j: (0, 0)),
    ]
    args = [x, x, x, scale_c, shift_c, wfold]

    out_shape = [jax.ShapeDtypeStruct((n, d, h, w, co), out_dtype)]
    out_specs = [pl.BlockSpec((1, d, th, w, co), core_map)]

    if identity is None:
        if emit_stats:
            out_shape.append(jax.ShapeDtypeStruct((n, n_h, 2, co), jnp.float32))
            out_specs.append(pl.BlockSpec((1, 1, 2, co),
                                          lambda i, j: (i, j, 0, 0)))
            kernel = functools.partial(_block_kernel_stats,
                                       threshold=float(threshold))
        else:
            kernel = functools.partial(_block_kernel, threshold=float(threshold))
    else:
        cid = identity.shape[-1]
        in_specs.append(pl.BlockSpec((1, d, th, w, cid), core_map))
        args.append(identity)
        if sample_w is None:
            kernel = functools.partial(_block_kernel_add,
                                       threshold=float(threshold))
        else:
            in_specs.append(pl.BlockSpec(sample_w.shape, lambda i, j: (0, 0)))
            args.append(sample_w)
            kernel = functools.partial(_block_kernel_proj,
                                       threshold=float(threshold))

    multi = len(out_shape) > 1
    return pl.pallas_call(
        kernel,
        out_shape=tuple(out_shape) if multi else out_shape[0],
        grid=(n, n_h),
        in_specs=in_specs,
        out_specs=tuple(out_specs) if multi else out_specs[0],
        scratch_shapes=[pltpu.VMEM((d + 2, th + 2, w + 2, ci), jnp.bfloat16)],
        compiler_params=pltpu.CompilerParams(
            dimension_semantics=("parallel", "parallel"),
            vmem_limit_bytes=_VMEM_LIMIT),
    )(*args)


# -----------------------------------------------------------------------------
# Deterministic parameter construction (mirrors the module __init__ shapes)
# -----------------------------------------------------------------------------
def _group_count(planes, norm_groups=8):
    # create_norm_layer(): GroupNorm(planes, planes) if planes < norm_groups or
    # not divisible, else GroupNorm(norm_groups, planes).
    if planes < norm_groups or planes % norm_groups != 0:
        return planes
    return norm_groups


def _fold_conv_weight(w):
    # (kd, kh, kw, Ci, Co) -> (27*Ci, Co) in (kd, kh, kw, ci) row-major order,
    # bf16 for the MXU.
    kd, kh, kw, ci, co = w.shape
    return w.reshape(kd * kh * kw * ci, co).astype(jnp.bfloat16)


def init_convolution_block(key, in_planes, planes):
    w = (jax.random.normal(key, (3, 3, 3, in_planes, planes), jnp.float32)
         / jnp.sqrt(27.0 * in_planes))
    return {
        "gamma": jnp.ones((in_planes,), jnp.float32),   # GroupNorm weight
        "beta": jnp.zeros((in_planes,), jnp.float32),   # GroupNorm bias
        "groups": _group_count(in_planes),
        "wfold": _fold_conv_weight(w),                  # conv3x3x3, bias=False
        "threshold": 1.0,                               # nn.Parameter -> 1.0
        "scale": 1.0,
        "zero_point": 0.0,
    }


def init_residual_block(key, in_planes, planes):
    k1, k2, k3 = jax.random.split(key, 3)
    params = {
        "conv1": init_convolution_block(k1, in_planes, planes),
        "conv2": init_convolution_block(k2, planes, planes),
        "sample_w": None,
    }
    if in_planes != planes:                             # conv1x1x1, bias=False
        params["sample_w"] = (
            jax.random.normal(k3, (in_planes, planes), jnp.float32)
            / jnp.sqrt(float(in_planes))).astype(jnp.bfloat16)
    return params


# -----------------------------------------------------------------------------
# Forward pass (matches MyronenkoResidualBlock.forward, eval semantics)
# -----------------------------------------------------------------------------
def myronenko_residual_block_fwd(x, p, *, tile_h=8):
    # x: channels-last (N, D, H, W, C)
    n, d, h, w, ci = x.shape
    identity = x
    p1, p2 = p["conv1"], p["conv2"]

    # --- conv block 1: standalone stats pass over x, fused GN/ReLU/threshold/
    # conv kernel; it also emits the GroupNorm partial sums of its own output
    # so conv block 2 never re-reads the activation just for statistics.
    sums1 = groupnorm_sums(x, tile_h=tile_h)
    cpg1 = ci // p1["groups"]
    sc1, sh1 = _scale_shift_from_sums(sums1, p1["gamma"], p1["beta"],
                                      p1["groups"], float(d * h * w * cpg1))
    t1 = (p1["threshold"] + p1["zero_point"]) / p1["scale"]
    h_act, part2 = fused_norm_thresh_conv(
        x, sc1, sh1, p1["wfold"], threshold=t1, emit_stats=True,
        out_dtype=jnp.bfloat16, tile_h=tile_h)          # bf16 inter-block act.
    co = h_act.shape[-1]

    # --- conv block 2: scale/shift from conv1's fused partial stats; the
    # residual add (and the optional 1x1x1 identity projection) is fused into
    # this kernel's epilogue.
    sums2 = part2.sum(axis=1)                           # (N, 2, planes)
    cpg2 = co // p2["groups"]
    sc2, sh2 = _scale_shift_from_sums(sums2, p2["gamma"], p2["beta"],
                                      p2["groups"], float(d * h * w * cpg2))
    t2 = (p2["threshold"] + p2["zero_point"]) / p2["scale"]
    out = fused_norm_thresh_conv(
        h_act, sc2, sh2, p2["wfold"], threshold=t2,
        identity=identity, sample_w=p["sample_w"],
        out_dtype=x.dtype, tile_h=tile_h)
    return out


def myronenko_residual_block_forward(x_ncdhw, params, *, tile_h=8):
    x = jnp.transpose(x_ncdhw, (0, 2, 3, 4, 1))          # NCDHW -> NDHWC
    out = myronenko_residual_block_fwd(x, params, tile_h=tile_h)
    return jnp.transpose(out, (0, 4, 1, 2, 3))           # NDHWC -> NCDHW


# -----------------------------------------------------------------------------
if __name__ == "__main__":
    key = jax.random.PRNGKey(0)
    k_p1, k_p2, k_x = jax.random.split(key, 3)

    n, c_in, planes, d, h, w = 2, 4, 32, 16, 16, 16
    x = jax.random.normal(k_x, (n, c_in, d, h, w), jnp.float32)

    # in_planes != planes -> residual path uses the fused 1x1x1 projection.
    p1 = init_residual_block(k_p1, c_in, planes)
    y1 = jax.block_until_ready(
        myronenko_residual_block_forward(x, p1, tile_h=8))
    assert y1.shape == (n, planes, d, h, w), y1.shape

    # in_planes == planes -> plain fused residual add.
    p2 = init_residual_block(k_p2, planes, planes)
    y2 = jax.block_until_ready(
        myronenko_residual_block_forward(y1, p2, tile_h=8))
    assert y2.shape == (n, planes, d, h, w), y2.shape

    assert bool(jnp.all(jnp.isfinite(y1))) and bool(jnp.all(jnp.isfinite(y2)))
    print("KERNEL_OK")
</pallas_src>

<mosaic_0001>
module attributes {stable_mosaic.version = 11 : i64} {
  func.func @_stats_partial_kernel(%arg0: i32, %arg1: i32, %arg2: memref<1x16x8x16x4xf32, #tpu.memory_space<vmem>>, %arg3: memref<1x1x2x4xf32, #tpu.memory_space<vmem>>) attributes {dimension_semantics = [#tpu.dimension_semantics<parallel>, #tpu.dimension_semantics<parallel>], iteration_bounds = array<i64: 2, 2>, scalar_prefetch = 0 : i64, scratch_operands = 0 : i64, tpu.core_type = #tpu.core_type<tc>, window_params = [{transform_indices = @transform_0, window_bounds = array<i64: 1, 16, 8, 16, 4>}, {transform_indices = @transform_1, window_bounds = array<i64: 1, 1, 2, 4>}]} {
    %c0 = arith.constant 0 : index
    %c0_0 = arith.constant 0 : index
    %c0_1 = arith.constant 0 : index
    %c0_2 = arith.constant 0 : index
    %c0_3 = arith.constant 0 : index
    %0 = vector.load %arg2[%c0, %c0_0, %c0_1, %c0_2, %c0_3] : memref<1x16x8x16x4xf32, #tpu.memory_space<vmem>>, vector<1x16x8x16x4xf32>
    %1 = vector.shape_cast %0 : vector<1x16x8x16x4xf32> to vector<16x8x16x4xf32>
    %2 = vector.shape_cast %1 : vector<16x8x16x4xf32> to vector<2048x4xf32>
    %cst = arith.constant dense<0.000000e+00> : vector<4xf32>
    %3 = vector.multi_reduction <add>, %2, %cst [0] : vector<2048x4xf32> to vector<4xf32>
    %4 = vector.shape_cast %3 : vector<4xf32> to vector<1x4xf32>
    %c0_4 = arith.constant 0 : index
    %c0_5 = arith.constant 0 : index
    %c0_6 = arith.constant 0 : index
    %c0_7 = arith.constant 0 : index
    %5 = vector.load %arg3[%c0_4, %c0_5, %c0_6, %c0_7] : memref<1x1x2x4xf32, #tpu.memory_space<vmem>>, vector<1x1x1x4xf32>
    %6 = vector.shape_cast %5 : vector<1x1x1x4xf32> to vector<1x4xf32>
    %7 = vector.shape_cast %4 : vector<1x4xf32> to vector<1x1x1x4xf32>
    tpu.vector_store %arg3[%c0_4, %c0_5, %c0_6, %c0_7], %7 {strides = array<i32>} : memref<1x1x2x4xf32, #tpu.memory_space<vmem>>, vector<1x1x1x4xf32>,
    %8 = arith.mulf %2, %2 : vector<2048x4xf32>
    %cst_8 = arith.constant dense<0.000000e+00> : vector<4xf32>
    %9 = vector.multi_reduction <add>, %8, %cst_8 [0] : vector<2048x4xf32> to vector<4xf32>
    %10 = vector.shape_cast %9 : vector<4xf32> to vector<1x4xf32>
    %c0_9 = arith.constant 0 : index
    %c0_10 = arith.constant 0 : index
    %c1 = arith.constant 1 : index
    %c0_11 = arith.constant 0 : index
    %11 = vector.load %arg3[%c0_9, %c0_10, %c1, %c0_11] : memref<1x1x2x4xf32, #tpu.memory_space<vmem>>, vector<1x1x1x4xf32>
    %12 = vector.shape_cast %11 : vector<1x1x1x4xf32> to vector<1x4xf32>
    %13 = vector.shape_cast %10 : vector<1x4xf32> to vector<1x1x1x4xf32>
    tpu.vector_store %arg3[%c0_9, %c0_10, %c1, %c0_11], %13 {strides = array<i32>} : memref<1x1x2x4xf32, #tpu.memory_space<vmem>>, vector<1x1x1x4xf32>,
    return
  }
  func.func @transform_0(%arg0: i32, %arg1: i32) -> (i32, i32, i32, i32, i32) {
    %c0_i32 = arith.constant 0 : i32
    %c0_i32_0 = arith.constant 0 : i32
    %c0_i32_1 = arith.constant 0 : i32
    %c0_i32_2 = arith.constant 0 : i32
    return %arg0, %c0_i32, %arg1, %c0_i32_0, %c0_i32_1 : i32, i32, i32, i32, i32
  }
  func.func @transform_1(%arg0: i32, %arg1: i32) -> (i32, i32, i32, i32) {
    %c0_i32 = arith.constant 0 : i32
    %c0_i32_0 = arith.constant 0 : i32
    %c0_i32_1 = arith.constant 0 : i32
    return %arg0, %arg1, %c0_i32, %c0_i32_0 : i32, i32, i32, i32
  }
}

</mosaic_0001>

<bundles_post_ra>
// kernel: tpu_custom_call.1
= control target key start
LH: loop header
LB: loop body
LE: loop exit
PB: predicated region body
PF: predicated region fallthrough
CT: control target
= control target key end

     0   :  { %6 = vsyncpa [#allocation4], 0  ;;  %s5741_s0 = inlined_call_operand.vmem [shape: f32[2,16,16,16,4], index: 0, kind: input, shape index: {}]   ;;  %s5742_s1 = inlined_call_operand.hbm [shape: f32[2,2,2,4], index: 1, kind: output, shape index: {}]  }
   0x1   :  { %8 = vsyncpa [#allocation4 + $0x1], 0  ;;  %s3032_s6 = smov 0   ;;  %s3034_s7 = smov 0  }
   0x2   :  { %s3036_s8 = smov 0   ;;  %s3038_s9 = smov 0  }
   0x3   :  { %s3040_s10 = smov 0   ;;  %s3042_s11 = smov 0  }
   0x4   :  { %s3044_s12 = smov 0   ;;  %s3046_s13 = smov 0  }
   0x5 LB: > { %s2838_s14 = sadd.s32 4294967295, %s3019_s13   ;;  %s2839_s15 = sadd.s32 4294967294, %s3019_s13   ;;  %s3019_s13 = sphi %s3046_s13, %s14_s13   ;;  %s3015_s12 = sphi %s3044_s12, %s5752_s12   ;;  %s3011_s11 = sphi %s3042_s11, %s5751_s11   ;;  %s3007_s10 = sphi %s3040_s10, %s5750_s10   ;;  %s3003_s9 = sphi %s3038_s9, %s5749_s9   ;;  %s2999_s8 = sphi %s3036_s8, %s5748_s8   ;;  %s2995_s7 = sphi %s3034_s7, %s5747_s7   ;;  %s2991_s6 = sphi %s3032_s6, %s5746_s6  }
   0x6   : > { %s23_s16 = sadd.s32 1, %s3011_s11  ;;  %s26_s17 = sadd.s32 1, %s3015_s12 }
   0x7   : > { %p24_p0 = scmp.ge.s32.totalorder %s23_s16, 2  ;;  %p42_p1 = scmp.ne.s32.totalorder %s2999_s8, %s2995_s7 }
   0x8   : > { %p43_p2 = scmp.eq.s32.totalorder %s3019_s13, 0  ;;  %p74_p5 = scmp.eq.s32.totalorder %s2838_s14, 3 }
   0x9   : > { %s5754_s16 = smov (%p24_p0, %s23_s16), 0  ;;  %s5756_s17 = smov (!%p24_p0, %s26_s17), %s3015_s12 }
   0xa   : > { %s31_s18 = ssub.s32 %s3011_s11, %s5754_s16  ;;  %p3084_p3 = por %p43_p2, %p42_p1 }
   0xb   : > { %p28_p4 = scmp.ge.s32.totalorder %s5756_s17, 2  ;;  %p79_p6 = scmp.ne.s32.totalorder %s2995_s7, %s2991_s6 }
   0xc   : > { %p80_p7 = scmp.eq.s32.totalorder %s2839_s15, 3  ;;  %p3092_p8 = por %p74_p5, %p42_p1 }
   0xd   : > { %s5758_s17 = smov (%p28_p4, %s5756_s17), 0  ;;  %s35_s24 = sadd.s32 1, %s2999_s8 }
   0xe   : > { %p3096_p9 = por %p80_p7, %p79_p6  ;;  %s30_s22 = ssub.s32 %s3015_s12, %s5758_s17 }
   0xf   : > { %s32_s23 = sor.u32 %s31_s18, %s30_s22  ;;  %p2841_p11 = scmp.ge.s32.totalorder %s3019_s13, 4 }
  0x10   : > { %p33_p10 = scmp.eq.s32.totalorder %s32_s23, 0 }
  0x11   : > { %96 = sbr.rel (%p2841_p11) target bundleno = 157 (0x9d), region = 16 }
  0x12   : > { %s3104_s25 = scalar_select %p33_p10, %s2999_s8, %s35_s24  }
  0x16   : > { %99 = sbr.rel (!%p3084_p3) target bundleno = 157 (0x9d), region = 20  ;;  %s101_s26 = sand.u32 (%p3084_p3), 1, %s2999_s8  }
  0x17   : > { %s2855_s27 = sshll.u32 (%p3084_p3), %s3011_s11, 4  ;;  %s2842_s28 = sshll.u32 (%p3084_p3), %s101_s26, 11 }
  0x18   : > { %s2845_s29 = sshll.u32 (%p3084_p3), %s3015_s12, 9  ;;  %s3120_s14 = scalar_lea.vmem (%p3084_p3), [#allocation2], %s2842_s28 }
  0x19   : > { %s107_s30 = sadd.s32 (%p3084_p3), %s2855_s27, %s2845_s29 }
  0x1a   : > { %s2846_s2 = sshll.u32 (%p3084_p3), %s107_s30, 3 }
  0x1b   : > { %s3115_s5 = scalar_lea.vmem %s5741_s0, %s2846_s2 }
  0x1c   : > { %v648_v0 = vld [vmem:[%s3115_s5] sm:$0xff]  ;;  %v650_v1 = vld [vmem:[%s3115_s5 + $0x8] sm:$0xff]  ;;  %v652_v2 = vld [vmem:[%s3115_s5 + $0x10] sm:$0xff] }
  0x1d   : > { %649 = vst [vmem:[%s3120_s14] sm:$0xff] %v648_v0  ;;  %651 = vst [vmem:[%s3120_s14 + $0x8] sm:$0xff] %v650_v1  ;;  %v654_v3 = vld [vmem:[%s3115_s5 + $0x18] sm:$0xff]  ;;  %v656_v4 = vld [vmem:[%s3115_s5 + $0x20] sm:$0xff] }
  0x1e   : > { %653 = vst [vmem:[%s3120_s14 + $0x10] sm:$0xff] %v652_v2  ;;  %v658_v5 = vld [vmem:[%s3115_s5 + $0x28] sm:$0xff]  ;;  %655 = vst [vmem:[%s3120_s14 + $0x18] sm:$0xff] %v654_v3  ;;  %v660_v6 = vld [vmem:[%s3115_s5 + $0x30] sm:$0xff] }
  0x1f   : > { %657 = vst [vmem:[%s3120_s14 + $0x20] sm:$0xff] %v656_v4  ;;  %659 = vst [vmem:[%s3120_s14 + $0x28] sm:$0xff] %v658_v5  ;;  %v662_v7 = vld [vmem:[%s3115_s5 + $0x38] sm:$0xff]  ;;  %v664_v8 = vld [vmem:[%s3115_s5 + $0x40] sm:$0xff] }
  0x20   : > { %661 = vst [vmem:[%s3120_s14 + $0x30] sm:$0xff] %v660_v6  ;;  %663 = vst [vmem:[%s3120_s14 + $0x38] sm:$0xff] %v662_v7  ;;  %v666_v9 = vld [vmem:[%s3115_s5 + $0x48] sm:$0xff]  ;;  %v668_v10 = vld [vmem:[%s3115_s5 + $0x50] sm:$0xff] }
  0x21   : > { %665 = vst [vmem:[%s3120_s14 + $0x40] sm:$0xff] %v664_v8  ;;  %v670_v11 = vld [vmem:[%s3115_s5 + $0x58] sm:$0xff]  ;;  %667 = vst [vmem:[%s3120_s14 + $0x48] sm:$0xff] %v666_v9  ;;  %v672_v12 = vld [vmem:[%s3115_s5 + $0x60] sm:$0xff] }
  0x22   : > { %669 = vst [vmem:[%s3120_s14 + $0x50] sm:$0xff] %v668_v10  ;;  %671 = vst [vmem:[%s3120_s14 + $0x58] sm:$0xff] %v670_v11  ;;  %v674_v13 = vld [vmem:[%s3115_s5 + $0x68] sm:$0xff]  ;;  %v676_v14 = vld [vmem:[%s3115_s5 + $0x70] sm:$0xff] }
  0x23   : > { %673 = vst [vmem:[%s3120_s14 + $0x60] sm:$0xff] %v672_v12  ;;  %675 = vst [vmem:[%s3120_s14 + $0x68] sm:$0xff] %v674_v13  ;;  %v678_v15 = vld [vmem:[%s3115_s5 + $0x78] sm:$0xff]  ;;  %v680_v16 = vld [vmem:[%s3115_s5 + $0x100] sm:$0xff] }
  0x24   : > { %677 = vst [vmem:[%s3120_s14 + $0x70] sm:$0xff] %v676_v14  ;;  %v682_v17 = vld [vmem:[%s3115_s5 + $0x108] sm:$0xff]  ;;  %679 = vst [vmem:[%s3120_s14 + $0x78] sm:$0xff] %v678_v15  ;;  %v684_v18 = vld [vmem:[%s3115_s5 + $0x110] sm:$0xff] }
  0x25   : > { %681 = vst [vmem:[%s3120_s14 + $0x80] sm:$0xff] %v680_v16  ;;  %683 = vst [vmem:[%s3120_s14 + $0x88] sm:$0xff] %v682_v17  ;;  %v686_v19 = vld [vmem:[%s3115_s5 + $0x118] sm:$0xff]  ;;  %v688_v20 = vld [vmem:[%s3115_s5 + $0x120] sm:$0xff] }
  0x26   : > { %685 = vst [vmem:[%s3120_s14 + $0x90] sm:$0xff] %v684_v18  ;;  %687 = vst [vmem:[%s3120_s14 + $0x98] sm:$0xff] %v686_v19  ;;  %v690_v21 = vld [vmem:[%s3115_s5 + $0x128] sm:$0xff]  ;;  %v692_v22 = vld [vmem:[%s3115_s5 + $0x130] sm:$0xff] }
  0x27   : > { %689 = vst [vmem:[%s3120_s14 + $0xa0] sm:$0xff] %v688_v20  ;;  %v694_v23 = vld [vmem:[%s3115_s5 + $0x138] sm:$0xff]  ;;  %691 = vst [vmem:[%s3120_s14 + $0xa8] sm:$0xff] %v690_v21  ;;  %v696_v24 = vld [vmem:[%s3115_s5 + $0x140] sm:$0xff] }
  0x28   : > { %693 = vst [vmem:[%s3120_s14 + $0xb0] sm:$0xff] %v692_v22  ;;  %695 = vst [vmem:[%s3120_s14 + $0xb8] sm:$0xff] %v694_v23  ;;  %v698_v25 = vld [vmem:[%s3115_s5 + $0x148] sm:$0xff]  ;;  %v700_v26 = vld [vmem:[%s3115_s5 + $0x150] sm:$0xff] }
  0x29   : > { %697 = vst [vmem:[%s3120_s14 + $0xc0] sm:$0xff] %v696_v24  ;;  %699 = vst [vmem:[%s3120_s14 + $0xc8] sm:$0xff] %v698_v25  ;;  %v702_v27 = vld [vmem:[%s3115_s5 + $0x158] sm:$0xff]  ;;  %v704_v28 = vld [vmem:[%s3115_s5 + $0x160] sm:$0xff] }
  0x2a   : > { %701 = vst [vmem:[%s3120_s14 + $0xd0] sm:$0xff] %v700_v26  ;;  %v706_v29 = vld [vmem:[%s3115_s5 + $0x168] sm:$0xff]  ;;  %703 = vst [vmem:[%s3120_s14 + $0xd8] sm:$0xff] %v702_v27  ;;  %v708_v30 = vld [vmem:[%s3115_s5 + $0x170] sm:$0xff] }
  0x2b   : > { %705 = vst [vmem:[%s3120_s14 + $0xe0] sm:$0xff] %v704_v28  ;;  %707 = vst [vmem:[%s3120_s14 + $0xe8] sm:$0xff] %v706_v29  ;;  %v710_v31 = vld [vmem:[%s3115_s5 + $0x178] sm:$0xff]  ;;  %v712_v32 = vld [vmem:[%s3115_s5 + $0x200] sm:$0xff] }
  0x2c   : > { %709 = vst [vmem:[%s3120_s14 + $0xf0] sm:$0xff] %v708_v30  ;;  %711 = vst [vmem:[%s3120_s14 + $0xf8] sm:$0xff] %v710_v31  ;;  %v714_v33 = vld [vmem:[%s3115_s5 + $0x208] sm:$0xff]  ;;  %v716_v34 = vld [vmem:[%s3115_s5 + $0x210] sm:$0xff] }
  0x2d   : > { %713 = vst [vmem:[%s3120_s14 + $0x100] sm:$0xff] %v712_v32  ;;  %v718_v35 = vld [vmem:[%s3115_s5 + $0x218] sm:$0xff]  ;;  %715 = vst [vmem:[%s3120_s14 + $0x108] sm:$0xff] %v714_v33  ;;  %v720_v36 = vld [vmem:[%s3115_s5 + $0x220] sm:$0xff] }
  0x2e   : > { %717 = vst [vmem:[%s3120_s14 + $0x110] sm:$0xff] %v716_v34  ;;  %719 = vst [vmem:[%s3120_s14 + $0x118] sm:$0xff] %v718_v35  ;;  %v722_v37 = vld [vmem:[%s3115_s5 + $0x228] sm:$0xff]  ;;  %v724_v38 = vld [vmem:[%s3115_s5 + $0x230] sm:$0xff] }
  0x2f   : > { %721 = vst [vmem:[%s3120_s14 + $0x120] sm:$0xff] %v720_v36  ;;  %723 = vst [vmem:[%s3120_s14 + $0x128] sm:$0xff] %v722_v37  ;;  %v726_v39 = vld [vmem:[%s3115_s5 + $0x238] sm:$0xff]  ;;  %v728_v40 = vld [vmem:[%s3115_s5 + $0x240] sm:$0xff] }
  0x30   : > { %725 = vst [vmem:[%s3120_s14 + $0x130] sm:$0xff] %v724_v38  ;;  %v730_v41 = vld [vmem:[%s3115_s5 + $0x248] sm:$0xff]  ;;  %727 = vst [vmem:[%s3120_s14 + $0x138] sm:$0xff] %v726_v39  ;;  %v732_v42 = vld [vmem:[%s3115_s5 + $0x250] sm:$0xff] }
  0x31   : > { %729 = vst [vmem:[%s3120_s14 + $0x140] sm:$0xff] %v728_v40  ;;  %731 = vst [vmem:[%s3120_s14 + $0x148] sm:$0xff] %v730_v41  ;;  %v734_v43 = vld [vmem:[%s3115_s5 + $0x258] sm:$0xff]  ;;  %v736_v44 = vld [vmem:[%s3115_s5 + $0x260] sm:$0xff] }
  0x32   : > { %733 = vst [vmem:[%s3120_s14 + $0x150] sm:$0xff] %v732_v42  ;;  %735 = vst [vmem:[%s3120_s14 + $0x158] sm:$0xff] %v734_v43  ;;  %v738_v45 = vld [vmem:[%s3115_s5 + $0x268] sm:$0xff]  ;;  %v740_v46 = vld [vmem:[%s3115_s5 + $0x270] sm:$0xff] }
  0x33   : > { %737 = vst [vmem:[%s3120_s14 + $0x160] sm:$0xff] %v736_v44  ;;  %v742_v47 = vld [vmem:[%s3115_s5 + $0x278] sm:$0xff]  ;;  %739 = vst [vmem:[%s3120_s14 + $0x168] sm:$0xff] %v738_v45  ;;  %v744_v48 = vld [vmem:[%s3115_s5 + $0x300] sm:$0xff] }
  0x34   : > { %741 = vst [vmem:[%s3120_s14 + $0x170] sm:$0xff] %v740_v46  ;;  %743 = vst [vmem:[%s3120_s14 + $0x178] sm:$0xff] %v742_v47  ;;  %v746_v49 = vld [vmem:[%s3115_s5 + $0x308] sm:$0xff]  ;;  %v748_v50 = vld [vmem:[%s3115_s5 + $0x310] sm:$0xff] }
  0x35   : > { %745 = vst [vmem:[%s3120_s14 + $0x180] sm:$0xff] %v744_v48  ;;  %747 = vst [vmem:[%s3120_s14 + $0x188] sm:$0xff] %v746_v49  ;;  %v750_v51 = vld [vmem:[%s3115_s5 + $0x318] sm:$0xff]  ;;  %v752_v52 = vld [vmem:[%s3115_s5 + $0x320] sm:$0xff] }
  0x36   : > { %749 = vst [vmem:[%s3120_s14 + $0x190] sm:$0xff] %v748_v50  ;;  %v754_v53 = vld [vmem:[%s3115_s5 + $0x328] sm:$0xff]  ;;  %751 = vst [vmem:[%s3120_s14 + $0x198] sm:$0xff] %v750_v51  ;;  %v756_v54 = vld [vmem:[%s3115_s5 + $0x330] sm:$0xff] }
  0x37   : > { %753 = vst [vmem:[%s3120_s14 + $0x1a0] sm:$0xff] %v752_v52  ;;  %755 = vst [vmem:[%s3120_s14 + $0x1a8] sm:$0xff] %v754_v53  ;;  %v758_v55 = vld [vmem:[%s3115_s5 + $0x338] sm:$0xff]  ;;  %v760_v56 = vld [vmem:[%s3115_s5 + $0x340] sm:$0xff] }
  0x38   : > { %757 = vst [vmem:[%s3120_s14 + $0x1b0] sm:$0xff] %v756_v54  ;;  %759 = vst [vmem:[%s3120_s14 + $0x1b8] sm:$0xff] %v758_v55  ;;  %v762_v57 = vld [vmem:[%s3115_s5 + $0x348] sm:$0xff]  ;;  %v764_v58 = vld [vmem:[%s3115_s5 + $0x350] sm:$0xff] }
  0x39   : > { %761 = vst [vmem:[%s3120_s14 + $0x1c0] sm:$0xff] %v760_v56  ;;  %v766_v59 = vld [vmem:[%s3115_s5 + $0x358] sm:$0xff]  ;;  %763 = vst [vmem:[%s3120_s14 + $0x1c8] sm:$0xff] %v762_v57  ;;  %v768_v60 = vld [vmem:[%s3115_s5 + $0x360] sm:$0xff] }
  0x3a   : > { %765 = vst [vmem:[%s3120_s14 + $0x1d0] sm:$0xff] %v764_v58  ;;  %767 = vst [vmem:[%s3120_s14 + $0x1d8] sm:$0xff] %v766_v59  ;;  %v770_v61 = vld [vmem:[%s3115_s5 + $0x368] sm:$0xff]  ;;  %v772_v62 = vld [vmem:[%s3115_s5 + $0x370] sm:$0xff] }
  0x3b   : > { %769 = vst [vmem:[%s3120_s14 + $0x1e0] sm:$0xff] %v768_v60  ;;  %771 = vst [vmem:[%s3120_s14 + $0x1e8] sm:$0xff] %v770_v61  ;;  %v774_v63 = vld [vmem:[%s3115_s5 + $0x378] sm:$0xff]  ;;  %v776_v0 = vld [vmem:[%s3115_s5 + $0x400] sm:$0xff] }
  0x3c   : > { %773 = vst [vmem:[%s3120_s14 + $0x1f0] sm:$0xff] %v772_v62  ;;  %v778_v1 = vld [vmem:[%s3115_s5 + $0x408] sm:$0xff]  ;;  %775 = vst [vmem:[%s3120_s14 + $0x1f8] sm:$0xff] %v774_v63  ;;  %v780_v2 = vld [vmem:[%s3115_s5 + $0x410] sm:$0xff] }
  0x3d   : > { %777 = vst [vmem:[%s3120_s14 + $0x200] sm:$0xff] %v776_v0  ;;  %779 = vst [vmem:[%s3120_s14 + $0x208] sm:$0xff] %v778_v1  ;;  %v782_v3 = vld [vmem:[%s3115_s5 + $0x418] sm:$0xff]  ;;  %v784_v4 = vld [vmem:[%s3115_s5 + $0x420] sm:$0xff] }
  0x3e   : > { %781 = vst [vmem:[%s3120_s14 + $0x210] sm:$0xff] %v780_v2  ;;  %783 = vst [vmem:[%s3120_s14 + $0x218] sm:$0xff] %v782_v3  ;;  %v786_v5 = vld [vmem:[%s3115_s5 + $0x428] sm:$0xff]  ;;  %v788_v6 = vld [vmem:[%s3115_s5 + $0x430] sm:$0xff] }
  0x3f   : > { %785 = vst [vmem:[%s3120_s14 + $0x220] sm:$0xff] %v784_v4  ;;  %v790_v7 = vld [vmem:[%s3115_s5 + $0x438] sm:$0xff]  ;;  %787 = vst [vmem:[%s3120_s14 + $0x228] sm:$0xff] %v786_v5  ;;  %v792_v8 = vld [vmem:[%s3115_s5 + $0x440] sm:$0xff] }
  0x40   : > { %789 = vst [vmem:[%s3120_s14 + $0x230] sm:$0xff] %v788_v6  ;;  %791 = vst [vmem:[%s3120_s14 + $0x238] sm:$0xff] %v790_v7  ;;  %v794_v9 = vld [vmem:[%s3115_s5 + $0x448] sm:$0xff]  ;;  %v796_v10 = vld [vmem:[%s3115_s5 + $0x450] sm:$0xff] }
  0x41   : > { %793 = vst [vmem:[%s3120_s14 + $0x240] sm:$0xff] %v792_v8  ;;  %795 = vst [vmem:[%s3120_s14 + $0x248] sm:$0xff] %v794_v9  ;;  %v798_v11 = vld [vmem:[%s3115_s5 + $0x458] sm:$0xff]  ;;  %v800_v12 = vld [vmem:[%s3115_s5 + $0x460] sm:$0xff] }
  0x42   : > { %797 = vst [vmem:[%s3120_s14 + $0x250] sm:$0xff] %v796_v10  ;;  %v802_v13 = vld [vmem:[%s3115_s5 + $0x468] sm:$0xff]  ;;  %799 = vst [vmem:[%s3120_s14 + $0x258] sm:$0xff] %v798_v11  ;;  %v804_v14 = vld [vmem:[%s3115_s5 + $0x470] sm:$0xff] }
  0x43   : > { %801 = vst [vmem:[%s3120_s14 + $0x260] sm:$0xff] %v800_v12  ;;  %803 = vst [vmem:[%s3120_s14 + $0x268] sm:$0xff] %v802_v13  ;;  %v806_v15 = vld [vmem:[%s3115_s5 + $0x478] sm:$0xff]  ;;  %v808_v16 = vld [vmem:[%s3115_s5 + $0x500] sm:$0xff] }
  0x44   : > { %805 = vst [vmem:[%s3120_s14 + $0x270] sm:$0xff] %v804_v14  ;;  %807 = vst [vmem:[%s3120_s14 + $0x278] sm:$0xff] %v806_v15  ;;  %v810_v17 = vld [vmem:[%s3115_s5 + $0x508] sm:$0xff]  ;;  %v812_v18 = vld [vmem:[%s3115_s5 + $0x510] sm:$0xff] }
  0x45   : > { %809 = vst [vmem:[%s3120_s14 + $0x280] sm:$0xff] %v808_v16  ;;  %v814_v19 = vld [vmem:[%s3115_s5 + $0x518] sm:$0xff]  ;;  %811 = vst [vmem:[%s3120_s14 + $0x288] sm:$0xff] %v810_v17  ;;  %v816_v20 = vld [vmem:[%s3115_s5 + $0x520] sm:$0xff] }
  0x46   : > { %813 = vst [vmem:[%s3120_s14 + $0x290] sm:$0xff] %v812_v18  ;;  %815 = vst [vmem:[%s3120_s14 + $0x298] sm:$0xff] %v814_v19  ;;  %v818_v21 = vld [vmem:[%s3115_s5 + $0x528] sm:$0xff]  ;;  %v820_v22 = vld [vmem:[%s3115_s5 + $0x530] sm:$0xff] }
  0x47   : > { %817 = vst [vmem:[%s3120_s14 + $0x2a0] sm:$0xff] %v816_v20  ;;  %819 = vst [vmem:[%s3120_s14 + $0x2a8] sm:$0xff] %v818_v21  ;;  %v822_v23 = vld [vmem:[%s3115_s5 + $0x538] sm:$0xff]  ;;  %v824_v24 = vld [vmem:[%s3115_s5 + $0x540] sm:$0xff] }
  0x48   : > { %821 = vst [vmem:[%s3120_s14 + $0x2b0] sm:$0xff] %v820_v22  ;;  %v826_v25 = vld [vmem:[%s3115_s5 + $0x548] sm:$0xff]  ;;  %823 = vst [vmem:[%s3120_s14 + $0x2b8] sm:$0xff] %v822_v23  ;;  %v828_v26 = vld [vmem:[%s3115_s5 + $0x550] sm:$0xff] }
  0x49   : > { %825 = vst [vmem:[%s3120_s14 + $0x2c0] sm:$0xff] %v824_v24  ;;  %827 = vst [vmem:[%s3120_s14 + $0x2c8] sm:$0xff] %v826_v25  ;;  %v830_v27 = vld [vmem:[%s3115_s5 + $0x558] sm:$0xff]  ;;  %v832_v28 = vld [vmem:[%s3115_s5 + $0x560] sm:$0xff] }
  0x4a   : > { %829 = vst [vmem:[%s3120_s14 + $0x2d0] sm:$0xff] %v828_v26  ;;  %831 = vst [vmem:[%s3120_s14 + $0x2d8] sm:$0xff] %v830_v27  ;;  %v834_v29 = vld [vmem:[%s3115_s5 + $0x568] sm:$0xff]  ;;  %v836_v30 = vld [vmem:[%s3115_s5 + $0x570] sm:$0xff] }
  0x4b   : > { %833 = vst [vmem:[%s3120_s14 + $0x2e0] sm:$0xff] %v832_v28  ;;  %v838_v31 = vld [vmem:[%s3115_s5 + $0x578] sm:$0xff]  ;;  %835 = vst [vmem:[%s3120_s14 + $0x2e8] sm:$0xff] %v834_v29  ;;  %v840_v32 = vld [vmem:[%s3115_s5 + $0x600] sm:$0xff] }
  0x4c   : > { %837 = vst [vmem:[%s3120_s14 + $0x2f0] sm:$0xff] %v836_v30  ;;  %839 = vst [vmem:[%s3120_s14 + $0x2f8] sm:$0xff] %v838_v31  ;;  %v842_v33 = vld [vmem:[%s3115_s5 + $0x608] sm:$0xff]  ;;  %v844_v34 = vld [vmem:[%s3115_s5 + $0x610] sm:$0xff] }
  0x4d   : > { %841 = vst [vmem:[%s3120_s14 + $0x300] sm:$0xff] %v840_v32  ;;  %843 = vst [vmem:[%s3120_s14 + $0x308] sm:$0xff] %v842_v33  ;;  %v846_v35 = vld [vmem:[%s3115_s5 + $0x618] sm:$0xff]  ;;  %v848_v36 = vld [vmem:[%s3115_s5 + $0x620] sm:$0xff] }
  0x4e   : > { %845 = vst [vmem:[%s3120_s14 + $0x310] sm:$0xff] %v844_v34  ;;  %v850_v37 = vld [vmem:[%s3115_s5 + $0x628] sm:$0xff]  ;;  %847 = vst [vmem:[%s3120_s14 + $0x318] sm:$0xff] %v846_v35  ;;  %v852_v38 = vld [vmem:[%s3115_s5 + $0x630] sm:$0xff] }
  0x4f   : > { %849 = vst [vmem:[%s3120_s14 + $0x320] sm:$0xff] %v848_v36  ;;  %851 = vst [vmem:[%s3120_s14 + $0x328] sm:$0xff] %v850_v37  ;;  %v854_v39 = vld [vmem:[%s3115_s5 + $0x638] sm:$0xff]  ;;  %v856_v40 = vld [vmem:[%s3115_s5 + $0x640] sm:$0xff] }
  0x50   : > { %853 = vst [vmem:[%s3120_s14 + $0x330] sm:$0xff] %v852_v38  ;;  %855 = vst [vmem:[%s3120_s14 + $0x338] sm:$0xff] %v854_v39  ;;  %v858_v41 = vld [vmem:[%s3115_s5 + $0x648] sm:$0xff]  ;;  %v860_v42 = vld [vmem:[%s3115_s5 + $0x650] sm:$0xff] }
  0x51   : > { %857 = vst [vmem:[%s3120_s14 + $0x340] sm:$0xff] %v856_v40  ;;  %v862_v43 = vld [vmem:[%s3115_s5 + $0x658] sm:$0xff]  ;;  %859 = vst [vmem:[%s3120_s14 + $0x348] sm:$0xff] %v858_v41  ;;  %v864_v44 = vld [vmem:[%s3115_s5 + $0x660] sm:$0xff] }
  0x52   : > { %861 = vst [vmem:[%s3120_s14 + $0x350] sm:$0xff] %v860_v42  ;;  %863 = vst [vmem:[%s3120_s14 + $0x358] sm:$0xff] %v862_v43  ;;  %v866_v45 = vld [vmem:[%s3115_s5 + $0x668] sm:$0xff]  ;;  %v868_v46 = vld [vmem:[%s3115_s5 + $0x670] sm:$0xff] }
  0x53   : > { %865 = vst [vmem:[%s3120_s14 + $0x360] sm:$0xff] %v864_v44  ;;  %867 = vst [vmem:[%s3120_s14 + $0x368] sm:$0xff] %v866_v45  ;;  %v870_v47 = vld [vmem:[%s3115_s5 + $0x678] sm:$0xff]  ;;  %v872_v48 = vld [vmem:[%s3115_s5 + $0x700] sm:$0xff] }
  0x54   : > { %869 = vst [vmem:[%s3120_s14 + $0x370] sm:$0xff] %v868_v46  ;;  %v874_v49 = vld [vmem:[%s3115_s5 + $0x708] sm:$0xff]  ;;  %871 = vst [vmem:[%s3120_s14 + $0x378] sm:$0xff] %v870_v47  ;;  %v876_v50 = vld [vmem:[%s3115_s5 + $0x710] sm:$0xff] }
  0x55   : > { %873 = vst [vmem:[%s3120_s14 + $0x380] sm:$0xff] %v872_v48  ;;  %875 = vst [vmem:[%s3120_s14 + $0x388] sm:$0xff] %v874_v49  ;;  %v878_v51 = vld [vmem:[%s3115_s5 + $0x718] sm:$0xff]  ;;  %v880_v52 = vld [vmem:[%s3115_s5 + $0x720] sm:$0xff] }
  0x56   : > { %877 = vst [vmem:[%s3120_s14 + $0x390] sm:$0xff] %v876_v50  ;;  %879 = vst [vmem:[%s3120_s14 + $0x398] sm:$0xff] %v878_v51  ;;  %v882_v53 = vld [vmem:[%s3115_s5 + $0x728] sm:$0xff]  ;;  %v884_v54 = vld [vmem:[%s3115_s5 + $0x730] sm:$0xff] }
  0x57   : > { %881 = vst [vmem:[%s3120_s14 + $0x3a0] sm:$0xff] %v880_v52  ;;  %v886_v55 = vld [vmem:[%s3115_s5 + $0x738] sm:$0xff]  ;;  %883 = vst [vmem:[%s3120_s14 + $0x3a8] sm:$0xff] %v882_v53  ;;  %v888_v56 = vld [vmem:[%s3115_s5 + $0x740] sm:$0xff] }
  0x58   : > { %885 = vst [vmem:[%s3120_s14 + $0x3b0] sm:$0xff] %v884_v54  ;;  %887 = vst [vmem:[%s3120_s14 + $0x3b8] sm:$0xff] %v886_v55  ;;  %v890_v57 = vld [vmem:[%s3115_s5 + $0x748] sm:$0xff]  ;;  %v892_v58 = vld [vmem:[%s3115_s5 + $0x750] sm:$0xff] }
  0x59   : > { %889 = vst [vmem:[%s3120_s14 + $0x3c0] sm:$0xff] %v888_v56  ;;  %891 = vst [vmem:[%s3120_s14 + $0x3c8] sm:$0xff] %v890_v57  ;;  %v894_v59 = vld [vmem:[%s3115_s5 + $0x758] sm:$0xff]  ;;  %v896_v60 = vld [vmem:[%s3115_s5 + $0x760] sm:$0xff] }
  0x5a   : > { %893 = vst [vmem:[%s3120_s14 + $0x3d0] sm:$0xff] %v892_v58  ;;  %v898_v61 = vld [vmem:[%s3115_s5 + $0x768] sm:$0xff]  ;;  %895 = vst [vmem:[%s3120_s14 + $0x3d8] sm:$0xff] %v894_v59  ;;  %v900_v62 = vld [vmem:[%s3115_s5 + $0x770] sm:$0xff] }
  0x5b   : > { %897 = vst [vmem:[%s3120_s14 + $0x3e0] sm:$0xff] %v896_v60  ;;  %899 = vst [vmem:[%s3120_s14 + $0x3e8] sm:$0xff] %v898_v61  ;;  %v902_v63 = vld [vmem:[%s3115_s5 + $0x778] sm:$0xff]  ;;  %v904_v0 = vld [vmem:[%s3115_s5 + $0x800] sm:$0xff] }
  0x5c   : > { %901 = vst [vmem:[%s3120_s14 + $0x3f0] sm:$0xff] %v900_v62  ;;  %903 = vst [vmem:[%s3120_s14 + $0x3f8] sm:$0xff] %v902_v63  ;;  %v906_v1 = vld [vmem:[%s3115_s5 + $0x808] sm:$0xff]  ;;  %v908_v2 = vld [vmem:[%s3115_s5 + $0x810] sm:$0xff] }
  0x5d   : > { %905 = vst [vmem:[%s3120_s14 + $0x400] sm:$0xff] %v904_v0  ;;  %v910_v3 = vld [vmem:[%s3115_s5 + $0x818] sm:$0xff]  ;;  %907 = vst [vmem:[%s3120_s14 + $0x408] sm:$0xff] %v906_v1  ;;  %v912_v4 = vld [vmem:[%s3115_s5 + $0x820] sm:$0xff] }
  0x5e   : > { %909 = vst [vmem:[%s3120_s14 + $0x410] sm:$0xff] %v908_v2  ;;  %911 = vst [vmem:[%s3120_s14 + $0x418] sm:$0xff] %v910_v3  ;;  %v914_v5 = vld [vmem:[%s3115_s5 + $0x828] sm:$0xff]  ;;  %v916_v6 = vld [vmem:[%s3115_s5 + $0x830] sm:$0xff] }
  0x5f   : > { %913 = vst [vmem:[%s3120_s14 + $0x420] sm:$0xff] %v912_v4  ;;  %915 = vst [vmem:[%s3120_s14 + $0x428] sm:$0xff] %v914_v5  ;;  %v918_v7 = vld [vmem:[%s3115_s5 + $0x838] sm:$0xff]  ;;  %v920_v8 = vld [vmem:[%s3115_s5 + $0x840] sm:$0xff] }
  0x60   : > { %917 = vst [vmem:[%s3120_s14 + $0x430] sm:$0xff] %v916_v6  ;;  %v922_v9 = vld [vmem:[%s3115_s5 + $0x848] sm:$0xff]  ;;  %919 = vst [vmem:[%s3120_s14 + $0x438] sm:$0xff] %v918_v7  ;;  %v924_v10 = vld [vmem:[%s3115_s5 + $0x850] sm:$0xff] }
  0x61   : > { %921 = vst [vmem:[%s3120_s14 + $0x440] sm:$0xff] %v920_v8  ;;  %923 = vst [vmem:[%s3120_s14 + $0x448] sm:$0xff] %v922_v9  ;;  %v926_v11 = vld [vmem:[%s3115_s5 + $0x858] sm:$0xff]  ;;  %v928_v12 = vld [vmem:[%s3115_s5 + $0x860] sm:$0xff] }
  0x62   : > { %925 = vst [vmem:[%s3120_s14 + $0x450] sm:$0xff] %v924_v10  ;;  %927 = vst [vmem:[%s3120_s14 + $0x458] sm:$0xff] %v926_v11  ;;  %v930_v13 = vld [vmem:[%s3115_s5 + $0x868] sm:$0xff]  ;;  %v932_v14 = vld [vmem:[%s3115_s5 + $0x870] sm:$0xff] }
  0x63   : > { %929 = vst [vmem:[%s3120_s14 + $0x460] sm:$0xff] %v928_v12  ;;  %v934_v15 = vld [vmem:[%s3115_s5 + $0x878] sm:$0xff]  ;;  %931 = vst [vmem:[%s3120_s14 + $0x468] sm:$0xff] %v930_v13  ;;  %v936_v16 = vld [vmem:[%s3115_s5 + $0x900] sm:$0xff] }
  0x64   : > { %933 = vst [vmem:[%s3120_s14 + $0x470] sm:$0xff] %v932_v14  ;;  %935 = vst [vmem:[%s3120_s14 + $0x478] sm:$0xff] %v934_v15  ;;  %v938_v17 = vld [vmem:[%s3115_s5 + $0x908] sm:$0xff]  ;;  %v940_v18 = vld [vmem:[%s3115_s5 + $0x910] sm:$0xff] }
  0x65   : > { %937 = vst [vmem:[%s3120_s14 + $0x480] sm:$0xff] %v936_v16  ;;  %939 = vst [vmem:[%s3120_s14 + $0x488] sm:$0xff] %v938_v17  ;;  %v942_v19 = vld [vmem:[%s3115_s5 + $0x918] sm:$0xff]  ;;  %v944_v20 = vld [vmem:[%s3115_s5 + $0x920] sm:$0xff] }
  0x66   : > { %941 = vst [vmem:[%s3120_s14 + $0x490] sm:$0xff] %v940_v18  ;;  %v946_v21 = vld [vmem:[%s3115_s5 + $0x928] sm:$0xff]  ;;  %943 = vst [vmem:[%s3120_s14 + $0x498] sm:$0xff] %v942_v19  ;;  %v948_v22 = vld [vmem:[%s3115_s5 + $0x930] sm:$0xff] }
  0x67   : > { %945 = vst [vmem:[%s3120_s14 + $0x4a0] sm:$0xff] %v944_v20  ;;  %947 = vst [vmem:[%s3120_s14 + $0x4a8] sm:$0xff] %v946_v21  ;;  %v950_v23 = vld [vmem:[%s3115_s5 + $0x938] sm:$0xff]  ;;  %v952_v24 = vld [vmem:[%s3115_s5 + $0x940] sm:$0xff] }
  0x68   : > { %949 = vst [vmem:[%s3120_s14 + $0x4b0] sm:$0xff] %v948_v22  ;;  %951 = vst [vmem:[%s3120_s14 + $0x4b8] sm:$0xff] %v950_v23  ;;  %v954_v25 = vld [vmem:[%s3115_s5 + $0x948] sm:$0xff]  ;;  %v956_v26 = vld [vmem:[%s3115_s5 + $0x950] sm:$0xff] }
  0x69   : > { %953 = vst [vmem:[%s3120_s14 + $0x4c0] sm:$0xff] %v952_v24  ;;  %v958_v27 = vld [vmem:[%s3115_s5 + $0x958] sm:$0xff]  ;;  %955 = vst [vmem:[%s3120_s14 + $0x4c8] sm:$0xff] %v954_v25  ;;  %v960_v28 = vld [vmem:[%s3115_s5 + $0x960] sm:$0xff] }
  0x6a   : > { %957 = vst [vmem:[%s3120_s14 + $0x4d0] sm:$0xff] %v956_v26  ;;  %959 = vst [vmem:[%s3120_s14 + $0x4d8] sm:$0xff] %v958_v27  ;;  %v962_v29 = vld [vmem:[%s3115_s5 + $0x968] sm:$0xff]  ;;  %v964_v30 = vld [vmem:[%s3115_s5 + $0x970] sm:$0xff] }
  0x6b   : > { %961 = vst [vmem:[%s3120_s14 + $0x4e0] sm:$0xff] %v960_v28  ;;  %963 = vst [vmem:[%s3120_s14 + $0x4e8] sm:$0xff] %v962_v29  ;;  %v966_v31 = vld [vmem:[%s3115_s5 + $0x978] sm:$0xff]  ;;  %v968_v32 = vld [vmem:[%s3115_s5 + $0xa00] sm:$0xff] }
  0x6c   : > { %965 = vst [vmem:[%s3120_s14 + $0x4f0] sm:$0xff] %v964_v30  ;;  %v970_v33 = vld [vmem:[%s3115_s5 + $0xa08] sm:$0xff]  ;;  %967 = vst [vmem:[%s3120_s14 + $0x4f8] sm:$0xff] %v966_v31  ;;  %v972_v34 = vld [vmem:[%s3115_s5 + $0xa10] sm:$0xff] }
  0x6d   : > { %969 = vst [vmem:[%s3120_s14 + $0x500] sm:$0xff] %v968_v32  ;;  %971 = vst [vmem:[%s3120_s14 + $0x508] sm:$0xff] %v970_v33  ;;  %v974_v35 = vld [vmem:[%s3115_s5 + $0xa18] sm:$0xff]  ;;  %v976_v36 = vld [vmem:[%s3115_s5 + $0xa20] sm:$0xff] }
  0x6e   : > { %973 = vst [vmem:[%s3120_s14 + $0x510] sm:$0xff] %v972_v34  ;;  %975 = vst [vmem:[%s3120_s14 + $0x518] sm:$0xff] %v974_v35  ;;  %v978_v37 = vld [vmem:[%s3115_s5 + $0xa28] sm:$0xff]  ;;  %v980_v38 = vld [vmem:[%s3115_s5 + $0xa30] sm:$0xff] }
  0x6f   : > { %977 = vst [vmem:[%s3120_s14 + $0x520] sm:$0xff] %v976_v36  ;;  %v982_v39 = vld [vmem:[%s3115_s5 + $0xa38] sm:$0xff]  ;;  %979 = vst [vmem:[%s3120_s14 + $0x528] sm:$0xff] %v978_v37  ;;  %v984_v40 = vld [vmem:[%s3115_s5 + $0xa40] sm:$0xff] }
  0x70   : > { %981 = vst [vmem:[%s3120_s14 + $0x530] sm:$0xff] %v980_v38  ;;  %983 = vst [vmem:[%s3120_s14 + $0x538] sm:$0xff] %v982_v39  ;;  %v986_v41 = vld [vmem:[%s3115_s5 + $0xa48] sm:$0xff]  ;;  %v988_v42 = vld [vmem:[%s3115_s5 + $0xa50] sm:$0xff] }
  0x71   : > { %985 = vst [vmem:[%s3120_s14 + $0x540] sm:$0xff] %v984_v40  ;;  %987 = vst [vmem:[%s3120_s14 + $0x548] sm:$0xff] %v986_v41  ;;  %v990_v43 = vld [vmem:[%s3115_s5 + $0xa58] sm:$0xff]  ;;  %v992_v44 = vld [vmem:[%s3115_s5 + $0xa60] sm:$0xff] }
  0x72   : > { %989 = vst [vmem:[%s3120_s14 + $0x550] sm:$0xff] %v988_v42  ;;  %v994_v45 = vld [vmem:[%s3115_s5 + $0xa68] sm:$0xff]  ;;  %991 = vst [vmem:[%s3120_s14 + $0x558] sm:$0xff] %v990_v43  ;;  %v996_v46 = vld [vmem:[%s3115_s5 + $0xa70] sm:$0xff] }
  0x73   : > { %993 = vst [vmem:[%s3120_s14 + $0x560] sm:$0xff] %v992_v44  ;;  %995 = vst [vmem:[%s3120_s14 + $0x568] sm:$0xff] %v994_v45  ;;  %v998_v47 = vld [vmem:[%s3115_s5 + $0xa78] sm:$0xff]  ;;  %v1000_v48 = vld [vmem:[%s3115_s5 + $0xb00] sm:$0xff] }
  0x74   : > { %997 = vst [vmem:[%s3120_s14 + $0x570] sm:$0xff] %v996_v46  ;;  %999 = vst [vmem:[%s3120_s14 + $0x578] sm:$0xff] %v998_v47  ;;  %v1002_v49 = vld [vmem:[%s3115_s5 + $0xb08] sm:$0xff]  ;;  %v1004_v50 = vld [vmem:[%s3115_s5 + $0xb10] sm:$0xff] }
  0x75   : > { %1001 = vst [vmem:[%s3120_s14 + $0x580] sm:$0xff] %v1000_v48  ;;  %v1006_v51 = vld [vmem:[%s3115_s5 + $0xb18] sm:$0xff]  ;;  %1003 = vst [vmem:[%s3120_s14 + $0x588] sm:$0xff] %v1002_v49  ;;  %v1008_v52 = vld [vmem:[%s3115_s5 + $0xb20] sm:$0xff] }
  0x76   : > { %1005 = vst [vmem:[%s3120_s14 + $0x590] sm:$0xff] %v1004_v50  ;;  %1007 = vst [vmem:[%s3120_s14 + $0x598] sm:$0xff] %v1006_v51  ;;  %v1010_v53 = vld [vmem:[%s3115_s5 + $0xb28] sm:$0xff]  ;;  %v1012_v54 = vld [vmem:[%s3115_s5 + $0xb30] sm:$0xff] }
  0x77   : > { %1009 = vst [vmem:[%s3120_s14 + $0x5a0] sm:$0xff] %v1008_v52  ;;  %1011 = vst [vmem:[%s3120_s14 + $0x5a8] sm:$0xff] %v1010_v53  ;;  %v1014_v55 = vld [vmem:[%s3115_s5 + $0xb38] sm:$0xff]  ;;  %v1016_v56 = vld [vmem:[%s3115_s5 + $0xb40] sm:$0xff] }
  0x78   : > { %1013 = vst [vmem:[%s3120_s14 + $0x5b0] sm:$0xff] %v1012_v54  ;;  %v1018_v57 = vld [vmem:[%s3115_s5 + $0xb48] sm:$0xff]  ;;  %1015 = vst [vmem:[%s3120_s14 + $0x5b8] sm:$0xff] %v1014_v55  ;;  %v1020_v58 = vld [vmem:[%s3115_s5 + $0xb50] sm:$0xff] }
  0x79   : > { %1017 = vst [vmem:[%s3120_s14 + $0x5c0] sm:$0xff] %v1016_v56  ;;  %1019 = vst [vmem:[%s3120_s14 + $0x5c8] sm:$0xff] %v1018_v57  ;;  %v1022_v59 = vld [vmem:[%s3115_s5 + $0xb58] sm:$0xff]  ;;  %v1024_v60 = vld [vmem:[%s3115_s5 + $0xb60] sm:$0xff] }
  0x7a   : > { %1021 = vst [vmem:[%s3120_s14 + $0x5d0] sm:$0xff] %v1020_v58  ;;  %1023 = vst [vmem:[%s3120_s14 + $0x5d8] sm:$0xff] %v1022_v59  ;;  %v1026_v61 = vld [vmem:[%s3115_s5 + $0xb68] sm:$0xff]  ;;  %v1028_v62 = vld [vmem:[%s3115_s5 + $0xb70] sm:$0xff] }
  0x7b   : > { %1025 = vst [vmem:[%s3120_s14 + $0x5e0] sm:$0xff] %v1024_v60  ;;  %v1030_v63 = vld [vmem:[%s3115_s5 + $0xb78] sm:$0xff]  ;;  %1027 = vst [vmem:[%s3120_s14 + $0x5e8] sm:$0xff] %v1026_v61  ;;  %v1032_v0 = vld [vmem:[%s3115_s5 + $0xc00] sm:$0xff] }
  0x7c   : > { %1029 = vst [vmem:[%s3120_s14 + $0x5f0] sm:$0xff] %v1028_v62  ;;  %1031 = vst [vmem:[%s3120_s14 + $0x5f8] sm:$0xff] %v1030_v63  ;;  %v1034_v1 = vld [vmem:[%s3115_s5 + $0xc08] sm:$0xff]  ;;  %v1036_v2 = vld [vmem:[%s3115_s5 + $0xc10] sm:$0xff] }
  0x7d   : > { %1033 = vst [vmem:[%s3120_s14 + $0x600] sm:$0xff] %v1032_v0  ;;  %1035 = vst [vmem:[%s3120_s14 + $0x608] sm:$0xff] %v1034_v1  ;;  %v1038_v3 = vld [vmem:[%s3115_s5 + $0xc18] sm:$0xff]  ;;  %v1040_v4 = vld [vmem:[%s3115_s5 + $0xc20] sm:$0xff] }
  0x7e   : > { %1037 = vst [vmem:[%s3120_s14 + $0x610] sm:$0xff] %v1036_v2  ;;  %v1042_v5 = vld [vmem:[%s3115_s5 + $0xc28] sm:$0xff]  ;;  %1039 = vst [vmem:[%s3120_s14 + $0x618] sm:$0xff] %v1038_v3  ;;  %v1044_v6 = vld [vmem:[%s3115_s5 + $0xc30] sm:$0xff] }
  0x7f   : > { %1041 = vst [vmem:[%s3120_s14 + $0x620] sm:$0xff] %v1040_v4  ;;  %1043 = vst [vmem:[%s3120_s14 + $0x628] sm:$0xff] %v1042_v5  ;;  %v1046_v7 = vld [vmem:[%s3115_s5 + $0xc38] sm:$0xff]  ;;  %v1048_v8 = vld [vmem:[%s3115_s5 + $0xc40] sm:$0xff] }
  0x80   : > { %1045 = vst [vmem:[%s3120_s14 + $0x630] sm:$0xff] %v1044_v6  ;;  %1047 = vst [vmem:[%s3120_s14 + $0x638] sm:$0xff] %v1046_v7  ;;  %v1050_v9 = vld [vmem:[%s3115_s5 + $0xc48] sm:$0xff]  ;;  %v1052_v10 = vld [vmem:[%s3115_s5 + $0xc50] sm:$0xff] }
  0x81   : > { %1049 = vst [vmem:[%s3120_s14 + $0x640] sm:$0xff] %v1048_v8  ;;  %v1054_v11 = vld [vmem:[%s3115_s5 + $0xc58] sm:$0xff]  ;;  %1051 = vst [vmem:[%s3120_s14 + $0x648] sm:$0xff] %v1050_v9  ;;  %v1056_v12 = vld [vmem:[%s3115_s5 + $0xc60] sm:$0xff] }
  0x82   : > { %1053 = vst [vmem:[%s3120_s14 + $0x650] sm:$0xff] %v1052_v10  ;;  %1055 = vst [vmem:[%s3120_s14 + $0x658] sm:$0xff] %v1054_v11  ;;  %v1058_v13 = vld [vmem:[%s3115_s5 + $0xc68] sm:$0xff]  ;;  %v1060_v14 = vld [vmem:[%s3115_s5 + $0xc70] sm:$0xff] }
  0x83   : > { %1057 = vst [vmem:[%s3120_s14 + $0x660] sm:$0xff] %v1056_v12  ;;  %1059 = vst [vmem:[%s3120_s14 + $0x668] sm:$0xff] %v1058_v13  ;;  %v1062_v15 = vld [vmem:[%s3115_s5 + $0xc78] sm:$0xff]  ;;  %v1064_v16 = vld [vmem:[%s3115_s5 + $0xd00] sm:$0xff] }
  0x84   : > { %1061 = vst [vmem:[%s3120_s14 + $0x670] sm:$0xff] %v1060_v14  ;;  %v1066_v17 = vld [vmem:[%s3115_s5 + $0xd08] sm:$0xff]  ;;  %1063 = vst [vmem:[%s3120_s14 + $0x678] sm:$0xff] %v1062_v15  ;;  %v1068_v18 = vld [vmem:[%s3115_s5 + $0xd10] sm:$0xff] }
  0x85   : > { %1065 = vst [vmem:[%s3120_s14 + $0x680] sm:$0xff] %v1064_v16  ;;  %1067 = vst [vmem:[%s3120_s14 + $0x688] sm:$0xff] %v1066_v17  ;;  %v1070_v19 = vld [vmem:[%s3115_s5 + $0xd18] sm:$0xff]  ;;  %v1072_v20 = vld [vmem:[%s3115_s5 + $0xd20] sm:$0xff] }
  0x86   : > { %1069 = vst [vmem:[%s3120_s14 + $0x690] sm:$0xff] %v1068_v18  ;;  %1071 = vst [vmem:[%s3120_s14 + $0x698] sm:$0xff] %v1070_v19  ;;  %v1074_v21 = vld [vmem:[%s3115_s5 + $0xd28] sm:$0xff]  ;;  %v1076_v22 = vld [vmem:[%s3115_s5 + $0xd30] sm:$0xff] }
  0x87   : > { %1073 = vst [vmem:[%s3120_s14 + $0x6a0] sm:$0xff] %v1072_v20  ;;  %v1078_v23 = vld [vmem:[%s3115_s5 + $0xd38] sm:$0xff]  ;;  %1075 = vst [vmem:[%s3120_s14 + $0x6a8] sm:$0xff] %v1074_v21  ;;  %v1080_v24 = vld [vmem:[%s3115_s5 + $0xd40] sm:$0xff] }
  0x88   : > { %1077 = vst [vmem:[%s3120_s14 + $0x6b0] sm:$0xff] %v1076_v22  ;;  %1079 = vst [vmem:[%s3120_s14 + $0x6b8] sm:$0xff] %v1078_v23  ;;  %v1082_v25 = vld [vmem:[%s3115_s5 + $0xd48] sm:$0xff]  ;;  %v1084_v26 = vld [vmem:[%s3115_s5 + $0xd50] sm:$0xff] }
  0x89   : > { %1081 = vst [vmem:[%s3120_s14 + $0x6c0] sm:$0xff] %v1080_v24  ;;  %1083 = vst [vmem:[%s3120_s14 + $0x6c8] sm:$0xff] %v1082_v25  ;;  %v1086_v27 = vld [vmem:[%s3115_s5 + $0xd58] sm:$0xff]  ;;  %v1088_v28 = vld [vmem:[%s3115_s5 + $0xd60] sm:$0xff] }
  0x8a   : > { %1085 = vst [vmem:[%s3120_s14 + $0x6d0] sm:$0xff] %v1084_v26  ;;  %v1090_v29 = vld [vmem:[%s3115_s5 + $0xd68] sm:$0xff]  ;;  %1087 = vst [vmem:[%s3120_s14 + $0x6d8] sm:$0xff] %v1086_v27  ;;  %v1092_v30 = vld [vmem:[%s3115_s5 + $0xd70] sm:$0xff] }
  0x8b   : > { %1089 = vst [vmem:[%s3120_s14 + $0x6e0] sm:$0xff] %v1088_v28  ;;  %1091 = vst [vmem:[%s3120_s14 + $0x6e8] sm:$0xff] %v1090_v29  ;;  %v1094_v31 = vld [vmem:[%s3115_s5 + $0xd78] sm:$0xff]  ;;  %v1096_v32 = vld [vmem:[%s3115_s5 + $0xe00] sm:$0xff] }
  0x8c   : > { %1093 = vst [vmem:[%s3120_s14 + $0x6f0] sm:$0xff] %v1092_v30  ;;  %1095 = vst [vmem:[%s3120_s14 + $0x6f8] sm:$0xff] %v1094_v31  ;;  %v1098_v33 = vld [vmem:[%s3115_s5 + $0xe08] sm:$0xff]  ;;  %v1100_v34 = vld [vmem:[%s3115_s5 + $0xe10] sm:$0xff] }
  0x8d   : > { %1097 = vst [vmem:[%s3120_s14 + $0x700] sm:$0xff] %v1096_v32  ;;  %v1102_v35 = vld [vmem:[%s3115_s5 + $0xe18] sm:$0xff]  ;;  %1099 = vst [vmem:[%s3120_s14 + $0x708] sm:$0xff] %v1098_v33  ;;  %v1104_v36 = vld [vmem:[%s3115_s5 + $0xe20] sm:$0xff] }
  0x8e   : > { %1101 = vst [vmem:[%s3120_s14 + $0x710] sm:$0xff] %v1100_v34  ;;  %1103 = vst [vmem:[%s3120_s14 + $0x718] sm:$0xff] %v1102_v35  ;;  %v1106_v37 = vld [vmem:[%s3115_s5 + $0xe28] sm:$0xff]  ;;  %v1108_v38 = vld [vmem:[%s3115_s5 + $0xe30] sm:$0xff] }
  0x8f   : > { %1105 = vst [vmem:[%s3120_s14 + $0x720] sm:$0xff] %v1104_v36  ;;  %1107 = vst [vmem:[%s3120_s14 + $0x728] sm:$0xff] %v1106_v37  ;;  %v1110_v39 = vld [vmem:[%s3115_s5 + $0xe38] sm:$0xff]  ;;  %v1112_v40 = vld [vmem:[%s3115_s5 + $0xe40] sm:$0xff] }
  0x90   : > { %1109 = vst [vmem:[%s3120_s14 + $0x730] sm:$0xff] %v1108_v38  ;;  %v1114_v41 = vld [vmem:[%s3115_s5 + $0xe48] sm:$0xff]  ;;  %1111 = vst [vmem:[%s3120_s14 + $0x738] sm:$0xff] %v1110_v39  ;;  %v1116_v42 = vld [vmem:[%s3115_s5 + $0xe50] sm:$0xff] }
  0x91   : > { %1113 = vst [vmem:[%s3120_s14 + $0x740] sm:$0xff] %v1112_v40  ;;  %1115 = vst [vmem:[%s3120_s14 + $0x748] sm:$0xff] %v1114_v41  ;;  %v1118_v43 = vld [vmem:[%s3115_s5 + $0xe58] sm:$0xff]  ;;  %v1120_v44 = vld [vmem:[%s3115_s5 + $0xe60] sm:$0xff] }
  0x92   : > { %1117 = vst [vmem:[%s3120_s14 + $0x750] sm:$0xff] %v1116_v42  ;;  %1119 = vst [vmem:[%s3120_s14 + $0x758] sm:$0xff] %v1118_v43  ;;  %v1122_v45 = vld [vmem:[%s3115_s5 + $0xe68] sm:$0xff]  ;;  %v1124_v46 = vld [vmem:[%s3115_s5 + $0xe70] sm:$0xff] }
  0x93   : > { %1121 = vst [vmem:[%s3120_s14 + $0x760] sm:$0xff] %v1120_v44  ;;  %v1126_v47 = vld [vmem:[%s3115_s5 + $0xe78] sm:$0xff]  ;;  %1123 = vst [vmem:[%s3120_s14 + $0x768] sm:$0xff] %v1122_v45  ;;  %v1128_v48 = vld [vmem:[%s3115_s5 + $0xf00] sm:$0xff] }
  0x94   : > { %1125 = vst [vmem:[%s3120_s14 + $0x770] sm:$0xff] %v1124_v46  ;;  %1127 = vst [vmem:[%s3120_s14 + $0x778] sm:$0xff] %v1126_v47  ;;  %v1130_v49 = vld [vmem:[%s3115_s5 + $0xf08] sm:$0xff]  ;;  %v1132_v50 = vld [vmem:[%s3115_s5 + $0xf10] sm:$0xff] }
  0x95   : > { %1129 = vst [vmem:[%s3120_s14 + $0x780] sm:$0xff] %v1128_v48  ;;  %1131 = vst [vmem:[%s3120_s14 + $0x788] sm:$0xff] %v1130_v49  ;;  %v1134_v51 = vld [vmem:[%s3115_s5 + $0xf18] sm:$0xff]  ;;  %v1136_v52 = vld [vmem:[%s3115_s5 + $0xf20] sm:$0xff] }
  0x96   : > { %1133 = vst [vmem:[%s3120_s14 + $0x790] sm:$0xff] %v1132_v50  ;;  %v1138_v53 = vld [vmem:[%s3115_s5 + $0xf28] sm:$0xff]  ;;  %1135 = vst [vmem:[%s3120_s14 + $0x798] sm:$0xff] %v1134_v51  ;;  %v1140_v54 = vld [vmem:[%s3115_s5 + $0xf30] sm:$0xff] }
  0x97   : > { %1137 = vst [vmem:[%s3120_s14 + $0x7a0] sm:$0xff] %v1136_v52  ;;  %1139 = vst [vmem:[%s3120_s14 + $0x7a8] sm:$0xff] %v1138_v53  ;;  %v1142_v55 = vld [vmem:[%s3115_s5 + $0xf38] sm:$0xff]  ;;  %v1144_v56 = vld [vmem:[%s3115_s5 + $0xf40] sm:$0xff] }
  0x98   : > { %1141 = vst [vmem:[%s3120_s14 + $0x7b0] sm:$0xff] %v1140_v54  ;;  %1143 = vst [vmem:[%s3120_s14 + $0x7b8] sm:$0xff] %v1142_v55  ;;  %v1146_v57 = vld [vmem:[%s3115_s5 + $0xf48] sm:$0xff]  ;;  %v1148_v58 = vld [vmem:[%s3115_s5 + $0xf50] sm:$0xff] }
  0x99   : > { %1145 = vst [vmem:[%s3120_s14 + $0x7c0] sm:$0xff] %v1144_v56  ;;  %v1150_v59 = vld [vmem:[%s3115_s5 + $0xf58] sm:$0xff]  ;;  %1147 = vst [vmem:[%s3120_s14 + $0x7c8] sm:$0xff] %v1146_v57  ;;  %v1152_v60 = vld [vmem:[%s3115_s5 + $0xf60] sm:$0xff] }
  0x9a   : > { %1149 = vst [vmem:[%s3120_s14 + $0x7d0] sm:$0xff] %v1148_v58  ;;  %1151 = vst [vmem:[%s3120_s14 + $0x7d8] sm:$0xff] %v1150_v59  ;;  %v1154_v61 = vld [vmem:[%s3115_s5 + $0xf68] sm:$0xff]  ;;  %v1156_v62 = vld [vmem:[%s3115_s5 + $0xf70] sm:$0xff] }
  0x9b   : > { %1153 = vst [vmem:[%s3120_s14 + $0x7e0] sm:$0xff] %v1152_v60  ;;  %1155 = vst [vmem:[%s3120_s14 + $0x7e8] sm:$0xff] %v1154_v61  ;;  %v1158_v63 = vld [vmem:[%s3115_s5 + $0xf78] sm:$0xff] }
  0x9c   : > { %1157 = vst [vmem:[%s3120_s14 + $0x7f0] sm:$0xff] %v1156_v62  ;;  %1159 = vst [vmem:[%s3120_s14 + $0x7f8] sm:$0xff] %v1158_v63 }
  0x9d PF: > { %p2847_p12 = scmp.ge.s32.totalorder %s3019_s13, 1  ;;  %p1164_p13 = scmp.lt.s32.totalorder %s3019_s13, 5 }
  0x9f   : > { %p1165_p0 = pnand %p2847_p12, %p1164_p13 }
  0xa0   : > { %s3634_s15 = sand.u32 (!%p1165_p0), 1, %s2995_s7   ;;  %s2851_s24 = sshll.u32 (!%p1165_p0), %s3007_s10, 1 }
  0xa1   : > { %1168 = sbr.rel (%p1165_p0) target bundleno = 743 (0x2e7), region = 58  ;;  %s2848_s18 = sshll.u32 (!%p1165_p0), %s3634_s15, 11 }
  0xa2   : > { %s3637_s19 = scalar_lea.vmem (!%p1165_p0), [#allocation2], %s2848_s18  ;;  %s2849_s22 = sshll.u32 (!%p1165_p0), %s3634_s15, 1 }
  0xa3   : > { %s5638_s23 = scalar_lea.vmem (!%p1165_p0), [#allocation3], %s2849_s22  ;;  %s2753_s26 = sadd.s32 (!%p1165_p0), %s3003_s9, %s2851_s24 }
  0xa4   : > { %s2852_s27 = sshll.u32 (!%p1165_p0), %s2753_s26, 5  ;;  %s2757_s28 = sshll.u32 (!%p1165_p0), %s5638_s23, 4  ;;  %s2758_s28 = int_to_ptr.vmem [resolvable:$true] %s2757_s28 }
  0xa5   : > { %s2755_s2 = scalar_lea.hbm (!%p1165_p0), %s5742_s1, %s2852_s27  ;;  %s2742_s3 = scalar_lea.sflag (!%p1165_p0), [#allocation4], %s3634_s15 }
  0xa6   : > { %vm1447_vm0 = vcmask 31744   ;;  %v3640_v0 = vld [vmem:[%s3637_s19] sm:$0xff]  ;;  %v3643_v1 = vld [vmem:[%s3637_s19 + $0x8] sm:$0xff]  ;;  %v3646_v2 = vld [vmem:[%s3637_s19 + $0x10] sm:$0xff]  ;;  %vm1965_vm1 = vcmask 24576   ;;  %s2927_s4 = scalar_lea.vmem %s2758_s28, 32 }
  0xa7   : > { %v1448_v3 = vsel %vm1447_vm0, %v3640_v0, 0.0  ;;  %v1449_v4 = vsel %vm1447_vm0, %v3643_v1, 0.0  ;;  %v1451_v5 = vsel %vm1447_vm0, %v3646_v2, 0.0  ;;  %v3655_v6 = vld [vmem:[%s3637_s19 + $0x18] sm:$0xff]  ;;  %v3660_v9 = vld [vmem:[%s3637_s19 + $0x20] sm:$0xff]  ;;  %v3665_v12 = vld [vmem:[%s3637_s19 + $0x28] sm:$0xff]  ;;  %p2928_p1 = scmp.ne.s32.totalorder %s2758_s28, %s2927_s4 }
  0xa8   : > { %v1450_v7 = vadd.f32 %v1449_v4, %v1448_v3  ;;  %v1453_v8 = vsel %vm1447_vm0, %v3655_v6, 0.0  ;;  %v1455_v11 = vsel %vm1447_vm0, %v3660_v9, 0.0  ;;  %v1457_v14 = vsel %vm1447_vm0, %v3665_v12, 0.0  ;;  %v3670_v15 = vld [vmem:[%s3637_s19 + $0x30] sm:$0xff]  ;;  %v3675_v18 = vld [vmem:[%s3637_s19 + $0x38] sm:$0xff]  ;;  %v3680_v21 = vld [vmem:[%s3637_s19 + $0x40] sm:$0xff] }
  0xa9   : > { %v1459_v17 = vsel %vm1447_vm0, %v3670_v15, 0.0  ;;  %v1461_v20 = vsel %vm1447_vm0, %v3675_v18, 0.0  ;;  %v1463_v23 = vsel %vm1447_vm0, %v3680_v21, 0.0  ;;  %v3685_v24 = vld [vmem:[%s3637_s19 + $0x48] sm:$0xff]  ;;  %v3690_v27 = vld [vmem:[%s3637_s19 + $0x50] sm:$0xff]  ;;  %v3695_v30 = vld [vmem:[%s3637_s19 + $0x58] sm:$0xff]  ;;  %p2929_p2 = pnand %p2928_p1, %p3092_p8 }
  0xaa   : > { %v1452_v10 = vadd.f32 %v1451_v5, %v1450_v7  ;;  %v1465_v26 = vsel %vm1447_vm0, %v3685_v24, 0.0  ;;  %v1467_v29 = vsel %vm1447_vm0, %v3690_v27, 0.0  ;;  %v1469_v32 = vsel %vm1447_vm0, %v3695_v30, 0.0  ;;  %v3700_v33 = vld [vmem:[%s3637_s19 + $0x60] sm:$0xff]  ;;  %v3705_v36 = vld [vmem:[%s3637_s19 + $0x68] sm:$0xff]  ;;  %v3710_v39 = vld [vmem:[%s3637_s19 + $0x70] sm:$0xff] }
  0xab   : > { %v1471_v35 = vsel %vm1447_vm0, %v3700_v33, 0.0  ;;  %v1473_v38 = vsel %vm1447_vm0, %v3705_v36, 0.0  ;;  %v1475_v41 = vsel %vm1447_vm0, %v3710_v39, 0.0  ;;  %v3715_v42 = vld [vmem:[%s3637_s19 + $0x78] sm:$0xff]  ;;  %v3720_v45 = vld [vmem:[%s3637_s19 + $0x80] sm:$0xff]  ;;  %v3725_v48 = vld [vmem:[%s3637_s19 + $0x88] sm:$0xff]  ;;  %p2930_p3 = pneg %p2929_p2 }
  0xac   : > { %v1454_v13 = vadd.f32 %v1453_v8, %v1452_v10  ;;  %v1477_v44 = vsel %vm1447_vm0, %v3715_v42, 0.0  ;;  %v1479_v47 = vsel %vm1447_vm0, %v3720_v45, 0.0  ;;  %v1481_v50 = vsel %vm1447_vm0, %v3725_v48, 0.0  ;;  %v3730_v51 = vld [vmem:[%s3637_s19 + $0x90] sm:$0xff]  ;;  %v3735_v54 = vld [vmem:[%s3637_s19 + $0x98] sm:$0xff]  ;;  %v3740_v57 = vld [vmem:[%s3637_s19 + $0xa0] sm:$0xff] }
  0xad   : > { %v1483_v53 = vsel %vm1447_vm0, %v3730_v51, 0.0  ;;  %v1485_v56 = vsel %vm1447_vm0, %v3735_v54, 0.0  ;;  %v1487_v59 = vsel %vm1447_vm0, %v3740_v57, 0.0  ;;  %v3745_v60 = vld [vmem:[%s3637_s19 + $0xa8] sm:$0xff]  ;;  %v3750_v63 = vld [vmem:[%s3637_s19 + $0xb0] sm:$0xff]  ;;  %v3755_v5 = vld [vmem:[%s3637_s19 + $0xb8] sm:$0xff] }
  0xae   : > { %v1456_v16 = vadd.f32 %v1455_v11, %v1454_v13  ;;  %v1489_v62 = vsel %vm1447_vm0, %v3745_v60, 0.0  ;;  %v1491_v4 = vsel %vm1447_vm0, %v3750_v63, 0.0  ;;  %v1493_v8 = vsel %vm1447_vm0, %v3755_v5, 0.0  ;;  %v3760_v10 = vld [vmem:[%s3637_s19 + $0xc0] sm:$0xff]  ;;  %s3021_s10 = smov [#allocation3]  }
  0xaf   : > { %v1495_v13 = vsel %vm1447_vm0, %v3760_v10, 0.0  ;;  %s2931_s9 = sshll.u32 %s3021_s10, 4  ;;  %s2932_s9 = int_to_ptr.vmem [resolvable:$false] %s2931_s9 }
  0xb0   : > { %v1458_v19 = vadd.f32 %v1457_v14, %v1456_v16  ;;  %v3765_v14 = vld [vmem:[%s3637_s19 + $0xc8] sm:$0xff]  ;;  %s2933_s5 = scalar_lea.vmem %s2932_s9, 64  ;;  %p2934_p4 = scmp.lt.s32.totalorder %s2758_s28, %s2932_s9 }
  0xb1   : > { %p2935_p5 = scmp.lt.s32.totalorder %s2933_s5, %s2927_s4 }
  0xb2   : > { %v1460_v22 = vadd.f32 %v1459_v17, %v1458_v19  ;;  %v1497_v17 = vsel %vm1447_vm0, %v3765_v14, 0.0  ;;  %v3770_v19 = vld [vmem:[%s3637_s19 + $0xd0] sm:$0xff] }
  0xb3   : > { %p2936_p6 = por %p2935_p5, %p2934_p4 }
  0xb4   : > { %v1462_v25 = vadd.f32 %v1461_v20, %v1460_v22  ;;  %v1499_v22 = vsel %vm1447_vm0, %v3770_v19, 0.0 }
  0xb5   : > { %p2937_p7 = pnand %p2936_p6, %p2930_p3 }
  0xb6   : > { %v1464_v28 = vadd.f32 %v1463_v23, %v1462_v25  ;;  %v1967_v23 = vmul.f32 %v3640_v0, %v3640_v0  ;;  %v1968_v25 = vmul.f32 %v3643_v1, %v3643_v1  ;;  %v1971_v0 = vmul.f32 %v3660_v9, %v3660_v9 }
  0xb7   : > { %v1972_v9 = vmul.f32 %v3665_v12, %v3665_v12 }
  0xb8   : > { %v1466_v31 = vadd.f32 %v1465_v26, %v1464_v28  ;;  %v1969_v26 = vmul.f32 %v3646_v2, %v3646_v2  ;;  %v3781_v28 = vld [vmem:[%s3637_s19 + $0xd8] sm:$0xff]  ;;  %v2223_v2 = vsel %vm1447_vm0, %v1967_v23, 0.0 }
  0xba   : > { %v1468_v34 = vadd.f32 %v1467_v29, %v1466_v31  ;;  %v1501_v31 = vsel %vm1447_vm0, %v3781_v28, 0.0 }
  0xbc   : > { %v1470_v37 = vadd.f32 %v1469_v32, %v1468_v34  ;;  %v1970_v32 = vmul.f32 %v3655_v6, %v3655_v6  ;;  %v3788_v34 = vld [vmem:[%s3637_s19 + $0xe0] sm:$0xff] }
  0xbd   : > { %v1503_v1 = vsel %vm1447_vm0, %v3788_v34, 0.0 }
  0xbe   : > { %v1472_v40 = vadd.f32 %v1471_v35, %v1470_v37  ;;  %v2224_v37 = vsel %vm1447_vm0, %v1968_v25, 0.0 }
  0xbf   : > { %v2225_v6 = vadd.f32 %v2224_v37, %v2223_v2  ;;  %v3854_v2 = vld [vmem:[%s3637_s19 + $0x120] sm:$0xff] }
  0xc0   : > { %v1474_v43 = vadd.f32 %v1473_v38, %v1472_v40  ;;  %v2226_v38 = vsel %vm1447_vm0, %v1969_v26, 0.0  ;;  %v3798_v40 = vld [vmem:[%s3637_s19 + $0xe8] sm:$0xff]  ;;  %v1977_v26 = vmul.f32 %v3690_v27, %v3690_v27  ;;  %v1519_v27 = vsel %vm1447_vm0, %v3854_v2, 0.0 }
  0xc2   : > { %v1476_v46 = vadd.f32 %v1475_v41, %v1474_v43  ;;  %v1505_v43 = vsel %vm1447_vm0, %v3798_v40, 0.0 }
  0xc4   : > { %v1478_v49 = vadd.f32 %v1477_v44, %v1476_v46  ;;  %v2228_v44 = vsel %vm1447_vm0, %v1970_v32, 0.0  ;;  %v3806_v46 = vld [vmem:[%s3637_s19 + $0xf0] sm:$0xff] }
  0xc6   : > { %v1480_v52 = vadd.f32 %v1479_v47, %v1478_v49  ;;  %v2227_v49 = vadd.f32 %v2226_v38, %v2225_v6  ;;  %v2242_v6 = vsel %vm1447_vm0, %v1977_v26, 0.0 }
  0xc8   : > { %v1482_v55 = vadd.f32 %v1481_v50, %v1480_v52  ;;  %v1507_v50 = vsel %vm1447_vm0, %v3806_v46, 0.0  ;;  %v1973_v52 = vmul.f32 %v3670_v15, %v3670_v15 }
  0xca   : > { %v1484_v58 = vadd.f32 %v1483_v53, %v1482_v55  ;;  %v2230_v53 = vsel %vm1447_vm0, %v1971_v0, 0.0  ;;  %v3814_v55 = vld [vmem:[%s3637_s19 + $0xf8] sm:$0xff]  ;;  %v1978_v0 = vmul.f32 %v3695_v30, %v3695_v30 }
  0xcb   : > { %v1509_v12 = vsel %vm1447_vm0, %v3814_v55, 0.0 }
  0xcc   : > { %v1486_v61 = vadd.f32 %v1485_v56, %v1484_v58  ;;  %v2229_v58 = vadd.f32 %v2228_v44, %v2227_v49  ;;  %v2244_v49 = vsel %vm1447_vm0, %v1978_v0, 0.0 }
  0xce   : > { %v1488_v3 = vadd.f32 %v1487_v59, %v1486_v61  ;;  %v1974_v59 = vmul.f32 %v3675_v18, %v3675_v18  ;;  %v2232_v61 = vsel %vm1447_vm0, %v1972_v9, 0.0 }
  0xd0   : > { %v1490_v7 = vadd.f32 %v1489_v62, %v1488_v3  ;;  %v3822_v62 = vld [vmem:[%s3637_s19 + $0x100] sm:$0xff] }
  0xd1   : > { %v1511_v15 = vsel %vm1447_vm0, %v3822_v62, 0.0 }
  0xd2   : > { %v1492_v11 = vadd.f32 %v1491_v4, %v1490_v7  ;;  %v2231_v4 = vadd.f32 %v2230_v53, %v2229_v58  ;;  %v1975_v7 = vmul.f32 %v3680_v21, %v3680_v21 }
  0xd4   : > { %v1494_v16 = vadd.f32 %v1493_v8, %v1492_v11  ;;  %v2234_v8 = vsel %vm1447_vm0, %v1973_v52, 0.0  ;;  %v3830_v11 = vld [vmem:[%s3637_s19 + $0x108] sm:$0xff] }
  0xd5   : > { %v1513_v18 = vsel %vm1447_vm0, %v3830_v11, 0.0 }
  0xd6   : > { %v1496_v20 = vadd.f32 %v1495_v13, %v1494_v16  ;;  %v2233_v16 = vadd.f32 %v2232_v61, %v2231_v4 }
  0xd8   : > { %v1498_v29 = vadd.f32 %v1497_v17, %v1496_v20  ;;  %v1976_v17 = vmul.f32 %v3685_v24, %v3685_v24  ;;  %v2236_v20 = vsel %vm1447_vm0, %v1974_v59, 0.0  ;;  %v2235_v25 = vadd.f32 %v2234_v8, %v2233_v16 }
  0xda   : > { %v1500_v35 = vadd.f32 %v1499_v22, %v1498_v29  ;;  %v3838_v22 = vld [vmem:[%s3637_s19 + $0x110] sm:$0xff]  ;;  %v2238_v29 = vsel %vm1447_vm0, %v1975_v7, 0.0 }
  0xdb   : > { %v1515_v21 = vsel %vm1447_vm0, %v3838_v22, 0.0 }
  0xdc   : > { %v1502_v41 = vadd.f32 %v1501_v31, %v1500_v35  ;;  %v3846_v31 = vld [vmem:[%s3637_s19 + $0x118] sm:$0xff]  ;;  %v2237_v35 = vadd.f32 %v2236_v20, %v2235_v25 }
  0xdd   : > { %v1517_v24 = vsel %vm1447_vm0, %v3846_v31, 0.0 }
  0xde   : > { %v1504_v47 = vadd.f32 %v1503_v1, %v1502_v41  ;;  %v2240_v1 = vsel %vm1447_vm0, %v1976_v17, 0.0  ;;  %v2239_v38 = vadd.f32 %v2238_v29, %v2237_v35  ;;  %v1979_v41 = vmul.f32 %v3700_v33, %v3700_v33 }
  0xe0   : > { %v1506_v56 = vadd.f32 %v1505_v43, %v1504_v47  ;;  %v3862_v43 = vld [vmem:[%s3637_s19 + $0x128] sm:$0xff]  ;;  %v2241_v44 = vadd.f32 %v2240_v1, %v2239_v38  ;;  %v1980_v47 = vmul.f32 %v3705_v36, %v3705_v36  ;;  %v2246_v58 = vsel %vm1447_vm0, %v1979_v41, 0.0 }
  0xe1   : > { %v1521_v30 = vsel %vm1447_vm0, %v3862_v43, 0.0 }
  0xe2   : > { %v1508_v3 = vadd.f32 %v1507_v50, %v1506_v56  ;;  %v3870_v50 = vld [vmem:[%s3637_s19 + $0x130] sm:$0xff]  ;;  %v2243_v53 = vadd.f32 %v2242_v6, %v2241_v44  ;;  %v1981_v56 = vmul.f32 %v3710_v39, %v3710_v39  ;;  %v2248_v4 = vsel %vm1447_vm0, %v1980_v47, 0.0 }
  0xe3   : > { %v1523_v33 = vsel %vm1447_vm0, %v3870_v50, 0.0 }
  0xe4   : > { %v1510_v13 = vadd.f32 %v1509_v12, %v1508_v3  ;;  %v3878_v12 = vld [vmem:[%s3637_s19 + $0x138] sm:$0xff]  ;;  %v2245_v61 = vadd.f32 %v2244_v49, %v2243_v53  ;;  %v1982_v3 = vmul.f32 %v3715_v42, %v3715_v42  ;;  %v2250_v16 = vsel %vm1447_vm0, %v1981_v56, 0.0 }
  0xe5   : > { %v1525_v36 = vsel %vm1447_vm0, %v3878_v12, 0.0 }
  0xe6   : > { %v1512_v23 = vadd.f32 %v1511_v15, %v1510_v13  ;;  %v3886_v15 = vld [vmem:[%s3637_s19 + $0x140] sm:$0xff]  ;;  %v2247_v8 = vadd.f32 %v2246_v58, %v2245_v61  ;;  %v1983_v13 = vmul.f32 %v3720_v45, %v3720_v45  ;;  %v2252_v25 = vsel %vm1447_vm0, %v1982_v3, 0.0 }
  0xe7   : > { %v1527_v39 = vsel %vm1447_vm0, %v3886_v15, 0.0 }
  0xe8   : > { %v1514_v32 = vadd.f32 %v1513_v18, %v1512_v23  ;;  %v3894_v18 = vld [vmem:[%s3637_s19 + $0x148] sm:$0xff]  ;;  %v2249_v20 = vadd.f32 %v2248_v4, %v2247_v8  ;;  %v1984_v23 = vmul.f32 %v3725_v48, %v3725_v48  ;;  %v2254_v35 = vsel %vm1447_vm0, %v1983_v13, 0.0 }
  0xe9   : > { %v1529_v42 = vsel %vm1447_vm0, %v3894_v18, 0.0 }
  0xea   : > { %v1516_v37 = vadd.f32 %v1515_v21, %v1514_v32  ;;  %v3902_v21 = vld [vmem:[%s3637_s19 + $0x150] sm:$0xff]  ;;  %v2251_v29 = vadd.f32 %v2250_v16, %v2249_v20  ;;  %v1985_v32 = vmul.f32 %v3730_v51, %v3730_v51  ;;  %v2256_v38 = vsel %vm1447_vm0, %v1984_v23, 0.0 }
  0xeb   : > { %v1531_v45 = vsel %vm1447_vm0, %v3902_v21, 0.0 }
  0xec   : > { %v1518_v9 = vadd.f32 %v1517_v24, %v1516_v37  ;;  %v3910_v24 = vld [vmem:[%s3637_s19 + $0x158] sm:$0xff]  ;;  %v2253_v1 = vadd.f32 %v2252_v25, %v2251_v29  ;;  %v1986_v37 = vmul.f32 %v3735_v54, %v3735_v54  ;;  %v2258_v44 = vsel %vm1447_vm0, %v1985_v32, 0.0 }
  0xed   : > { %v1533_v48 = vsel %vm1447_vm0, %v3910_v24, 0.0 }
  0xee   : > { %v1520_v52 = vadd.f32 %v1519_v27, %v1518_v9  ;;  %v3918_v27 = vld [vmem:[%s3637_s19 + $0x160] sm:$0xff]  ;;  %v2255_v6 = vadd.f32 %v2254_v35, %v2253_v1  ;;  %v1987_v9 = vmul.f32 %v3740_v57, %v3740_v57  ;;  %v2260_v53 = vsel %vm1447_vm0, %v1986_v37, 0.0 }
  0xef   : > { %v1535_v51 = vsel %vm1447_vm0, %v3918_v27, 0.0 }
  0xf0   : > { %v1522_v59 = vadd.f32 %v1521_v30, %v1520_v52  ;;  %v3926_v30 = vld [vmem:[%s3637_s19 + $0x168] sm:$0xff]  ;;  %v2257_v49 = vadd.f32 %v2256_v38, %v2255_v6  ;;  %v1988_v52 = vmul.f32 %v3745_v60, %v3745_v60  ;;  %v2262_v61 = vsel %vm1447_vm0, %v1987_v9, 0.0 }
  0xf1   : > { %v1537_v54 = vsel %vm1447_vm0, %v3926_v30, 0.0 }
  0xf2   : > { %v1524_v7 = vadd.f32 %v1523_v33, %v1522_v59  ;;  %v3934_v33 = vld [vmem:[%s3637_s19 + $0x170] sm:$0xff]  ;;  %v2259_v58 = vadd.f32 %v2258_v44, %v2257_v49  ;;  %v1989_v59 = vmul.f32 %v3750_v63, %v3750_v63  ;;  %v2264_v8 = vsel %vm1447_vm0, %v1988_v52, 0.0 }
  0xf3   : > { %v1539_v57 = vsel %vm1447_vm0, %v3934_v33, 0.0 }
  0xf4   : > { %v1526_v17 = vadd.f32 %v1525_v36, %v1524_v7  ;;  %v3942_v36 = vld [vmem:[%s3637_s19 + $0x178] sm:$0xff]  ;;  %v2261_v4 = vadd.f32 %v2260_v53, %v2259_v58  ;;  %v1990_v7 = vmul.f32 %v3755_v5, %v3755_v5  ;;  %v2266_v20 = vsel %vm1447_vm0, %v1989_v59, 0.0 }
  0xf5   : > { %v1541_v60 = vsel %vm1447_vm0, %v3942_v36, 0.0 }
  0xf6   : > { %v1528_v26 = vadd.f32 %v1527_v39, %v1526_v17  ;;  %v3950_v39 = vld [vmem:[%s3637_s19 + $0x180] sm:$0xff]  ;;  %v2263_v16 = vadd.f32 %v2262_v61, %v2261_v4  ;;  %v1991_v17 = vmul.f32 %v3760_v10, %v3760_v10  ;;  %v2268_v29 = vsel %vm1447_vm0, %v1990_v7, 0.0 }
  0xf7   : > { %v1543_v63 = vsel %vm1447_vm0, %v3950_v39, 0.0 }
  0xf8   : > { %v1530_v0 = vadd.f32 %v1529_v42, %v1528_v26  ;;  %v3958_v42 = vld [vmem:[%s3637_s19 + $0x188] sm:$0xff]  ;;  %v2265_v25 = vadd.f32 %v2264_v8, %v2263_v16  ;;  %v1992_v26 = vmul.f32 %v3765_v14, %v3765_v14  ;;  %v2270_v1 = vsel %vm1447_vm0, %v1991_v17, 0.0 }
  0xf9   : > { %v1545_v5 = vsel %vm1447_vm0, %v3958_v42, 0.0 }
  0xfa   : > { %v1532_v41 = vadd.f32 %v1531_v45, %v1530_v0  ;;  %v3966_v45 = vld [vmem:[%s3637_s19 + $0x190] sm:$0xff]  ;;  %v2267_v35 = vadd.f32 %v2266_v20, %v2265_v25  ;;  %v1993_v0 = vmul.f32 %v3770_v19, %v3770_v19  ;;  %v2272_v6 = vsel %vm1447_vm0, %v1992_v26, 0.0 }
  0xfb   : > { %v1547_v10 = vsel %vm1447_vm0, %v3966_v45, 0.0 }
  0xfc   : > { %v1534_v47 = vadd.f32 %v1533_v48, %v1532_v41  ;;  %v3974_v48 = vld [vmem:[%s3637_s19 + $0x198] sm:$0xff]  ;;  %v2269_v38 = vadd.f32 %v2268_v29, %v2267_v35  ;;  %v1994_v41 = vmul.f32 %v3781_v28, %v3781_v28  ;;  %v2274_v49 = vsel %vm1447_vm0, %v1993_v0, 0.0 }
  0xfd   : > { %v1549_v14 = vsel %vm1447_vm0, %v3974_v48, 0.0 }
  0xfe   : > { %v1536_v56 = vadd.f32 %v1535_v51, %v1534_v47  ;;  %v3982_v51 = vld [vmem:[%s3637_s19 + $0x1a0] sm:$0xff]  ;;  %v2271_v44 = vadd.f32 %v2270_v1, %v2269_v38  ;;  %v1995_v47 = vmul.f32 %v3788_v34, %v3788_v34  ;;  %v2276_v58 = vsel %vm1447_vm0, %v1994_v41, 0.0 }
  0xff   : > { %v1551_v19 = vsel %vm1447_vm0, %v3982_v51, 0.0 }
 0x100   : > { %v1538_v3 = vadd.f32 %v1537_v54, %v1536_v56  ;;  %v3990_v54 = vld [vmem:[%s3637_s19 + $0x1a8] sm:$0xff]  ;;  %v2273_v53 = vadd.f32 %v2272_v6, %v2271_v44  ;;  %v1996_v56 = vmul.f32 %v3798_v40, %v3798_v40  ;;  %v2278_v4 = vsel %vm1447_vm0, %v1995_v47, 0.0 }
 0x101   : > { %v1553_v28 = vsel %vm1447_vm0, %v3990_v54, 0.0 }
 0x102   : > { %v1540_v13 = vadd.f32 %v1539_v57, %v1538_v3  ;;  %v3998_v57 = vld [vmem:[%s3637_s19 + $0x1b0] sm:$0xff]  ;;  %v2275_v61 = vadd.f32 %v2274_v49, %v2273_v53  ;;  %v1997_v3 = vmul.f32 %v3806_v46, %v3806_v46  ;;  %v2280_v16 = vsel %vm1447_vm0, %v1996_v56, 0.0 }
 0x103   : > { %v1555_v34 = vsel %vm1447_vm0, %v3998_v57, 0.0 }
 0x104   : > { %v1542_v23 = vadd.f32 %v1541_v60, %v1540_v13  ;;  %v4006_v60 = vld [vmem:[%s3637_s19 + $0x1b8] sm:$0xff]  ;;  %v2277_v8 = vadd.f32 %v2276_v58, %v2275_v61  ;;  %v1998_v13 = vmul.f32 %v3814_v55, %v3814_v55  ;;  %v2282_v25 = vsel %vm1447_vm0, %v1997_v3, 0.0 }
 0x105   : > { %v1557_v40 = vsel %vm1447_vm0, %v4006_v60, 0.0 }
 0x106   : > { %v1544_v32 = vadd.f32 %v1543_v63, %v1542_v23  ;;  %v4014_v63 = vld [vmem:[%s3637_s19 + $0x1c0] sm:$0xff]  ;;  %v2279_v20 = vadd.f32 %v2278_v4, %v2277_v8  ;;  %v1999_v23 = vmul.f32 %v3822_v62, %v3822_v62  ;;  %v2284_v35 = vsel %vm1447_vm0, %v1998_v13, 0.0 }
 0x107   : > { %v1559_v46 = vsel %vm1447_vm0, %v4014_v63, 0.0 }
 0x108   : > { %v1546_v37 = vadd.f32 %v1545_v5, %v1544_v32  ;;  %v4022_v5 = vld [vmem:[%s3637_s19 + $0x1c8] sm:$0xff]  ;;  %v2281_v29 = vadd.f32 %v2280_v16, %v2279_v20  ;;  %v2000_v32 = vmul.f32 %v3830_v11, %v3830_v11  ;;  %v2286_v38 = vsel %vm1447_vm0, %v1999_v23, 0.0 }
 0x109   : > { %v1561_v55 = vsel %vm1447_vm0, %v4022_v5, 0.0 }
 0x10a   : > { %v1548_v9 = vadd.f32 %v1547_v10, %v1546_v37  ;;  %v4030_v10 = vld [vmem:[%s3637_s19 + $0x1d0] sm:$0xff]  ;;  %v2283_v1 = vadd.f32 %v2282_v25, %v2281_v29  ;;  %v2001_v37 = vmul.f32 %v3838_v22, %v3838_v22  ;;  %v2288_v44 = vsel %vm1447_vm0, %v2000_v32, 0.0 }
 0x10b   : > { %v1563_v62 = vsel %vm1447_vm0, %v4030_v10, 0.0 }
 0x10c   : > { %v1550_v52 = vadd.f32 %v1549_v14, %v1548_v9  ;;  %v4038_v14 = vld [vmem:[%s3637_s19 + $0x1d8] sm:$0xff]  ;;  %v2285_v6 = vadd.f32 %v2284_v35, %v2283_v1  ;;  %v2002_v9 = vmul.f32 %v3846_v31, %v3846_v31  ;;  %v2290_v53 = vsel %vm1447_vm0, %v2001_v37, 0.0 }
 0x10d   : > { %v1565_v11 = vsel %vm1447_vm0, %v4038_v14, 0.0 }
 0x10e   : > { %v1552_v59 = vadd.f32 %v1551_v19, %v1550_v52  ;;  %v4046_v19 = vld [vmem:[%s3637_s19 + $0x1e0] sm:$0xff]  ;;  %v2287_v49 = vadd.f32 %v2286_v38, %v2285_v6  ;;  %v2003_v52 = vmul.f32 %v3854_v2, %v3854_v2  ;;  %v2292_v61 = vsel %vm1447_vm0, %v2002_v9, 0.0 }
 0x10f   : > { %v1567_v22 = vsel %vm1447_vm0, %v4046_v19, 0.0 }
 0x110   : > { %v1554_v7 = vadd.f32 %v1553_v28, %v1552_v59  ;;  %v4054_v28 = vld [vmem:[%s3637_s19 + $0x1e8] sm:$0xff]  ;;  %v2289_v58 = vadd.f32 %v2288_v44, %v2287_v49  ;;  %v2004_v59 = vmul.f32 %v3862_v43, %v3862_v43  ;;  %v2294_v8 = vsel %vm1447_vm0, %v2003_v52, 0.0 }
 0x111   : > { %v1569_v31 = vsel %vm1447_vm0, %v4054_v28, 0.0 }
 0x112   : > { %v1556_v17 = vadd.f32 %v1555_v34, %v1554_v7  ;;  %v4062_v34 = vld [vmem:[%s3637_s19 + $0x1f0] sm:$0xff]  ;;  %v2291_v4 = vadd.f32 %v2290_v53, %v2289_v58  ;;  %v2005_v7 = vmul.f32 %v3870_v50, %v3870_v50  ;;  %v2296_v20 = vsel %vm1447_vm0, %v2004_v59, 0.0 }
 0x113   : > { %v1571_v2 = vsel %vm1447_vm0, %v4062_v34, 0.0 }
 0x114   : > { %v1558_v26 = vadd.f32 %v1557_v40, %v1556_v17  ;;  %v4070_v40 = vld [vmem:[%s3637_s19 + $0x1f8] sm:$0xff]  ;;  %v2293_v16 = vadd.f32 %v2292_v61, %v2291_v4  ;;  %v2006_v17 = vmul.f32 %v3878_v12, %v3878_v12  ;;  %v2298_v29 = vsel %vm1447_vm0, %v2005_v7, 0.0 }
 0x115   : > { %v1573_v43 = vsel %vm1447_vm0, %v4070_v40, 0.0 }
 0x116   : > { %v1560_v0 = vadd.f32 %v1559_v46, %v1558_v26  ;;  %v4078_v46 = vld [vmem:[%s3637_s19 + $0x200] sm:$0xff]  ;;  %v2295_v25 = vadd.f32 %v2294_v8, %v2293_v16  ;;  %v2007_v26 = vmul.f32 %v3886_v15, %v3886_v15  ;;  %v2300_v1 = vsel %vm1447_vm0, %v2006_v17, 0.0 }
 0x117   : > { %v1575_v50 = vsel %vm1447_vm0, %v4078_v46, 0.0 }
 0x118   : > { %v1562_v41 = vadd.f32 %v1561_v55, %v1560_v0  ;;  %v4086_v55 = vld [vmem:[%s3637_s19 + $0x208] sm:$0xff]  ;;  %v2297_v35 = vadd.f32 %v2296_v20, %v2295_v25  ;;  %v2008_v0 = vmul.f32 %v3894_v18, %v3894_v18  ;;  %v2302_v6 = vsel %vm1447_vm0, %v2007_v26, 0.0 }
 0x119   : > { %v1577_v12 = vsel %vm1447_vm0, %v4086_v55, 0.0 }
 0x11a   : > { %v1564_v47 = vadd.f32 %v1563_v62, %v1562_v41  ;;  %v4094_v62 = vld [vmem:[%s3637_s19 + $0x210] sm:$0xff]  ;;  %v2299_v38 = vadd.f32 %v2298_v29, %v2297_v35  ;;  %v2009_v41 = vmul.f32 %v3902_v21, %v3902_v21  ;;  %v2304_v49 = vsel %vm1447_vm0, %v2008_v0, 0.0 }
 0x11b   : > { %v1579_v15 = vsel %vm1447_vm0, %v4094_v62, 0.0 }
 0x11c   : > { %v1566_v56 = vadd.f32 %v1565_v11, %v1564_v47  ;;  %v4102_v11 = vld [vmem:[%s3637_s19 + $0x218] sm:$0xff]  ;;  %v2301_v44 = vadd.f32 %v2300_v1, %v2299_v38  ;;  %v2010_v47 = vmul.f32 %v3910_v24, %v3910_v24  ;;  %v2306_v58 = vsel %vm1447_vm0, %v2009_v41, 0.0 }
 0x11d   : > { %v1581_v18 = vsel %vm1447_vm0, %v4102_v11, 0.0 }
 0x11e   : > { %v1568_v3 = vadd.f32 %v1567_v22, %v1566_v56  ;;  %v4110_v22 = vld [vmem:[%s3637_s19 + $0x220] sm:$0xff]  ;;  %v2303_v53 = vadd.f32 %v2302_v6, %v2301_v44  ;;  %v2011_v56 = vmul.f32 %v3918_v27, %v3918_v27  ;;  %v2308_v4 = vsel %vm1447_vm0, %v2010_v47, 0.0 }
 0x11f   : > { %v1583_v21 = vsel %vm1447_vm0, %v4110_v22, 0.0 }
 0x120   : > { %v1570_v13 = vadd.f32 %v1569_v31, %v1568_v3  ;;  %v4118_v31 = vld [vmem:[%s3637_s19 + $0x228] sm:$0xff]  ;;  %v2305_v61 = vadd.f32 %v2304_v49, %v2303_v53  ;;  %v2012_v3 = vmul.f32 %v3926_v30, %v3926_v30  ;;  %v2310_v16 = vsel %vm1447_vm0, %v2011_v56, 0.0 }
 0x121   : > { %v1585_v24 = vsel %vm1447_vm0, %v4118_v31, 0.0 }
 0x122   : > { %v1572_v23 = vadd.f32 %v1571_v2, %v1570_v13  ;;  %v4126_v2 = vld [vmem:[%s3637_s19 + $0x230] sm:$0xff]  ;;  %v2307_v8 = vadd.f32 %v2306_v58, %v2305_v61  ;;  %v2013_v13 = vmul.f32 %v3934_v33, %v3934_v33  ;;  %v2312_v25 = vsel %vm1447_vm0, %v2012_v3, 0.0 }
 0x123   : > { %v1587_v27 = vsel %vm1447_vm0, %v4126_v2, 0.0 }
 0x124   : > { %v1574_v32 = vadd.f32 %v1573_v43, %v1572_v23  ;;  %v4134_v43 = vld [vmem:[%s3637_s19 + $0x238] sm:$0xff]  ;;  %v2309_v20 = vadd.f32 %v2308_v4, %v2307_v8  ;;  %v2014_v23 = vmul.f32 %v3942_v36, %v3942_v36  ;;  %v2314_v35 = vsel %vm1447_vm0, %v2013_v13, 0.0 }
 0x125   : > { %v1589_v30 = vsel %vm1447_vm0, %v4134_v43, 0.0 }
 0x126   : > { %v1576_v37 = vadd.f32 %v1575_v50, %v1574_v32  ;;  %v4142_v50 = vld [vmem:[%s3637_s19 + $0x240] sm:$0xff]  ;;  %v2311_v29 = vadd.f32 %v2310_v16, %v2309_v20  ;;  %v2015_v32 = vmul.f32 %v3950_v39, %v3950_v39  ;;  %v2316_v38 = vsel %vm1447_vm0, %v2014_v23, 0.0 }
 0x127   : > { %v1591_v33 = vsel %vm1447_vm0, %v4142_v50, 0.0 }
 0x128   : > { %v1578_v9 = vadd.f32 %v1577_v12, %v1576_v37  ;;  %v4150_v12 = vld [vmem:[%s3637_s19 + $0x248] sm:$0xff]  ;;  %v2313_v1 = vadd.f32 %v2312_v25, %v2311_v29  ;;  %v2016_v37 = vmul.f32 %v3958_v42, %v3958_v42  ;;  %v2318_v44 = vsel %vm1447_vm0, %v2015_v32, 0.0 }
 0x129   : > { %v1593_v36 = vsel %vm1447_vm0, %v4150_v12, 0.0 }
 0x12a   : > { %v1580_v52 = vadd.f32 %v1579_v15, %v1578_v9  ;;  %v4158_v15 = vld [vmem:[%s3637_s19 + $0x250] sm:$0xff]  ;;  %v2315_v6 = vadd.f32 %v2314_v35, %v2313_v1  ;;  %v2017_v9 = vmul.f32 %v3966_v45, %v3966_v45  ;;  %v2320_v53 = vsel %vm1447_vm0, %v2016_v37, 0.0 }
 0x12b   : > { %v1595_v39 = vsel %vm1447_vm0, %v4158_v15, 0.0 }
 0x12c   : > { %v1582_v59 = vadd.f32 %v1581_v18, %v1580_v52  ;;  %v4166_v18 = vld [vmem:[%s3637_s19 + $0x258] sm:$0xff]  ;;  %v2317_v49 = vadd.f32 %v2316_v38, %v2315_v6  ;;  %v2018_v52 = vmul.f32 %v3974_v48, %v3974_v48  ;;  %v2322_v61 = vsel %vm1447_vm0, %v2017_v9, 0.0 }
 0x12d   : > { %v1597_v42 = vsel %vm1447_vm0, %v4166_v18, 0.0 }
 0x12e   : > { %v1584_v7 = vadd.f32 %v1583_v21, %v1582_v59  ;;  %v4174_v21 = vld [vmem:[%s3637_s19 + $0x260] sm:$0xff]  ;;  %v2319_v58 = vadd.f32 %v2318_v44, %v2317_v49  ;;  %v2019_v59 = vmul.f32 %v3982_v51, %v3982_v51  ;;  %v2324_v8 = vsel %vm1447_vm0, %v2018_v52, 0.0 }
 0x12f   : > { %v1599_v45 = vsel %vm1447_vm0, %v4174_v21, 0.0 }
 0x130   : > { %v1586_v17 = vadd.f32 %v1585_v24, %v1584_v7  ;;  %v4182_v24 = vld [vmem:[%s3637_s19 + $0x268] sm:$0xff]  ;;  %v2321_v4 = vadd.f32 %v2320_v53, %v2319_v58  ;;  %v2020_v7 = vmul.f32 %v3990_v54, %v3990_v54  ;;  %v2326_v20 = vsel %vm1447_vm0, %v2019_v59, 0.0 }
 0x131   : > { %v1601_v48 = vsel %vm1447_vm0, %v4182_v24, 0.0 }
 0x132   : > { %v1588_v26 = vadd.f32 %v1587_v27, %v1586_v17  ;;  %v4190_v27 = vld [vmem:[%s3637_s19 + $0x270] sm:$0xff]  ;;  %v2323_v16 = vadd.f32 %v2322_v61, %v2321_v4  ;;  %v2021_v17 = vmul.f32 %v3998_v57, %v3998_v57  ;;  %v2328_v29 = vsel %vm1447_vm0, %v2020_v7, 0.0 }
 0x133   : > { %v1603_v51 = vsel %vm1447_vm0, %v4190_v27, 0.0 }
 0x134   : > { %v1590_v0 = vadd.f32 %v1589_v30, %v1588_v26  ;;  %v4198_v30 = vld [vmem:[%s3637_s19 + $0x278] sm:$0xff]  ;;  %v2325_v25 = vadd.f32 %v2324_v8, %v2323_v16  ;;  %v2022_v26 = vmul.f32 %v4006_v60, %v4006_v60  ;;  %v2330_v1 = vsel %vm1447_vm0, %v2021_v17, 0.0 }
 0x135   : > { %v1605_v54 = vsel %vm1447_vm0, %v4198_v30, 0.0 }
 0x136   : > { %v1592_v41 = vadd.f32 %v1591_v33, %v1590_v0  ;;  %v4206_v33 = vld [vmem:[%s3637_s19 + $0x280] sm:$0xff]  ;;  %v2327_v35 = vadd.f32 %v2326_v20, %v2325_v25  ;;  %v2023_v0 = vmul.f32 %v4014_v63, %v4014_v63  ;;  %v2332_v6 = vsel %vm1447_vm0, %v2022_v26, 0.0 }
 0x137   : > { %v1607_v57 = vsel %vm1447_vm0, %v4206_v33, 0.0 }
 0x138   : > { %v1594_v47 = vadd.f32 %v1593_v36, %v1592_v41  ;;  %v4214_v36 = vld [vmem:[%s3637_s19 + $0x288] sm:$0xff]  ;;  %v2329_v38 = vadd.f32 %v2328_v29, %v2327_v35  ;;  %v2024_v41 = vmul.f32 %v4022_v5, %v4022_v5  ;;  %v2334_v49 = vsel %vm1447_vm0, %v2023_v0, 0.0 }
 0x139   : > { %v1609_v60 = vsel %vm1447_vm0, %v4214_v36, 0.0 }
 0x13a   : > { %v1596_v56 = vadd.f32 %v1595_v39, %v1594_v47  ;;  %v4222_v39 = vld [vmem:[%s3637_s19 + $0x290] sm:$0xff]  ;;  %v2331_v44 = vadd.f32 %v2330_v1, %v2329_v38  ;;  %v2025_v47 = vmul.f32 %v4030_v10, %v4030_v10  ;;  %v2336_v58 = vsel %vm1447_vm0, %v2024_v41, 0.0 }
 0x13b   : > { %v1611_v63 = vsel %vm1447_vm0, %v4222_v39, 0.0 }
 0x13c   : > { %v1598_v3 = vadd.f32 %v1597_v42, %v1596_v56  ;;  %v4230_v42 = vld [vmem:[%s3637_s19 + $0x298] sm:$0xff]  ;;  %v2333_v53 = vadd.f32 %v2332_v6, %v2331_v44  ;;  %v2026_v56 = vmul.f32 %v4038_v14, %v4038_v14  ;;  %v2338_v4 = vsel %vm1447_vm0, %v2025_v47, 0.0 }
 0x13d   : > { %v1613_v5 = vsel %vm1447_vm0, %v4230_v42, 0.0 }
 0x13e   : > { %v1600_v13 = vadd.f32 %v1599_v45, %v1598_v3  ;;  %v4238_v45 = vld [vmem:[%s3637_s19 + $0x2a0] sm:$0xff]  ;;  %v2335_v61 = vadd.f32 %v2334_v49, %v2333_v53  ;;  %v2027_v3 = vmul.f32 %v4046_v19, %v4046_v19  ;;  %v2340_v16 = vsel %vm1447_vm0, %v2026_v56, 0.0 }
 0x13f   : > { %v1615_v10 = vsel %vm1447_vm0, %v4238_v45, 0.0 }
 0x140   : > { %v1602_v23 = vadd.f32 %v1601_v48, %v1600_v13  ;;  %v4246_v48 = vld [vmem:[%s3637_s19 + $0x2a8] sm:$0xff]  ;;  %v2337_v8 = vadd.f32 %v2336_v58, %v2335_v61  ;;  %v2028_v13 = vmul.f32 %v4054_v28, %v4054_v28  ;;  %v2342_v25 = vsel %vm1447_vm0, %v2027_v3, 0.0 }
 0x141   : > { %v1617_v14 = vsel %vm1447_vm0, %v4246_v48, 0.0 }
 0x142   : > { %v1604_v32 = vadd.f32 %v1603_v51, %v1602_v23  ;;  %v4254_v51 = vld [vmem:[%s3637_s19 + $0x2b0] sm:$0xff]  ;;  %v2339_v20 = vadd.f32 %v2338_v4, %v2337_v8  ;;  %v2029_v23 = vmul.f32 %v4062_v34, %v4062_v34  ;;  %v2344_v35 = vsel %vm1447_vm0, %v2028_v13, 0.0 }
 0x143   : > { %v1619_v19 = vsel %vm1447_vm0, %v4254_v51, 0.0 }
 0x144   : > { %v1606_v37 = vadd.f32 %v1605_v54, %v1604_v32  ;;  %v4262_v54 = vld [vmem:[%s3637_s19 + $0x2b8] sm:$0xff]  ;;  %v2341_v29 = vadd.f32 %v2340_v16, %v2339_v20  ;;  %v2030_v32 = vmul.f32 %v4070_v40, %v4070_v40  ;;  %v2346_v38 = vsel %vm1447_vm0, %v2029_v23, 0.0 }
 0x145   : > { %v1621_v28 = vsel %vm1447_vm0, %v4262_v54, 0.0 }
 0x146   : > { %v1608_v9 = vadd.f32 %v1607_v57, %v1606_v37  ;;  %v4270_v57 = vld [vmem:[%s3637_s19 + $0x2c0] sm:$0xff]  ;;  %v2343_v1 = vadd.f32 %v2342_v25, %v2341_v29  ;;  %v2031_v37 = vmul.f32 %v4078_v46, %v4078_v46  ;;  %v2348_v44 = vsel %vm1447_vm0, %v2030_v32, 0.0 }
 0x147   : > { %v1623_v34 = vsel %vm1447_vm0, %v4270_v57, 0.0 }
 0x148   : > { %v1610_v52 = vadd.f32 %v1609_v60, %v1608_v9  ;;  %v4278_v60 = vld [vmem:[%s3637_s19 + $0x2c8] sm:$0xff]  ;;  %v2345_v6 = vadd.f32 %v2344_v35, %v2343_v1  ;;  %v2032_v9 = vmul.f32 %v4086_v55, %v4086_v55  ;;  %v2350_v53 = vsel %vm1447_vm0, %v2031_v37, 0.0 }
 0x149   : > { %v1625_v40 = vsel %vm1447_vm0, %v4278_v60, 0.0 }
 0x14a   : > { %v1612_v59 = vadd.f32 %v1611_v63, %v1610_v52  ;;  %v4286_v63 = vld [vmem:[%s3637_s19 + $0x2d0] sm:$0xff]  ;;  %v2347_v49 = vadd.f32 %v2346_v38, %v2345_v6  ;;  %v2033_v52 = vmul.f32 %v4094_v62, %v4094_v62  ;;  %v2352_v61 = vsel %vm1447_vm0, %v2032_v9, 0.0 }
 0x14b   : > { %v1627_v46 = vsel %vm1447_vm0, %v4286_v63, 0.0 }
 0x14c   : > { %v1614_v7 = vadd.f32 %v1613_v5, %v1612_v59  ;;  %v4294_v5 = vld [vmem:[%s3637_s19 + $0x2d8] sm:$0xff]  ;;  %v2349_v58 = vadd.f32 %v2348_v44, %v2347_v49  ;;  %v2034_v59 = vmul.f32 %v4102_v11, %v4102_v11  ;;  %v2354_v8 = vsel %vm1447_vm0, %v2033_v52, 0.0 }
 0x14d   : > { %v1629_v55 = vsel %vm1447_vm0, %v4294_v5, 0.0 }
 0x14e   : > { %v1616_v17 = vadd.f32 %v1615_v10, %v1614_v7  ;;  %v4302_v10 = vld [vmem:[%s3637_s19 + $0x2e0] sm:$0xff]  ;;  %v2351_v4 = vadd.f32 %v2350_v53, %v2349_v58  ;;  %v2035_v7 = vmul.f32 %v4110_v22, %v4110_v22  ;;  %v2356_v20 = vsel %vm1447_vm0, %v2034_v59, 0.0 }
 0x14f   : > { %v1631_v62 = vsel %vm1447_vm0, %v4302_v10, 0.0 }
 0x150   : > { %v1618_v26 = vadd.f32 %v1617_v14, %v1616_v17  ;;  %v4310_v14 = vld [vmem:[%s3637_s19 + $0x2e8] sm:$0xff]  ;;  %v2353_v16 = vadd.f32 %v2352_v61, %v2351_v4  ;;  %v2036_v17 = vmul.f32 %v4118_v31, %v4118_v31  ;;  %v2358_v29 = vsel %vm1447_vm0, %v2035_v7, 0.0 }
 0x151   : > { %v1633_v11 = vsel %vm1447_vm0, %v4310_v14, 0.0 }
 0x152   : > { %v1620_v0 = vadd.f32 %v1619_v19, %v1618_v26  ;;  %v4318_v19 = vld [vmem:[%s3637_s19 + $0x2f0] sm:$0xff]  ;;  %v2355_v25 = vadd.f32 %v2354_v8, %v2353_v16  ;;  %v2037_v26 = vmul.f32 %v4126_v2, %v4126_v2  ;;  %v2360_v1 = vsel %vm1447_vm0, %v2036_v17, 0.0 }
 0x153   : > { %v1635_v22 = vsel %vm1447_vm0, %v4318_v19, 0.0 }
 0x154   : > { %v1622_v41 = vadd.f32 %v1621_v28, %v1620_v0  ;;  %v4326_v28 = vld [vmem:[%s3637_s19 + $0x2f8] sm:$0xff]  ;;  %v2357_v35 = vadd.f32 %v2356_v20, %v2355_v25  ;;  %v2038_v0 = vmul.f32 %v4134_v43, %v4134_v43  ;;  %v2362_v6 = vsel %vm1447_vm0, %v2037_v26, 0.0 }
 0x155   : > { %v1637_v31 = vsel %vm1447_vm0, %v4326_v28, 0.0 }
 0x156   : > { %v1624_v47 = vadd.f32 %v1623_v34, %v1622_v41  ;;  %v4334_v34 = vld [vmem:[%s3637_s19 + $0x300] sm:$0xff]  ;;  %v2359_v38 = vadd.f32 %v2358_v29, %v2357_v35  ;;  %v2039_v41 = vmul.f32 %v4142_v50, %v4142_v50  ;;  %v2364_v49 = vsel %vm1447_vm0, %v2038_v0, 0.0 }
 0x157   : > { %v1639_v2 = vsel %vm1447_vm0, %v4334_v34, 0.0 }
 0x158   : > { %v1626_v56 = vadd.f32 %v1625_v40, %v1624_v47  ;;  %v4342_v40 = vld [vmem:[%s3637_s19 + $0x308] sm:$0xff]  ;;  %v2361_v44 = vadd.f32 %v2360_v1, %v2359_v38  ;;  %v2040_v47 = vmul.f32 %v4150_v12, %v4150_v12  ;;  %v2366_v58 = vsel %vm1447_vm0, %v2039_v41, 0.0 }
 0x159   : > { %v1641_v43 = vsel %vm1447_vm0, %v4342_v40, 0.0 }
 0x15a   : > { %v1628_v3 = vadd.f32 %v1627_v46, %v1626_v56  ;;  %v4350_v46 = vld [vmem:[%s3637_s19 + $0x310] sm:$0xff]  ;;  %v2363_v53 = vadd.f32 %v2362_v6, %v2361_v44  ;;  %v2041_v56 = vmul.f32 %v4158_v15, %v4158_v15  ;;  %v2368_v4 = vsel %vm1447_vm0, %v2040_v47, 0.0 }
 0x15b   : > { %v1643_v50 = vsel %vm1447_vm0, %v4350_v46, 0.0 }
 0x15c   : > { %v1630_v13 = vadd.f32 %v1629_v55, %v1628_v3  ;;  %v4358_v55 = vld [vmem:[%s3637_s19 + $0x318] sm:$0xff]  ;;  %v2365_v61 = vadd.f32 %v2364_v49, %v2363_v53  ;;  %v2042_v3 = vmul.f32 %v4166_v18, %v4166_v18  ;;  %v2370_v16 = vsel %vm1447_vm0, %v2041_v56, 0.0 }
 0x15d   : > { %v1645_v12 = vsel %vm1447_vm0, %v4358_v55, 0.0 }
 0x15e   : > { %v1632_v23 = vadd.f32 %v1631_v62, %v1630_v13  ;;  %v4366_v62 = vld [vmem:[%s3637_s19 + $0x320] sm:$0xff]  ;;  %v2367_v8 = vadd.f32 %v2366_v58, %v2365_v61  ;;  %v2043_v13 = vmul.f32 %v4174_v21, %v4174_v21  ;;  %v2372_v25 = vsel %vm1447_vm0, %v2042_v3, 0.0 }
 0x15f   : > { %v1647_v15 = vsel %vm1447_vm0, %v4366_v62, 0.0 }
 0x160   : > { %v1634_v32 = vadd.f32 %v1633_v11, %v1632_v23  ;;  %v4374_v11 = vld [vmem:[%s3637_s19 + $0x328] sm:$0xff]  ;;  %v2369_v20 = vadd.f32 %v2368_v4, %v2367_v8  ;;  %v2044_v23 = vmul.f32 %v4182_v24, %v4182_v24  ;;  %v2374_v35 = vsel %vm1447_vm0, %v2043_v13, 0.0 }
 0x161   : > { %v1649_v18 = vsel %vm1447_vm0, %v4374_v11, 0.0 }
 0x162   : > { %v1636_v37 = vadd.f32 %v1635_v22, %v1634_v32  ;;  %v4382_v22 = vld [vmem:[%s3637_s19 + $0x330] sm:$0xff]  ;;  %v2371_v29 = vadd.f32 %v2370_v16, %v2369_v20  ;;  %v2045_v32 = vmul.f32 %v4190_v27, %v4190_v27  ;;  %v2376_v38 = vsel %vm1447_vm0, %v2044_v23, 0.0 }
 0x163   : > { %v1651_v21 = vsel %vm1447_vm0, %v4382_v22, 0.0 }
 0x164   : > { %v1638_v9 = vadd.f32 %v1637_v31, %v1636_v37  ;;  %v4390_v31 = vld [vmem:[%s3637_s19 + $0x338] sm:$0xff]  ;;  %v2373_v1 = vadd.f32 %v2372_v25, %v2371_v29  ;;  %v2046_v37 = vmul.f32 %v4198_v30, %v4198_v30  ;;  %v2378_v44 = vsel %vm1447_vm0, %v2045_v32, 0.0 }
 0x165   : > { %v1653_v24 = vsel %vm1447_vm0, %v4390_v31, 0.0 }
 0x166   : > { %v1640_v52 = vadd.f32 %v1639_v2, %v1638_v9  ;;  %v4398_v2 = vld [vmem:[%s3637_s19 + $0x340] sm:$0xff]  ;;  %v2375_v6 = vadd.f32 %v2374_v35, %v2373_v1  ;;  %v2047_v9 = vmul.f32 %v4206_v33, %v4206_v33  ;;  %v2380_v53 = vsel %vm1447_vm0, %v2046_v37, 0.0 }
 0x167   : > { %v1655_v27 = vsel %vm1447_vm0, %v4398_v2, 0.0 }
 0x168   : > { %v1642_v59 = vadd.f32 %v1641_v43, %v1640_v52  ;;  %v4406_v43 = vld [vmem:[%s3637_s19 + $0x348] sm:$0xff]  ;;  %v2377_v49 = vadd.f32 %v2376_v38, %v2375_v6  ;;  %v2048_v52 = vmul.f32 %v4214_v36, %v4214_v36  ;;  %v2382_v61 = vsel %vm1447_vm0, %v2047_v9, 0.0 }
 0x169   : > { %v1657_v30 = vsel %vm1447_vm0, %v4406_v43, 0.0 }
 0x16a   : > { %v1644_v7 = vadd.f32 %v1643_v50, %v1642_v59  ;;  %v4414_v50 = vld [vmem:[%s3637_s19 + $0x350] sm:$0xff]  ;;  %v2379_v58 = vadd.f32 %v2378_v44, %v2377_v49  ;;  %v2049_v59 = vmul.f32 %v4222_v39, %v4222_v39  ;;  %v2384_v8 = vsel %vm1447_vm0, %v2048_v52, 0.0 }
 0x16b   : > { %v1659_v33 = vsel %vm1447_vm0, %v4414_v50, 0.0 }
 0x16c   : > { %v1646_v17 = vadd.f32 %v1645_v12, %v1644_v7  ;;  %v4422_v12 = vld [vmem:[%s3637_s19 + $0x358] sm:$0xff]  ;;  %v2381_v4 = vadd.f32 %v2380_v53, %v2379_v58  ;;  %v2050_v7 = vmul.f32 %v4230_v42, %v4230_v42  ;;  %v2386_v20 = vsel %vm1447_vm0, %v2049_v59, 0.0 }
 0x16d   : > { %v1661_v36 = vsel %vm1447_vm0, %v4422_v12, 0.0 }
 0x16e   : > { %v1648_v26 = vadd.f32 %v1647_v15, %v1646_v17  ;;  %v4430_v15 = vld [vmem:[%s3637_s19 + $0x360] sm:$0xff]  ;;  %v2383_v16 = vadd.f32 %v2382_v61, %v2381_v4  ;;  %v2051_v17 = vmul.f32 %v4238_v45, %v4238_v45  ;;  %v2388_v29 = vsel %vm1447_vm0, %v2050_v7, 0.0 }
 0x16f   : > { %v1663_v39 = vsel %vm1447_vm0, %v4430_v15, 0.0 }
 0x170   : > { %v1650_v0 = vadd.f32 %v1649_v18, %v1648_v26  ;;  %v4438_v18 = vld [vmem:[%s3637_s19 + $0x368] sm:$0xff]  ;;  %v2385_v25 = vadd.f32 %v2384_v8, %v2383_v16  ;;  %v2052_v26 = vmul.f32 %v4246_v48, %v4246_v48  ;;  %v2390_v1 = vsel %vm1447_vm0, %v2051_v17, 0.0 }
 0x171   : > { %v1665_v42 = vsel %vm1447_vm0, %v4438_v18, 0.0 }
 0x172   : > { %v1652_v41 = vadd.f32 %v1651_v21, %v1650_v0  ;;  %v4446_v21 = vld [vmem:[%s3637_s19 + $0x370] sm:$0xff]  ;;  %v2387_v35 = vadd.f32 %v2386_v20, %v2385_v25  ;;  %v2053_v0 = vmul.f32 %v4254_v51, %v4254_v51  ;;  %v2392_v6 = vsel %vm1447_vm0, %v2052_v26, 0.0 }
 0x173   : > { %v1667_v45 = vsel %vm1447_vm0, %v4446_v21, 0.0 }
 0x174   : > { %v1654_v47 = vadd.f32 %v1653_v24, %v1652_v41  ;;  %v4454_v24 = vld [vmem:[%s3637_s19 + $0x378] sm:$0xff]  ;;  %v2389_v38 = vadd.f32 %v2388_v29, %v2387_v35  ;;  %v2054_v41 = vmul.f32 %v4262_v54, %v4262_v54  ;;  %v2394_v49 = vsel %vm1447_vm0, %v2053_v0, 0.0 }
 0x175   : > { %v1669_v48 = vsel %vm1447_vm0, %v4454_v24, 0.0 }
 0x176   : > { %v1656_v56 = vadd.f32 %v1655_v27, %v1654_v47  ;;  %v4462_v27 = vld [vmem:[%s3637_s19 + $0x380] sm:$0xff]  ;;  %v2391_v44 = vadd.f32 %v2390_v1, %v2389_v38  ;;  %v2055_v47 = vmul.f32 %v4270_v57, %v4270_v57  ;;  %v2396_v58 = vsel %vm1447_vm0, %v2054_v41, 0.0 }
 0x177   : > { %v1671_v51 = vsel %vm1447_vm0, %v4462_v27, 0.0 }
 0x178   : > { %v1658_v3 = vadd.f32 %v1657_v30, %v1656_v56  ;;  %v4470_v30 = vld [vmem:[%s3637_s19 + $0x388] sm:$0xff]  ;;  %v2393_v53 = vadd.f32 %v2392_v6, %v2391_v44  ;;  %v2056_v56 = vmul.f32 %v4278_v60, %v4278_v60  ;;  %v2398_v4 = vsel %vm1447_vm0, %v2055_v47, 0.0 }
 0x179   : > { %v1673_v54 = vsel %vm1447_vm0, %v4470_v30, 0.0 }
 0x17a   : > { %v1660_v13 = vadd.f32 %v1659_v33, %v1658_v3  ;;  %v4478_v33 = vld [vmem:[%s3637_s19 + $0x390] sm:$0xff]  ;;  %v2395_v61 = vadd.f32 %v2394_v49, %v2393_v53  ;;  %v2057_v3 = vmul.f32 %v4286_v63, %v4286_v63  ;;  %v2400_v16 = vsel %vm1447_vm0, %v2056_v56, 0.0 }
 0x17b   : > { %v1675_v57 = vsel %vm1447_vm0, %v4478_v33, 0.0 }
 0x17c   : > { %v1662_v23 = vadd.f32 %v1661_v36, %v1660_v13  ;;  %v4486_v36 = vld [vmem:[%s3637_s19 + $0x398] sm:$0xff]  ;;  %v2397_v8 = vadd.f32 %v2396_v58, %v2395_v61  ;;  %v2058_v13 = vmul.f32 %v4294_v5, %v4294_v5  ;;  %v2402_v25 = vsel %vm1447_vm0, %v2057_v3, 0.0 }
 0x17d   : > { %v1677_v60 = vsel %vm1447_vm0, %v4486_v36, 0.0 }
 0x17e   : > { %v1664_v32 = vadd.f32 %v1663_v39, %v1662_v23  ;;  %v4494_v39 = vld [vmem:[%s3637_s19 + $0x3a0] sm:$0xff]  ;;  %v2399_v20 = vadd.f32 %v2398_v4, %v2397_v8  ;;  %v2059_v23 = vmul.f32 %v4302_v10, %v4302_v10  ;;  %v2404_v35 = vsel %vm1447_vm0, %v2058_v13, 0.0 }
 0x17f   : > { %v1679_v63 = vsel %vm1447_vm0, %v4494_v39, 0.0 }
 0x180   : > { %v1666_v37 = vadd.f32 %v1665_v42, %v1664_v32  ;;  %v4502_v42 = vld [vmem:[%s3637_s19 + $0x3a8] sm:$0xff]  ;;  %v2401_v29 = vadd.f32 %v2400_v16, %v2399_v20  ;;  %v2060_v32 = vmul.f32 %v4310_v14, %v4310_v14  ;;  %v2406_v38 = vsel %vm1447_vm0, %v2059_v23, 0.0 }
 0x181   : > { %v1681_v5 = vsel %vm1447_vm0, %v4502_v42, 0.0 }
 0x182   : > { %v1668_v9 = vadd.f32 %v1667_v45, %v1666_v37  ;;  %v4510_v45 = vld [vmem:[%s3637_s19 + $0x3b0] sm:$0xff]  ;;  %v2403_v1 = vadd.f32 %v2402_v25, %v2401_v29  ;;  %v2061_v37 = vmul.f32 %v4318_v19, %v4318_v19  ;;  %v2408_v44 = vsel %vm1447_vm0, %v2060_v32, 0.0 }
 0x183   : > { %v1683_v10 = vsel %vm1447_vm0, %v4510_v45, 0.0 }
 0x184   : > { %v1670_v52 = vadd.f32 %v1669_v48, %v1668_v9  ;;  %v4518_v48 = vld [vmem:[%s3637_s19 + $0x3b8] sm:$0xff]  ;;  %v2405_v6 = vadd.f32 %v2404_v35, %v2403_v1  ;;  %v2062_v9 = vmul.f32 %v4326_v28, %v4326_v28  ;;  %v2410_v53 = vsel %vm1447_vm0, %v2061_v37, 0.0 }
 0x185   : > { %v1685_v14 = vsel %vm1447_vm0, %v4518_v48, 0.0 }
 0x186   : > { %v1672_v59 = vadd.f32 %v1671_v51, %v1670_v52  ;;  %v4526_v51 = vld [vmem:[%s3637_s19 + $0x3c0] sm:$0xff]  ;;  %v2407_v49 = vadd.f32 %v2406_v38, %v2405_v6  ;;  %v2063_v52 = vmul.f32 %v4334_v34, %v4334_v34  ;;  %v2412_v61 = vsel %vm1447_vm0, %v2062_v9, 0.0 }
 0x187   : > { %v1687_v19 = vsel %vm1447_vm0, %v4526_v51, 0.0 }
 0x188   : > { %v1674_v7 = vadd.f32 %v1673_v54, %v1672_v59  ;;  %v4534_v54 = vld [vmem:[%s3637_s19 + $0x3c8] sm:$0xff]  ;;  %v2409_v58 = vadd.f32 %v2408_v44, %v2407_v49  ;;  %v2064_v59 = vmul.f32 %v4342_v40, %v4342_v40  ;;  %v2414_v8 = vsel %vm1447_vm0, %v2063_v52, 0.0 }
 0x189   : > { %v1689_v28 = vsel %vm1447_vm0, %v4534_v54, 0.0 }
 0x18a   : > { %v1676_v17 = vadd.f32 %v1675_v57, %v1674_v7  ;;  %v4542_v57 = vld [vmem:[%s3637_s19 + $0x3d0] sm:$0xff]  ;;  %v2411_v4 = vadd.f32 %v2410_v53, %v2409_v58  ;;  %v2065_v7 = vmul.f32 %v4350_v46, %v4350_v46  ;;  %v2416_v20 = vsel %vm1447_vm0, %v2064_v59, 0.0 }
 0x18b   : > { %v1691_v34 = vsel %vm1447_vm0, %v4542_v57, 0.0 }
 0x18c   : > { %v1678_v26 = vadd.f32 %v1677_v60, %v1676_v17  ;;  %v4550_v60 = vld [vmem:[%s3637_s19 + $0x3d8] sm:$0xff]  ;;  %v2413_v16 = vadd.f32 %v2412_v61, %v2411_v4  ;;  %v2066_v17 = vmul.f32 %v4358_v55, %v4358_v55  ;;  %v2418_v29 = vsel %vm1447_vm0, %v2065_v7, 0.0 }
 0x18d   : > { %v1693_v40 = vsel %vm1447_vm0, %v4550_v60, 0.0 }
 0x18e   : > { %v1680_v0 = vadd.f32 %v1679_v63, %v1678_v26  ;;  %v4558_v63 = vld [vmem:[%s3637_s19 + $0x3e0] sm:$0xff]  ;;  %v2415_v25 = vadd.f32 %v2414_v8, %v2413_v16  ;;  %v2067_v26 = vmul.f32 %v4366_v62, %v4366_v62  ;;  %v2420_v1 = vsel %vm1447_vm0, %v2066_v17, 0.0 }
 0x18f   : > { %v1695_v46 = vsel %vm1447_vm0, %v4558_v63, 0.0 }
 0x190   : > { %v1682_v41 = vadd.f32 %v1681_v5, %v1680_v0  ;;  %v4566_v5 = vld [vmem:[%s3637_s19 + $0x3e8] sm:$0xff]  ;;  %v2417_v35 = vadd.f32 %v2416_v20, %v2415_v25  ;;  %v2068_v0 = vmul.f32 %v4374_v11, %v4374_v11  ;;  %v2422_v6 = vsel %vm1447_vm0, %v2067_v26, 0.0 }
 0x191   : > { %v1697_v55 = vsel %vm1447_vm0, %v4566_v5, 0.0 }
 0x192   : > { %v1684_v47 = vadd.f32 %v1683_v10, %v1682_v41  ;;  %v4574_v10 = vld [vmem:[%s3637_s19 + $0x3f0] sm:$0xff]  ;;  %v2419_v38 = vadd.f32 %v2418_v29, %v2417_v35  ;;  %v2069_v41 = vmul.f32 %v4382_v22, %v4382_v22  ;;  %v2424_v49 = vsel %vm1447_vm0, %v2068_v0, 0.0 }
 0x193   : > { %v1699_v62 = vsel %vm1447_vm0, %v4574_v10, 0.0 }
 0x194   : > { %v1686_v56 = vadd.f32 %v1685_v14, %v1684_v47  ;;  %v4582_v14 = vld [vmem:[%s3637_s19 + $0x3f8] sm:$0xff]  ;;  %v2421_v44 = vadd.f32 %v2420_v1, %v2419_v38  ;;  %v2070_v47 = vmul.f32 %v4390_v31, %v4390_v31  ;;  %v2426_v58 = vsel %vm1447_vm0, %v2069_v41, 0.0 }
 0x195   : > { %v1701_v11 = vsel %vm1447_vm0, %v4582_v14, 0.0 }
 0x196   : > { %v1688_v3 = vadd.f32 %v1687_v19, %v1686_v56  ;;  %v4590_v19 = vld [vmem:[%s3637_s19 + $0x400] sm:$0xff]  ;;  %v2423_v53 = vadd.f32 %v2422_v6, %v2421_v44  ;;  %v2071_v56 = vmul.f32 %v4398_v2, %v4398_v2  ;;  %v2428_v4 = vsel %vm1447_vm0, %v2070_v47, 0.0 }
 0x197   : > { %v1703_v22 = vsel %vm1447_vm0, %v4590_v19, 0.0 }
 0x198   : > { %v1690_v13 = vadd.f32 %v1689_v28, %v1688_v3  ;;  %v4598_v28 = vld [vmem:[%s3637_s19 + $0x408] sm:$0xff]  ;;  %v2425_v61 = vadd.f32 %v2424_v49, %v2423_v53  ;;  %v2072_v3 = vmul.f32 %v4406_v43, %v4406_v43  ;;  %v2430_v16 = vsel %vm1447_vm0, %v2071_v56, 0.0 }
 0x199   : > { %v1705_v31 = vsel %vm1447_vm0, %v4598_v28, 0.0 }
 0x19a   : > { %v1692_v23 = vadd.f32 %v1691_v34, %v1690_v13  ;;  %v4606_v34 = vld [vmem:[%s3637_s19 + $0x410] sm:$0xff]  ;;  %v2427_v8 = vadd.f32 %v2426_v58, %v2425_v61  ;;  %v2073_v13 = vmul.f32 %v4414_v50, %v4414_v50  ;;  %v2432_v25 = vsel %vm1447_vm0, %v2072_v3, 0.0 }
 0x19b   : > { %v1707_v2 = vsel %vm1447_vm0, %v4606_v34, 0.0 }
 0x19c   : > { %v1694_v32 = vadd.f32 %v1693_v40, %v1692_v23  ;;  %v4614_v40 = vld [vmem:[%s3637_s19 + $0x418] sm:$0xff]  ;;  %v2429_v20 = vadd.f32 %v2428_v4, %v2427_v8  ;;  %v2074_v23 = vmul.f32 %v4422_v12, %v4422_v12  ;;  %v2434_v35 = vsel %vm1447_vm0, %v2073_v13, 0.0 }
 0x19d   : > { %v1709_v43 = vsel %vm1447_vm0, %v4614_v40, 0.0 }
 0x19e   : > { %v1696_v37 = vadd.f32 %v1695_v46, %v1694_v32  ;;  %v4622_v46 = vld [vmem:[%s3637_s19 + $0x420] sm:$0xff]  ;;  %v2431_v29 = vadd.f32 %v2430_v16, %v2429_v20  ;;  %v2075_v32 = vmul.f32 %v4430_v15, %v4430_v15  ;;  %v2436_v38 = vsel %vm1447_vm0, %v2074_v23, 0.0 }
 0x19f   : > { %v1711_v50 = vsel %vm1447_vm0, %v4622_v46, 0.0 }
 0x1a0   : > { %v1698_v9 = vadd.f32 %v1697_v55, %v1696_v37  ;;  %v4630_v55 = vld [vmem:[%s3637_s19 + $0x428] sm:$0xff]  ;;  %v2433_v1 = vadd.f32 %v2432_v25, %v2431_v29  ;;  %v2076_v37 = vmul.f32 %v4438_v18, %v4438_v18  ;;  %v2438_v44 = vsel %vm1447_vm0, %v2075_v32, 0.0 }
 0x1a1   : > { %v1713_v12 = vsel %vm1447_vm0, %v4630_v55, 0.0 }
 0x1a2   : > { %v1700_v52 = vadd.f32 %v1699_v62, %v1698_v9  ;;  %v4638_v62 = vld [vmem:[%s3637_s19 + $0x430] sm:$0xff]  ;;  %v2435_v6 = vadd.f32 %v2434_v35, %v2433_v1  ;;  %v2077_v9 = vmul.f32 %v4446_v21, %v4446_v21  ;;  %v2440_v53 = vsel %vm1447_vm0, %v2076_v37, 0.0 }
 0x1a3   : > { %v1715_v15 = vsel %vm1447_vm0, %v4638_v62, 0.0 }
 0x1a4   : > { %v1702_v59 = vadd.f32 %v1701_v11, %v1700_v52  ;;  %v4646_v11 = vld [vmem:[%s3637_s19 + $0x438] sm:$0xff]  ;;  %v2437_v49 = vadd.f32 %v2436_v38, %v2435_v6  ;;  %v2078_v52 = vmul.f32 %v4454_v24, %v4454_v24  ;;  %v2442_v61 = vsel %vm1447_vm0, %v2077_v9, 0.0 }
 0x1a5   : > { %v1717_v18 = vsel %vm1447_vm0, %v4646_v11, 0.0 }
 0x1a6   : > { %v1704_v7 = vadd.f32 %v1703_v22, %v1702_v59  ;;  %v4654_v22 = vld [vmem:[%s3637_s19 + $0x440] sm:$0xff]  ;;  %v2439_v58 = vadd.f32 %v2438_v44, %v2437_v49  ;;  %v2079_v59 = vmul.f32 %v4462_v27, %v4462_v27  ;;  %v2444_v8 = vsel %vm1447_vm0, %v2078_v52, 0.0 }
 0x1a7   : > { %v1719_v21 = vsel %vm1447_vm0, %v4654_v22, 0.0 }
 0x1a8   : > { %v1706_v17 = vadd.f32 %v1705_v31, %v1704_v7  ;;  %v4662_v31 = vld [vmem:[%s3637_s19 + $0x448] sm:$0xff]  ;;  %v2441_v4 = vadd.f32 %v2440_v53, %v2439_v58  ;;  %v2080_v7 = vmul.f32 %v4470_v30, %v4470_v30  ;;  %v2446_v20 = vsel %vm1447_vm0, %v2079_v59, 0.0 }
 0x1a9   : > { %v1721_v24 = vsel %vm1447_vm0, %v4662_v31, 0.0 }
 0x1aa   : > { %v1708_v26 = vadd.f32 %v1707_v2, %v1706_v17  ;;  %v4670_v2 = vld [vmem:[%s3637_s19 + $0x450] sm:$0xff]  ;;  %v2443_v16 = vadd.f32 %v2442_v61, %v2441_v4  ;;  %v2081_v17 = vmul.f32 %v4478_v33, %v4478_v33  ;;  %v2448_v29 = vsel %vm1447_vm0, %v2080_v7, 0.0 }
 0x1ab   : > { %v1723_v27 = vsel %vm1447_vm0, %v4670_v2, 0.0 }
 0x1ac   : > { %v1710_v0 = vadd.f32 %v1709_v43, %v1708_v26  ;;  %v4678_v43 = vld [vmem:[%s3637_s19 + $0x458] sm:$0xff]  ;;  %v2445_v25 = vadd.f32 %v2444_v8, %v2443_v16  ;;  %v2082_v26 = vmul.f32 %v4486_v36, %v4486_v36  ;;  %v2450_v1 = vsel %vm1447_vm0, %v2081_v17, 0.0 }
 0x1ad   : > { %v1725_v30 = vsel %vm1447_vm0, %v4678_v43, 0.0 }
 0x1ae   : > { %v1712_v41 = vadd.f32 %v1711_v50, %v1710_v0  ;;  %v4686_v50 = vld [vmem:[%s3637_s19 + $0x460] sm:$0xff]  ;;  %v2447_v35 = vadd.f32 %v2446_v20, %v2445_v25  ;;  %v2083_v0 = vmul.f32 %v4494_v39, %v4494_v39  ;;  %v2452_v6 = vsel %vm1447_vm0, %v2082_v26, 0.0 }
 0x1af   : > { %v1727_v33 = vsel %vm1447_vm0, %v4686_v50, 0.0 }
 0x1b0   : > { %v1714_v47 = vadd.f32 %v1713_v12, %v1712_v41  ;;  %v4694_v12 = vld [vmem:[%s3637_s19 + $0x468] sm:$0xff]  ;;  %v2449_v38 = vadd.f32 %v2448_v29, %v2447_v35  ;;  %v2084_v41 = vmul.f32 %v4502_v42, %v4502_v42  ;;  %v2454_v49 = vsel %vm1447_vm0, %v2083_v0, 0.0 }
 0x1b1   : > { %v1729_v36 = vsel %vm1447_vm0, %v4694_v12, 0.0 }
 0x1b2   : > { %v1716_v56 = vadd.f32 %v1715_v15, %v1714_v47  ;;  %v4702_v15 = vld [vmem:[%s3637_s19 + $0x470] sm:$0xff]  ;;  %v2451_v44 = vadd.f32 %v2450_v1, %v2449_v38  ;;  %v2085_v47 = vmul.f32 %v4510_v45, %v4510_v45  ;;  %v2456_v58 = vsel %vm1447_vm0, %v2084_v41, 0.0 }
 0x1b3   : > { %v1731_v39 = vsel %vm1447_vm0, %v4702_v15, 0.0 }
 0x1b4   : > { %v1718_v3 = vadd.f32 %v1717_v18, %v1716_v56  ;;  %v4710_v18 = vld [vmem:[%s3637_s19 + $0x478] sm:$0xff]  ;;  %v2453_v53 = vadd.f32 %v2452_v6, %v2451_v44  ;;  %v2086_v56 = vmul.f32 %v4518_v48, %v4518_v48  ;;  %v2458_v4 = vsel %vm1447_vm0, %v2085_v47, 0.0 }
 0x1b5   : > { %v1733_v42 = vsel %vm1447_vm0, %v4710_v18, 0.0 }
 0x1b6   : > { %v1720_v13 = vadd.f32 %v1719_v21, %v1718_v3  ;;  %v4718_v21 = vld [vmem:[%s3637_s19 + $0x480] sm:$0xff]  ;;  %v2455_v61 = vadd.f32 %v2454_v49, %v2453_v53  ;;  %v2087_v3 = vmul.f32 %v4526_v51, %v4526_v51  ;;  %v2460_v16 = vsel %vm1447_vm0, %v2086_v56, 0.0 }
 0x1b7   : > { %v1735_v45 = vsel %vm1447_vm0, %v4718_v21, 0.0 }
 0x1b8   : > { %v1722_v23 = vadd.f32 %v1721_v24, %v1720_v13  ;;  %v4726_v24 = vld [vmem:[%s3637_s19 + $0x488] sm:$0xff]  ;;  %v2457_v8 = vadd.f32 %v2456_v58, %v2455_v61  ;;  %v2088_v13 = vmul.f32 %v4534_v54, %v4534_v54  ;;  %v2462_v25 = vsel %vm1447_vm0, %v2087_v3, 0.0 }
 0x1b9   : > { %v1737_v48 = vsel %vm1447_vm0, %v4726_v24, 0.0 }
 0x1ba   : > { %v1724_v32 = vadd.f32 %v1723_v27, %v1722_v23  ;;  %v4734_v27 = vld [vmem:[%s3637_s19 + $0x490] sm:$0xff]  ;;  %v2459_v20 = vadd.f32 %v2458_v4, %v2457_v8  ;;  %v2089_v23 = vmul.f32 %v4542_v57, %v4542_v57  ;;  %v2464_v35 = vsel %vm1447_vm0, %v2088_v13, 0.0 }
 0x1bb   : > { %v1739_v51 = vsel %vm1447_vm0, %v4734_v27, 0.0 }
 0x1bc   : > { %v1726_v37 = vadd.f32 %v1725_v30, %v1724_v32  ;;  %v4742_v30 = vld [vmem:[%s3637_s19 + $0x498] sm:$0xff]  ;;  %v2461_v29 = vadd.f32 %v2460_v16, %v2459_v20  ;;  %v2090_v32 = vmul.f32 %v4550_v60, %v4550_v60  ;;  %v2466_v38 = vsel %vm1447_vm0, %v2089_v23, 0.0 }
 0x1bd   : > { %v1741_v54 = vsel %vm1447_vm0, %v4742_v30, 0.0 }
 0x1be   : > { %v1728_v9 = vadd.f32 %v1727_v33, %v1726_v37  ;;  %v4750_v33 = vld [vmem:[%s3637_s19 + $0x4a0] sm:$0xff]  ;;  %v2463_v1 = vadd.f32 %v2462_v25, %v2461_v29  ;;  %v2091_v37 = vmul.f32 %v4558_v63, %v4558_v63  ;;  %v2468_v44 = vsel %vm1447_vm0, %v2090_v32, 0.0 }
 0x1bf   : > { %v1743_v57 = vsel %vm1447_vm0, %v4750_v33, 0.0 }
 0x1c0   : > { %v1730_v52 = vadd.f32 %v1729_v36, %v1728_v9  ;;  %v4758_v36 = vld [vmem:[%s3637_s19 + $0x4a8] sm:$0xff]  ;;  %v2465_v6 = vadd.f32 %v2464_v35, %v2463_v1  ;;  %v2092_v9 = vmul.f32 %v4566_v5, %v4566_v5  ;;  %v2470_v53 = vsel %vm1447_vm0, %v2091_v37, 0.0 }
 0x1c1   : > { %v1745_v60 = vsel %vm1447_vm0, %v4758_v36, 0.0 }
 0x1c2   : > { %v1732_v59 = vadd.f32 %v1731_v39, %v1730_v52  ;;  %v4766_v39 = vld [vmem:[%s3637_s19 + $0x4b0] sm:$0xff]  ;;  %v2467_v49 = vadd.f32 %v2466_v38, %v2465_v6  ;;  %v2093_v52 = vmul.f32 %v4574_v10, %v4574_v10  ;;  %v2472_v61 = vsel %vm1447_vm0, %v2092_v9, 0.0 }
 0x1c3   : > { %v1747_v63 = vsel %vm1447_vm0, %v4766_v39, 0.0 }
 0x1c4   : > { %v1734_v7 = vadd.f32 %v1733_v42, %v1732_v59  ;;  %v4774_v42 = vld [vmem:[%s3637_s19 + $0x4b8] sm:$0xff]  ;;  %v2469_v58 = vadd.f32 %v2468_v44, %v2467_v49  ;;  %v2094_v59 = vmul.f32 %v4582_v14, %v4582_v14  ;;  %v2474_v8 = vsel %vm1447_vm0, %v2093_v52, 0.0 }
 0x1c5   : > { %v1749_v5 = vsel %vm1447_vm0, %v4774_v42, 0.0 }
 0x1c6   : > { %v1736_v17 = vadd.f32 %v1735_v45, %v1734_v7  ;;  %v4782_v45 = vld [vmem:[%s3637_s19 + $0x4c0] sm:$0xff]  ;;  %v2471_v4 = vadd.f32 %v2470_v53, %v2469_v58  ;;  %v2095_v7 = vmul.f32 %v4590_v19, %v4590_v19  ;;  %v2476_v20 = vsel %vm1447_vm0, %v2094_v59, 0.0 }
 0x1c7   : > { %v1751_v10 = vsel %vm1447_vm0, %v4782_v45, 0.0 }
 0x1c8   : > { %v1738_v26 = vadd.f32 %v1737_v48, %v1736_v17  ;;  %v4790_v48 = vld [vmem:[%s3637_s19 + $0x4c8] sm:$0xff]  ;;  %v2473_v16 = vadd.f32 %v2472_v61, %v2471_v4  ;;  %v2096_v17 = vmul.f32 %v4598_v28, %v4598_v28  ;;  %v2478_v29 = vsel %vm1447_vm0, %v2095_v7, 0.0 }
 0x1c9   : > { %v1753_v14 = vsel %vm1447_vm0, %v4790_v48, 0.0 }
 0x1ca   : > { %v1740_v0 = vadd.f32 %v1739_v51, %v1738_v26  ;;  %v4798_v51 = vld [vmem:[%s3637_s19 + $0x4d0] sm:$0xff]  ;;  %v2475_v25 = vadd.f32 %v2474_v8, %v2473_v16  ;;  %v2097_v26 = vmul.f32 %v4606_v34, %v4606_v34  ;;  %v2480_v1 = vsel %vm1447_vm0, %v2096_v17, 0.0 }
 0x1cb   : > { %v1755_v19 = vsel %vm1447_vm0, %v4798_v51, 0.0 }
 0x1cc   : > { %v1742_v41 = vadd.f32 %v1741_v54, %v1740_v0  ;;  %v4806_v54 = vld [vmem:[%s3637_s19 + $0x4d8] sm:$0xff]  ;;  %v2477_v35 = vadd.f32 %v2476_v20, %v2475_v25  ;;  %v2098_v0 = vmul.f32 %v4614_v40, %v4614_v40  ;;  %v2482_v6 = vsel %vm1447_vm0, %v2097_v26, 0.0 }
 0x1cd   : > { %v1757_v28 = vsel %vm1447_vm0, %v4806_v54, 0.0 }
 0x1ce   : > { %v1744_v47 = vadd.f32 %v1743_v57, %v1742_v41  ;;  %v4814_v57 = vld [vmem:[%s3637_s19 + $0x4e0] sm:$0xff]  ;;  %v2479_v38 = vadd.f32 %v2478_v29, %v2477_v35  ;;  %v2099_v41 = vmul.f32 %v4622_v46, %v4622_v46  ;;  %v2484_v49 = vsel %vm1447_vm0, %v2098_v0, 0.0 }
 0x1cf   : > { %v1759_v34 = vsel %vm1447_vm0, %v4814_v57, 0.0 }
 0x1d0   : > { %v1746_v56 = vadd.f32 %v1745_v60, %v1744_v47  ;;  %v4822_v60 = vld [vmem:[%s3637_s19 + $0x4e8] sm:$0xff]  ;;  %v2481_v44 = vadd.f32 %v2480_v1, %v2479_v38  ;;  %v2100_v47 = vmul.f32 %v4630_v55, %v4630_v55  ;;  %v2486_v58 = vsel %vm1447_vm0, %v2099_v41, 0.0 }
 0x1d1   : > { %v1761_v40 = vsel %vm1447_vm0, %v4822_v60, 0.0 }
 0x1d2   : > { %v1748_v3 = vadd.f32 %v1747_v63, %v1746_v56  ;;  %v4830_v63 = vld [vmem:[%s3637_s19 + $0x4f0] sm:$0xff]  ;;  %v2483_v53 = vadd.f32 %v2482_v6, %v2481_v44  ;;  %v2101_v56 = vmul.f32 %v4638_v62, %v4638_v62  ;;  %v2488_v4 = vsel %vm1447_vm0, %v2100_v47, 0.0 }
 0x1d3   : > { %v1763_v46 = vsel %vm1447_vm0, %v4830_v63, 0.0 }
 0x1d4   : > { %v1750_v13 = vadd.f32 %v1749_v5, %v1748_v3  ;;  %v4838_v5 = vld [vmem:[%s3637_s19 + $0x4f8] sm:$0xff]  ;;  %v2485_v61 = vadd.f32 %v2484_v49, %v2483_v53  ;;  %v2102_v3 = vmul.f32 %v4646_v11, %v4646_v11  ;;  %v2490_v16 = vsel %vm1447_vm0, %v2101_v56, 0.0 }
 0x1d5   : > { %v1765_v55 = vsel %vm1447_vm0, %v4838_v5, 0.0 }
 0x1d6   : > { %v1752_v23 = vadd.f32 %v1751_v10, %v1750_v13  ;;  %v4846_v10 = vld [vmem:[%s3637_s19 + $0x500] sm:$0xff]  ;;  %v2487_v8 = vadd.f32 %v2486_v58, %v2485_v61  ;;  %v2103_v13 = vmul.f32 %v4654_v22, %v4654_v22  ;;  %v2492_v25 = vsel %vm1447_vm0, %v2102_v3, 0.0 }
 0x1d7   : > { %v1767_v62 = vsel %vm1447_vm0, %v4846_v10, 0.0 }
 0x1d8   : > { %v1754_v32 = vadd.f32 %v1753_v14, %v1752_v23  ;;  %v4854_v14 = vld [vmem:[%s3637_s19 + $0x508] sm:$0xff]  ;;  %v2489_v20 = vadd.f32 %v2488_v4, %v2487_v8  ;;  %v2104_v23 = vmul.f32 %v4662_v31, %v4662_v31  ;;  %v2494_v35 = vsel %vm1447_vm0, %v2103_v13, 0.0 }
 0x1d9   : > { %v1769_v11 = vsel %vm1447_vm0, %v4854_v14, 0.0 }
 0x1da   : > { %v1756_v37 = vadd.f32 %v1755_v19, %v1754_v32  ;;  %v4862_v19 = vld [vmem:[%s3637_s19 + $0x510] sm:$0xff]  ;;  %v2491_v29 = vadd.f32 %v2490_v16, %v2489_v20  ;;  %v2105_v32 = vmul.f32 %v4670_v2, %v4670_v2  ;;  %v2496_v38 = vsel %vm1447_vm0, %v2104_v23, 0.0 }
 0x1db   : > { %v1771_v22 = vsel %vm1447_vm0, %v4862_v19, 0.0 }
 0x1dc   : > { %v1758_v9 = vadd.f32 %v1757_v28, %v1756_v37  ;;  %v4870_v28 = vld [vmem:[%s3637_s19 + $0x518] sm:$0xff]  ;;  %v2493_v1 = vadd.f32 %v2492_v25, %v2491_v29  ;;  %v2106_v37 = vmul.f32 %v4678_v43, %v4678_v43  ;;  %v2498_v44 = vsel %vm1447_vm0, %v2105_v32, 0.0 }
 0x1dd   : > { %v1773_v31 = vsel %vm1447_vm0, %v4870_v28, 0.0 }
 0x1de   : > { %v1760_v52 = vadd.f32 %v1759_v34, %v1758_v9  ;;  %v4878_v34 = vld [vmem:[%s3637_s19 + $0x520] sm:$0xff]  ;;  %v2495_v6 = vadd.f32 %v2494_v35, %v2493_v1  ;;  %v2107_v9 = vmul.f32 %v4686_v50, %v4686_v50  ;;  %v2500_v53 = vsel %vm1447_vm0, %v2106_v37, 0.0 }
 0x1df   : > { %v1775_v2 = vsel %vm1447_vm0, %v4878_v34, 0.0 }
 0x1e0   : > { %v1762_v59 = vadd.f32 %v1761_v40, %v1760_v52  ;;  %v4886_v40 = vld [vmem:[%s3637_s19 + $0x528] sm:$0xff]  ;;  %v2497_v49 = vadd.f32 %v2496_v38, %v2495_v6  ;;  %v2108_v52 = vmul.f32 %v4694_v12, %v4694_v12  ;;  %v2502_v61 = vsel %vm1447_vm0, %v2107_v9, 0.0 }
 0x1e1   : > { %v1777_v43 = vsel %vm1447_vm0, %v4886_v40, 0.0 }
 0x1e2   : > { %v1764_v7 = vadd.f32 %v1763_v46, %v1762_v59  ;;  %v4894_v46 = vld [vmem:[%s3637_s19 + $0x530] sm:$0xff]  ;;  %v2499_v58 = vadd.f32 %v2498_v44, %v2497_v49  ;;  %v2109_v59 = vmul.f32 %v4702_v15, %v4702_v15  ;;  %v2504_v8 = vsel %vm1447_vm0, %v2108_v52, 0.0 }
 0x1e3   : > { %v1779_v50 = vsel %vm1447_vm0, %v4894_v46, 0.0 }
 0x1e4   : > { %v1766_v17 = vadd.f32 %v1765_v55, %v1764_v7  ;;  %v4902_v55 = vld [vmem:[%s3637_s19 + $0x538] sm:$0xff]  ;;  %v2501_v4 = vadd.f32 %v2500_v53, %v2499_v58  ;;  %v2110_v7 = vmul.f32 %v4710_v18, %v4710_v18  ;;  %v2506_v20 = vsel %vm1447_vm0, %v2109_v59, 0.0 }
 0x1e5   : > { %v1781_v12 = vsel %vm1447_vm0, %v4902_v55, 0.0 }
 0x1e6   : > { %v1768_v26 = vadd.f32 %v1767_v62, %v1766_v17  ;;  %v4910_v62 = vld [vmem:[%s3637_s19 + $0x540] sm:$0xff]  ;;  %v2503_v16 = vadd.f32 %v2502_v61, %v2501_v4  ;;  %v2111_v17 = vmul.f32 %v4718_v21, %v4718_v21  ;;  %v2508_v29 = vsel %vm1447_vm0, %v2110_v7, 0.0 }
 0x1e7   : > { %v1783_v15 = vsel %vm1447_vm0, %v4910_v62, 0.0 }
 0x1e8   : > { %v1770_v0 = vadd.f32 %v1769_v11, %v1768_v26  ;;  %v4918_v11 = vld [vmem:[%s3637_s19 + $0x548] sm:$0xff]  ;;  %v2505_v25 = vadd.f32 %v2504_v8, %v2503_v16  ;;  %v2112_v26 = vmul.f32 %v4726_v24, %v4726_v24  ;;  %v2510_v1 = vsel %vm1447_vm0, %v2111_v17, 0.0 }
 0x1e9   : > { %v1785_v18 = vsel %vm1447_vm0, %v4918_v11, 0.0 }
 0x1ea   : > { %v1772_v41 = vadd.f32 %v1771_v22, %v1770_v0  ;;  %v4926_v22 = vld [vmem:[%s3637_s19 + $0x550] sm:$0xff]  ;;  %v2507_v35 = vadd.f32 %v2506_v20, %v2505_v25  ;;  %v2113_v0 = vmul.f32 %v4734_v27, %v4734_v27  ;;  %v2512_v6 = vsel %vm1447_vm0, %v2112_v26, 0.0 }
 0x1eb   : > { %v1787_v21 = vsel %vm1447_vm0, %v4926_v22, 0.0 }
 0x1ec   : > { %v1774_v47 = vadd.f32 %v1773_v31, %v1772_v41  ;;  %v4934_v31 = vld [vmem:[%s3637_s19 + $0x558] sm:$0xff]  ;;  %v2509_v38 = vadd.f32 %v2508_v29, %v2507_v35  ;;  %v2114_v41 = vmul.f32 %v4742_v30, %v4742_v30  ;;  %v2514_v49 = vsel %vm1447_vm0, %v2113_v0, 0.0 }
 0x1ed   : > { %v1789_v24 = vsel %vm1447_vm0, %v4934_v31, 0.0 }
 0x1ee   : > { %v1776_v56 = vadd.f32 %v1775_v2, %v1774_v47  ;;  %v4942_v2 = vld [vmem:[%s3637_s19 + $0x560] sm:$0xff]  ;;  %v2511_v44 = vadd.f32 %v2510_v1, %v2509_v38  ;;  %v2115_v47 = vmul.f32 %v4750_v33, %v4750_v33  ;;  %v2516_v58 = vsel %vm1447_vm0, %v2114_v41, 0.0 }
 0x1ef   : > { %v1791_v27 = vsel %vm1447_vm0, %v4942_v2, 0.0 }
 0x1f0   : > { %v1778_v3 = vadd.f32 %v1777_v43, %v1776_v56  ;;  %v4950_v43 = vld [vmem:[%s3637_s19 + $0x568] sm:$0xff]  ;;  %v2513_v53 = vadd.f32 %v2512_v6, %v2511_v44  ;;  %v2116_v56 = vmul.f32 %v4758_v36, %v4758_v36  ;;  %v2518_v4 = vsel %vm1447_vm0, %v2115_v47, 0.0 }
 0x1f1   : > { %v1793_v30 = vsel %vm1447_vm0, %v4950_v43, 0.0 }
 0x1f2   : > { %v1780_v13 = vadd.f32 %v1779_v50, %v1778_v3  ;;  %v4958_v50 = vld [vmem:[%s3637_s19 + $0x570] sm:$0xff]  ;;  %v2515_v61 = vadd.f32 %v2514_v49, %v2513_v53  ;;  %v2117_v3 = vmul.f32 %v4766_v39, %v4766_v39  ;;  %v2520_v16 = vsel %vm1447_vm0, %v2116_v56, 0.0 }
 0x1f3   : > { %v1795_v33 = vsel %vm1447_vm0, %v4958_v50, 0.0 }
 0x1f4   : > { %v1782_v23 = vadd.f32 %v1781_v12, %v1780_v13  ;;  %v4966_v12 = vld [vmem:[%s3637_s19 + $0x578] sm:$0xff]  ;;  %v2517_v8 = vadd.f32 %v2516_v58, %v2515_v61  ;;  %v2118_v13 = vmul.f32 %v4774_v42, %v4774_v42  ;;  %v2522_v25 = vsel %vm1447_vm0, %v2117_v3, 0.0 }
 0x1f5   : > { %v1797_v36 = vsel %vm1447_vm0, %v4966_v12, 0.0 }
 0x1f6   : > { %v1784_v32 = vadd.f32 %v1783_v15, %v1782_v23  ;;  %v4974_v15 = vld [vmem:[%s3637_s19 + $0x580] sm:$0xff]  ;;  %v2519_v20 = vadd.f32 %v2518_v4, %v2517_v8  ;;  %v2119_v23 = vmul.f32 %v4782_v45, %v4782_v45  ;;  %v2524_v35 = vsel %vm1447_vm0, %v2118_v13, 0.0 }
 0x1f7   : > { %v1799_v39 = vsel %vm1447_vm0, %v4974_v15, 0.0 }
 0x1f8   : > { %v1786_v37 = vadd.f32 %v1785_v18, %v1784_v32  ;;  %v4982_v18 = vld [vmem:[%s3637_s19 + $0x588] sm:$0xff]  ;;  %v2521_v29 = vadd.f32 %v2520_v16, %v2519_v20  ;;  %v2120_v32 = vmul.f32 %v4790_v48, %v4790_v48  ;;  %v2526_v38 = vsel %vm1447_vm0, %v2119_v23, 0.0 }
 0x1f9   : > { %v1801_v42 = vsel %vm1447_vm0, %v4982_v18, 0.0 }
 0x1fa   : > { %v1788_v9 = vadd.f32 %v1787_v21, %v1786_v37  ;;  %v4990_v21 = vld [vmem:[%s3637_s19 + $0x590] sm:$0xff]  ;;  %v2523_v1 = vadd.f32 %v2522_v25, %v2521_v29  ;;  %v2121_v37 = vmul.f32 %v4798_v51, %v4798_v51  ;;  %v2528_v44 = vsel %vm1447_vm0, %v2120_v32, 0.0 }
 0x1fb   : > { %v1803_v45 = vsel %vm1447_vm0, %v4990_v21, 0.0 }
 0x1fc   : > { %v1790_v52 = vadd.f32 %v1789_v24, %v1788_v9  ;;  %v4998_v24 = vld [vmem:[%s3637_s19 + $0x598] sm:$0xff]  ;;  %v2525_v6 = vadd.f32 %v2524_v35, %v2523_v1  ;;  %v2122_v9 = vmul.f32 %v4806_v54, %v4806_v54  ;;  %v2530_v53 = vsel %vm1447_vm0, %v2121_v37, 0.0 }
 0x1fd   : > { %v1805_v48 = vsel %vm1447_vm0, %v4998_v24, 0.0 }
 0x1fe   : > { %v1792_v59 = vadd.f32 %v1791_v27, %v1790_v52  ;;  %v5006_v27 = vld [vmem:[%s3637_s19 + $0x5a0] sm:$0xff]  ;;  %v2527_v49 = vadd.f32 %v2526_v38, %v2525_v6  ;;  %v2123_v52 = vmul.f32 %v4814_v57, %v4814_v57  ;;  %v2532_v61 = vsel %vm1447_vm0, %v2122_v9, 0.0 }
 0x1ff   : > { %v1807_v51 = vsel %vm1447_vm0, %v5006_v27, 0.0 }
 0x200   : > { %v1794_v7 = vadd.f32 %v1793_v30, %v1792_v59  ;;  %v5014_v30 = vld [vmem:[%s3637_s19 + $0x5a8] sm:$0xff]  ;;  %v2529_v58 = vadd.f32 %v2528_v44, %v2527_v49  ;;  %v2124_v59 = vmul.f32 %v4822_v60, %v4822_v60  ;;  %v2534_v8 = vsel %vm1447_vm0, %v2123_v52, 0.0 }
 0x201   : > { %v1809_v54 = vsel %vm1447_vm0, %v5014_v30, 0.0 }
 0x202   : > { %v1796_v17 = vadd.f32 %v1795_v33, %v1794_v7  ;;  %v5022_v33 = vld [vmem:[%s3637_s19 + $0x5b0] sm:$0xff]  ;;  %v2531_v4 = vadd.f32 %v2530_v53, %v2529_v58  ;;  %v2125_v7 = vmul.f32 %v4830_v63, %v4830_v63  ;;  %v2536_v20 = vsel %vm1447_vm0, %v2124_v59, 0.0 }
 0x203   : > { %v1811_v57 = vsel %vm1447_vm0, %v5022_v33, 0.0 }
 0x204   : > { %v1798_v26 = vadd.f32 %v1797_v36, %v1796_v17  ;;  %v5030_v36 = vld [vmem:[%s3637_s19 + $0x5b8] sm:$0xff]  ;;  %v2533_v16 = vadd.f32 %v2532_v61, %v2531_v4  ;;  %v2126_v17 = vmul.f32 %v4838_v5, %v4838_v5  ;;  %v2538_v29 = vsel %vm1447_vm0, %v2125_v7, 0.0 }
 0x205   : > { %v1813_v60 = vsel %vm1447_vm0, %v5030_v36, 0.0 }
 0x206   : > { %v1800_v0 = vadd.f32 %v1799_v39, %v1798_v26  ;;  %v5038_v39 = vld [vmem:[%s3637_s19 + $0x5c0] sm:$0xff]  ;;  %v2535_v25 = vadd.f32 %v2534_v8, %v2533_v16  ;;  %v2127_v26 = vmul.f32 %v4846_v10, %v4846_v10  ;;  %v2540_v1 = vsel %vm1447_vm0, %v2126_v17, 0.0 }
 0x207   : > { %v1815_v63 = vsel %vm1447_vm0, %v5038_v39, 0.0 }
 0x208   : > { %v1802_v41 = vadd.f32 %v1801_v42, %v1800_v0  ;;  %v5046_v42 = vld [vmem:[%s3637_s19 + $0x5c8] sm:$0xff]  ;;  %v2537_v35 = vadd.f32 %v2536_v20, %v2535_v25  ;;  %v2128_v0 = vmul.f32 %v4854_v14, %v4854_v14  ;;  %v2542_v6 = vsel %vm1447_vm0, %v2127_v26, 0.0 }
 0x209   : > { %v1817_v5 = vsel %vm1447_vm0, %v5046_v42, 0.0 }
 0x20a   : > { %v1804_v47 = vadd.f32 %v1803_v45, %v1802_v41  ;;  %v5054_v45 = vld [vmem:[%s3637_s19 + $0x5d0] sm:$0xff]  ;;  %v2539_v38 = vadd.f32 %v2538_v29, %v2537_v35  ;;  %v2129_v41 = vmul.f32 %v4862_v19, %v4862_v19  ;;  %v2544_v49 = vsel %vm1447_vm0, %v2128_v0, 0.0 }
 0x20b   : > { %v1819_v10 = vsel %vm1447_vm0, %v5054_v45, 0.0 }
 0x20c   : > { %v1806_v56 = vadd.f32 %v1805_v48, %v1804_v47  ;;  %v5062_v48 = vld [vmem:[%s3637_s19 + $0x5d8] sm:$0xff]  ;;  %v2541_v44 = vadd.f32 %v2540_v1, %v2539_v38  ;;  %v2130_v47 = vmul.f32 %v4870_v28, %v4870_v28  ;;  %v2546_v58 = vsel %vm1447_vm0, %v2129_v41, 0.0 }
 0x20d   : > { %v1821_v14 = vsel %vm1447_vm0, %v5062_v48, 0.0 }
 0x20e   : > { %v1808_v3 = vadd.f32 %v1807_v51, %v1806_v56  ;;  %v5070_v51 = vld [vmem:[%s3637_s19 + $0x5e0] sm:$0xff]  ;;  %v2543_v53 = vadd.f32 %v2542_v6, %v2541_v44  ;;  %v2131_v56 = vmul.f32 %v4878_v34, %v4878_v34  ;;  %v2548_v4 = vsel %vm1447_vm0, %v2130_v47, 0.0 }
 0x20f   : > { %v1823_v19 = vsel %vm1447_vm0, %v5070_v51, 0.0 }
 0x210   : > { %v1810_v13 = vadd.f32 %v1809_v54, %v1808_v3  ;;  %v5078_v54 = vld [vmem:[%s3637_s19 + $0x5e8] sm:$0xff]  ;;  %v2545_v61 = vadd.f32 %v2544_v49, %v2543_v53  ;;  %v2132_v3 = vmul.f32 %v4886_v40, %v4886_v40  ;;  %v2550_v16 = vsel %vm1447_vm0, %v2131_v56, 0.0 }
 0x211   : > { %v1825_v28 = vsel %vm1447_vm0, %v5078_v54, 0.0 }
 0x212   : > { %v1812_v23 = vadd.f32 %v1811_v57, %v1810_v13  ;;  %v5086_v57 = vld [vmem:[%s3637_s19 + $0x5f0] sm:$0xff]  ;;  %v2547_v8 = vadd.f32 %v2546_v58, %v2545_v61  ;;  %v2133_v13 = vmul.f32 %v4894_v46, %v4894_v46  ;;  %v2552_v25 = vsel %vm1447_vm0, %v2132_v3, 0.0 }
 0x213   : > { %v1827_v34 = vsel %vm1447_vm0, %v5086_v57, 0.0 }
 0x214   : > { %v1814_v32 = vadd.f32 %v1813_v60, %v1812_v23  ;;  %v5094_v60 = vld [vmem:[%s3637_s19 + $0x5f8] sm:$0xff]  ;;  %v2549_v20 = vadd.f32 %v2548_v4, %v2547_v8  ;;  %v2134_v23 = vmul.f32 %v4902_v55, %v4902_v55  ;;  %v2554_v35 = vsel %vm1447_vm0, %v2133_v13, 0.0 }
 0x215   : > { %v1829_v40 = vsel %vm1447_vm0, %v5094_v60, 0.0 }
 0x216   : > { %v1816_v37 = vadd.f32 %v1815_v63, %v1814_v32  ;;  %v5102_v63 = vld [vmem:[%s3637_s19 + $0x600] sm:$0xff]  ;;  %v2551_v29 = vadd.f32 %v2550_v16, %v2549_v20  ;;  %v2135_v32 = vmul.f32 %v4910_v62, %v4910_v62  ;;  %v2556_v38 = vsel %vm1447_vm0, %v2134_v23, 0.0 }
 0x217   : > { %v1831_v46 = vsel %vm1447_vm0, %v5102_v63, 0.0 }
 0x218   : > { %v1818_v9 = vadd.f32 %v1817_v5, %v1816_v37  ;;  %v5110_v5 = vld [vmem:[%s3637_s19 + $0x608] sm:$0xff]  ;;  %v2553_v1 = vadd.f32 %v2552_v25, %v2551_v29  ;;  %v2136_v37 = vmul.f32 %v4918_v11, %v4918_v11  ;;  %v2558_v44 = vsel %vm1447_vm0, %v2135_v32, 0.0 }
 0x219   : > { %v1833_v55 = vsel %vm1447_vm0, %v5110_v5, 0.0 }
 0x21a   : > { %v1820_v52 = vadd.f32 %v1819_v10, %v1818_v9  ;;  %v5118_v10 = vld [vmem:[%s3637_s19 + $0x610] sm:$0xff]  ;;  %v2555_v6 = vadd.f32 %v2554_v35, %v2553_v1  ;;  %v2137_v9 = vmul.f32 %v4926_v22, %v4926_v22  ;;  %v2560_v53 = vsel %vm1447_vm0, %v2136_v37, 0.0 }
 0x21b   : > { %v1835_v62 = vsel %vm1447_vm0, %v5118_v10, 0.0 }
 0x21c   : > { %v1822_v59 = vadd.f32 %v1821_v14, %v1820_v52  ;;  %v5126_v14 = vld [vmem:[%s3637_s19 + $0x618] sm:$0xff]  ;;  %v2557_v49 = vadd.f32 %v2556_v38, %v2555_v6  ;;  %v2138_v52 = vmul.f32 %v4934_v31, %v4934_v31  ;;  %v2562_v61 = vsel %vm1447_vm0, %v2137_v9, 0.0 }
 0x21d   : > { %v1837_v11 = vsel %vm1447_vm0, %v5126_v14, 0.0 }
 0x21e   : > { %v1824_v7 = vadd.f32 %v1823_v19, %v1822_v59  ;;  %v5134_v19 = vld [vmem:[%s3637_s19 + $0x620] sm:$0xff]  ;;  %v2559_v58 = vadd.f32 %v2558_v44, %v2557_v49  ;;  %v2139_v59 = vmul.f32 %v4942_v2, %v4942_v2  ;;  %v2564_v8 = vsel %vm1447_vm0, %v2138_v52, 0.0 }
 0x21f   : > { %v1839_v22 = vsel %vm1447_vm0, %v5134_v19, 0.0 }
 0x220   : > { %v1826_v17 = vadd.f32 %v1825_v28, %v1824_v7  ;;  %v5142_v28 = vld [vmem:[%s3637_s19 + $0x628] sm:$0xff]  ;;  %v2561_v4 = vadd.f32 %v2560_v53, %v2559_v58  ;;  %v2140_v7 = vmul.f32 %v4950_v43, %v4950_v43  ;;  %v2566_v20 = vsel %vm1447_vm0, %v2139_v59, 0.0 }
 0x221   : > { %v1841_v31 = vsel %vm1447_vm0, %v5142_v28, 0.0 }
 0x222   : > { %v1828_v26 = vadd.f32 %v1827_v34, %v1826_v17  ;;  %v5150_v34 = vld [vmem:[%s3637_s19 + $0x630] sm:$0xff]  ;;  %v2563_v16 = vadd.f32 %v2562_v61, %v2561_v4  ;;  %v2141_v17 = vmul.f32 %v4958_v50, %v4958_v50  ;;  %v2568_v29 = vsel %vm1447_vm0, %v2140_v7, 0.0 }
 0x223   : > { %v1843_v2 = vsel %vm1447_vm0, %v5150_v34, 0.0 }
 0x224   : > { %v1830_v0 = vadd.f32 %v1829_v40, %v1828_v26  ;;  %v5158_v40 = vld [vmem:[%s3637_s19 + $0x638] sm:$0xff]  ;;  %v2565_v25 = vadd.f32 %v2564_v8, %v2563_v16  ;;  %v2142_v26 = vmul.f32 %v4966_v12, %v4966_v12  ;;  %v2570_v1 = vsel %vm1447_vm0, %v2141_v17, 0.0 }
 0x225   : > { %v1845_v43 = vsel %vm1447_vm0, %v5158_v40, 0.0 }
 0x226   : > { %v1832_v41 = vadd.f32 %v1831_v46, %v1830_v0  ;;  %v5166_v46 = vld [vmem:[%s3637_s19 + $0x640] sm:$0xff]  ;;  %v2567_v35 = vadd.f32 %v2566_v20, %v2565_v25  ;;  %v2143_v0 = vmul.f32 %v4974_v15, %v4974_v15  ;;  %v2572_v6 = vsel %vm1447_vm0, %v2142_v26, 0.0 }
 0x227   : > { %v1847_v50 = vsel %vm1447_vm0, %v5166_v46, 0.0 }
 0x228   : > { %v1834_v47 = vadd.f32 %v1833_v55, %v1832_v41  ;;  %v5174_v55 = vld [vmem:[%s3637_s19 + $0x648] sm:$0xff]  ;;  %v2569_v38 = vadd.f32 %v2568_v29, %v2567_v35  ;;  %v2144_v41 = vmul.f32 %v4982_v18, %v4982_v18  ;;  %v2574_v49 = vsel %vm1447_vm0, %v2143_v0, 0.0 }
 0x229   : > { %v1849_v12 = vsel %vm1447_vm0, %v5174_v55, 0.0 }
 0x22a   : > { %v1836_v56 = vadd.f32 %v1835_v62, %v1834_v47  ;;  %v5182_v62 = vld [vmem:[%s3637_s19 + $0x650] sm:$0xff]  ;;  %v2571_v44 = vadd.f32 %v2570_v1, %v2569_v38  ;;  %v2145_v47 = vmul.f32 %v4990_v21, %v4990_v21  ;;  %v2576_v58 = vsel %vm1447_vm0, %v2144_v41, 0.0 }
 0x22b   : > { %v1851_v15 = vsel %vm1447_vm0, %v5182_v62, 0.0 }
 0x22c   : > { %v1838_v3 = vadd.f32 %v1837_v11, %v1836_v56  ;;  %v5190_v11 = vld [vmem:[%s3637_s19 + $0x658] sm:$0xff]  ;;  %v2573_v53 = vadd.f32 %v2572_v6, %v2571_v44  ;;  %v2146_v56 = vmul.f32 %v4998_v24, %v4998_v24  ;;  %v2578_v4 = vsel %vm1447_vm0, %v2145_v47, 0.0 }
 0x22d   : > { %v1853_v18 = vsel %vm1447_vm0, %v5190_v11, 0.0 }
 0x22e   : > { %v1840_v13 = vadd.f32 %v1839_v22, %v1838_v3  ;;  %v5198_v22 = vld [vmem:[%s3637_s19 + $0x660] sm:$0xff]  ;;  %v2575_v61 = vadd.f32 %v2574_v49, %v2573_v53  ;;  %v2147_v3 = vmul.f32 %v5006_v27, %v5006_v27  ;;  %v2580_v16 = vsel %vm1447_vm0, %v2146_v56, 0.0 }
 0x22f   : > { %v1855_v21 = vsel %vm1447_vm0, %v5198_v22, 0.0 }
 0x230   : > { %v1842_v23 = vadd.f32 %v1841_v31, %v1840_v13  ;;  %v5206_v31 = vld [vmem:[%s3637_s19 + $0x668] sm:$0xff]  ;;  %v2577_v8 = vadd.f32 %v2576_v58, %v2575_v61  ;;  %v2148_v13 = vmul.f32 %v5014_v30, %v5014_v30  ;;  %v2582_v25 = vsel %vm1447_vm0, %v2147_v3, 0.0 }
 0x231   : > { %v1857_v24 = vsel %vm1447_vm0, %v5206_v31, 0.0 }
 0x232   : > { %v1844_v32 = vadd.f32 %v1843_v2, %v1842_v23  ;;  %v5214_v2 = vld [vmem:[%s3637_s19 + $0x670] sm:$0xff]  ;;  %v2579_v20 = vadd.f32 %v2578_v4, %v2577_v8  ;;  %v2149_v23 = vmul.f32 %v5022_v33, %v5022_v33  ;;  %v2584_v35 = vsel %vm1447_vm0, %v2148_v13, 0.0 }
 0x233   : > { %v1859_v27 = vsel %vm1447_vm0, %v5214_v2, 0.0 }
 0x234   : > { %v1846_v37 = vadd.f32 %v1845_v43, %v1844_v32  ;;  %v5222_v43 = vld [vmem:[%s3637_s19 + $0x678] sm:$0xff]  ;;  %v2581_v29 = vadd.f32 %v2580_v16, %v2579_v20  ;;  %v2150_v32 = vmul.f32 %v5030_v36, %v5030_v36  ;;  %v2586_v38 = vsel %vm1447_vm0, %v2149_v23, 0.0 }
 0x235   : > { %v1861_v30 = vsel %vm1447_vm0, %v5222_v43, 0.0 }
 0x236   : > { %v1848_v9 = vadd.f32 %v1847_v50, %v1846_v37  ;;  %v5230_v50 = vld [vmem:[%s3637_s19 + $0x680] sm:$0xff]  ;;  %v2583_v1 = vadd.f32 %v2582_v25, %v2581_v29  ;;  %v2151_v37 = vmul.f32 %v5038_v39, %v5038_v39  ;;  %v2588_v44 = vsel %vm1447_vm0, %v2150_v32, 0.0 }
 0x237   : > { %v1863_v33 = vsel %vm1447_vm0, %v5230_v50, 0.0 }
 0x238   : > { %v1850_v52 = vadd.f32 %v1849_v12, %v1848_v9  ;;  %v5238_v12 = vld [vmem:[%s3637_s19 + $0x688] sm:$0xff]  ;;  %v2585_v6 = vadd.f32 %v2584_v35, %v2583_v1  ;;  %v2152_v9 = vmul.f32 %v5046_v42, %v5046_v42  ;;  %v2590_v53 = vsel %vm1447_vm0, %v2151_v37, 0.0 }
 0x239   : > { %v1865_v36 = vsel %vm1447_vm0, %v5238_v12, 0.0 }
 0x23a   : > { %v1852_v59 = vadd.f32 %v1851_v15, %v1850_v52  ;;  %v5246_v15 = vld [vmem:[%s3637_s19 + $0x690] sm:$0xff]  ;;  %v2587_v49 = vadd.f32 %v2586_v38, %v2585_v6  ;;  %v2153_v52 = vmul.f32 %v5054_v45, %v5054_v45  ;;  %v2592_v61 = vsel %vm1447_vm0, %v2152_v9, 0.0 }
 0x23b   : > { %v1867_v39 = vsel %vm1447_vm0, %v5246_v15, 0.0 }
 0x23c   : > { %v1854_v7 = vadd.f32 %v1853_v18, %v1852_v59  ;;  %v5254_v18 = vld [vmem:[%s3637_s19 + $0x698] sm:$0xff]  ;;  %v2589_v58 = vadd.f32 %v2588_v44, %v2587_v49  ;;  %v2154_v59 = vmul.f32 %v5062_v48, %v5062_v48  ;;  %v2594_v8 = vsel %vm1447_vm0, %v2153_v52, 0.0 }
 0x23d   : > { %v1869_v42 = vsel %vm1447_vm0, %v5254_v18, 0.0 }
 0x23e   : > { %v1856_v17 = vadd.f32 %v1855_v21, %v1854_v7  ;;  %v5262_v21 = vld [vmem:[%s3637_s19 + $0x6a0] sm:$0xff]  ;;  %v2591_v4 = vadd.f32 %v2590_v53, %v2589_v58  ;;  %v2155_v7 = vmul.f32 %v5070_v51, %v5070_v51  ;;  %v2596_v20 = vsel %vm1447_vm0, %v2154_v59, 0.0 }
 0x23f   : > { %v1871_v45 = vsel %vm1447_vm0, %v5262_v21, 0.0 }
 0x240   : > { %v1858_v26 = vadd.f32 %v1857_v24, %v1856_v17  ;;  %v5270_v24 = vld [vmem:[%s3637_s19 + $0x6a8] sm:$0xff]  ;;  %v2593_v16 = vadd.f32 %v2592_v61, %v2591_v4  ;;  %v2156_v17 = vmul.f32 %v5078_v54, %v5078_v54  ;;  %v2598_v29 = vsel %vm1447_vm0, %v2155_v7, 0.0 }
 0x241   : > { %v1873_v48 = vsel %vm1447_vm0, %v5270_v24, 0.0 }
 0x242   : > { %v1860_v0 = vadd.f32 %v1859_v27, %v1858_v26  ;;  %v5278_v27 = vld [vmem:[%s3637_s19 + $0x6b0] sm:$0xff]  ;;  %v2595_v25 = vadd.f32 %v2594_v8, %v2593_v16  ;;  %v2157_v26 = vmul.f32 %v5086_v57, %v5086_v57  ;;  %v2600_v1 = vsel %vm1447_vm0, %v2156_v17, 0.0 }
 0x243   : > { %v1875_v51 = vsel %vm1447_vm0, %v5278_v27, 0.0 }
 0x244   : > { %v1862_v41 = vadd.f32 %v1861_v30, %v1860_v0  ;;  %v5286_v30 = vld [vmem:[%s3637_s19 + $0x6b8] sm:$0xff]  ;;  %v2597_v35 = vadd.f32 %v2596_v20, %v2595_v25  ;;  %v2158_v0 = vmul.f32 %v5094_v60, %v5094_v60  ;;  %v2602_v6 = vsel %vm1447_vm0, %v2157_v26, 0.0 }
 0x245   : > { %v1877_v54 = vsel %vm1447_vm0, %v5286_v30, 0.0 }
 0x246   : > { %v1864_v47 = vadd.f32 %v1863_v33, %v1862_v41  ;;  %v5294_v33 = vld [vmem:[%s3637_s19 + $0x6c0] sm:$0xff]  ;;  %v2599_v38 = vadd.f32 %v2598_v29, %v2597_v35  ;;  %v2159_v41 = vmul.f32 %v5102_v63, %v5102_v63  ;;  %v2604_v49 = vsel %vm1447_vm0, %v2158_v0, 0.0 }
 0x247   : > { %v1879_v57 = vsel %vm1447_vm0, %v5294_v33, 0.0 }
 0x248   : > { %v1866_v56 = vadd.f32 %v1865_v36, %v1864_v47  ;;  %v5302_v36 = vld [vmem:[%s3637_s19 + $0x6c8] sm:$0xff]  ;;  %v2601_v44 = vadd.f32 %v2600_v1, %v2599_v38  ;;  %v2160_v47 = vmul.f32 %v5110_v5, %v5110_v5  ;;  %v2606_v58 = vsel %vm1447_vm0, %v2159_v41, 0.0 }
 0x249   : > { %v1881_v60 = vsel %vm1447_vm0, %v5302_v36, 0.0 }
 0x24a   : > { %v1868_v3 = vadd.f32 %v1867_v39, %v1866_v56  ;;  %v5310_v39 = vld [vmem:[%s3637_s19 + $0x6d0] sm:$0xff]  ;;  %v2603_v53 = vadd.f32 %v2602_v6, %v2601_v44  ;;  %v2161_v56 = vmul.f32 %v5118_v10, %v5118_v10  ;;  %v2608_v4 = vsel %vm1447_vm0, %v2160_v47, 0.0 }
 0x24b   : > { %v1883_v63 = vsel %vm1447_vm0, %v5310_v39, 0.0 }
 0x24c   : > { %v1870_v13 = vadd.f32 %v1869_v42, %v1868_v3  ;;  %v5318_v42 = vld [vmem:[%s3637_s19 + $0x6d8] sm:$0xff]  ;;  %v2605_v61 = vadd.f32 %v2604_v49, %v2603_v53  ;;  %v2162_v3 = vmul.f32 %v5126_v14, %v5126_v14  ;;  %v2610_v16 = vsel %vm1447_vm0, %v2161_v56, 0.0 }
 0x24d   : > { %v1885_v5 = vsel %vm1447_vm0, %v5318_v42, 0.0 }
 0x24e   : > { %v1872_v23 = vadd.f32 %v1871_v45, %v1870_v13  ;;  %v5326_v45 = vld [vmem:[%s3637_s19 + $0x6e0] sm:$0xff]  ;;  %v2607_v8 = vadd.f32 %v2606_v58, %v2605_v61  ;;  %v2163_v13 = vmul.f32 %v5134_v19, %v5134_v19  ;;  %v2612_v25 = vsel %vm1447_vm0, %v2162_v3, 0.0 }
 0x24f   : > { %v1887_v10 = vsel %vm1447_vm0, %v5326_v45, 0.0 }
 0x250   : > { %v1874_v32 = vadd.f32 %v1873_v48, %v1872_v23  ;;  %v5334_v48 = vld [vmem:[%s3637_s19 + $0x6e8] sm:$0xff]  ;;  %v2609_v20 = vadd.f32 %v2608_v4, %v2607_v8  ;;  %v2164_v23 = vmul.f32 %v5142_v28, %v5142_v28  ;;  %v2614_v35 = vsel %vm1447_vm0, %v2163_v13, 0.0 }
 0x251   : > { %v1889_v14 = vsel %vm1447_vm0, %v5334_v48, 0.0 }
 0x252   : > { %v1876_v37 = vadd.f32 %v1875_v51, %v1874_v32  ;;  %v5342_v51 = vld [vmem:[%s3637_s19 + $0x6f0] sm:$0xff]  ;;  %v2611_v29 = vadd.f32 %v2610_v16, %v2609_v20  ;;  %v2165_v32 = vmul.f32 %v5150_v34, %v5150_v34  ;;  %v2616_v38 = vsel %vm1447_vm0, %v2164_v23, 0.0 }
 0x253   : > { %v1891_v19 = vsel %vm1447_vm0, %v5342_v51, 0.0 }
 0x254   : > { %v1878_v9 = vadd.f32 %v1877_v54, %v1876_v37  ;;  %v5350_v54 = vld [vmem:[%s3637_s19 + $0x6f8] sm:$0xff]  ;;  %v2613_v1 = vadd.f32 %v2612_v25, %v2611_v29  ;;  %v2166_v37 = vmul.f32 %v5158_v40, %v5158_v40  ;;  %v2618_v44 = vsel %vm1447_vm0, %v2165_v32, 0.0 }
 0x255   : > { %v1893_v28 = vsel %vm1447_vm0, %v5350_v54, 0.0 }
 0x256   : > { %v1880_v52 = vadd.f32 %v1879_v57, %v1878_v9  ;;  %v5358_v57 = vld [vmem:[%s3637_s19 + $0x700] sm:$0xff]  ;;  %v2615_v6 = vadd.f32 %v2614_v35, %v2613_v1  ;;  %v2167_v9 = vmul.f32 %v5166_v46, %v5166_v46  ;;  %v2620_v53 = vsel %vm1447_vm0, %v2166_v37, 0.0 }
 0x257   : > { %v1895_v34 = vsel %vm1447_vm0, %v5358_v57, 0.0 }
 0x258   : > { %v1882_v59 = vadd.f32 %v1881_v60, %v1880_v52  ;;  %v5366_v60 = vld [vmem:[%s3637_s19 + $0x708] sm:$0xff]  ;;  %v2617_v49 = vadd.f32 %v2616_v38, %v2615_v6  ;;  %v2168_v52 = vmul.f32 %v5174_v55, %v5174_v55  ;;  %v2622_v61 = vsel %vm1447_vm0, %v2167_v9, 0.0 }
 0x259   : > { %v1897_v40 = vsel %vm1447_vm0, %v5366_v60, 0.0 }
 0x25a   : > { %v1884_v7 = vadd.f32 %v1883_v63, %v1882_v59  ;;  %v5374_v63 = vld [vmem:[%s3637_s19 + $0x710] sm:$0xff]  ;;  %v2619_v58 = vadd.f32 %v2618_v44, %v2617_v49  ;;  %v2169_v59 = vmul.f32 %v5182_v62, %v5182_v62  ;;  %v2624_v8 = vsel %vm1447_vm0, %v2168_v52, 0.0 }
 0x25b   : > { %v1899_v46 = vsel %vm1447_vm0, %v5374_v63, 0.0 }
 0x25c   : > { %v1886_v17 = vadd.f32 %v1885_v5, %v1884_v7  ;;  %v5382_v5 = vld [vmem:[%s3637_s19 + $0x718] sm:$0xff]  ;;  %v2621_v4 = vadd.f32 %v2620_v53, %v2619_v58  ;;  %v2170_v7 = vmul.f32 %v5190_v11, %v5190_v11  ;;  %v2626_v20 = vsel %vm1447_vm0, %v2169_v59, 0.0 }
 0x25d   : > { %v1901_v55 = vsel %vm1447_vm0, %v5382_v5, 0.0 }
 0x25e   : > { %v1888_v26 = vadd.f32 %v1887_v10, %v1886_v17  ;;  %v5390_v10 = vld [vmem:[%s3637_s19 + $0x720] sm:$0xff]  ;;  %v2623_v16 = vadd.f32 %v2622_v61, %v2621_v4  ;;  %v2171_v17 = vmul.f32 %v5198_v22, %v5198_v22  ;;  %v2628_v29 = vsel %vm1447_vm0, %v2170_v7, 0.0 }
 0x25f   : > { %v1903_v62 = vsel %vm1447_vm0, %v5390_v10, 0.0 }
 0x260   : > { %v1890_v0 = vadd.f32 %v1889_v14, %v1888_v26  ;;  %v5398_v14 = vld [vmem:[%s3637_s19 + $0x728] sm:$0xff]  ;;  %v2625_v25 = vadd.f32 %v2624_v8, %v2623_v16  ;;  %v2172_v26 = vmul.f32 %v5206_v31, %v5206_v31  ;;  %v2630_v1 = vsel %vm1447_vm0, %v2171_v17, 0.0 }
 0x261   : > { %v1905_v11 = vsel %vm1447_vm0, %v5398_v14, 0.0 }
 0x262   : > { %v1892_v41 = vadd.f32 %v1891_v19, %v1890_v0  ;;  %v5406_v19 = vld [vmem:[%s3637_s19 + $0x730] sm:$0xff]  ;;  %v2627_v35 = vadd.f32 %v2626_v20, %v2625_v25  ;;  %v2173_v0 = vmul.f32 %v5214_v2, %v5214_v2  ;;  %v2632_v6 = vsel %vm1447_vm0, %v2172_v26, 0.0 }
 0x263   : > { %v1907_v22 = vsel %vm1447_vm0, %v5406_v19, 0.0 }
 0x264   : > { %v1894_v47 = vadd.f32 %v1893_v28, %v1892_v41  ;;  %v5414_v28 = vld [vmem:[%s3637_s19 + $0x738] sm:$0xff]  ;;  %v2629_v38 = vadd.f32 %v2628_v29, %v2627_v35  ;;  %v2174_v41 = vmul.f32 %v5222_v43, %v5222_v43  ;;  %v2634_v49 = vsel %vm1447_vm0, %v2173_v0, 0.0 }
 0x265   : > { %v1909_v31 = vsel %vm1447_vm0, %v5414_v28, 0.0 }
 0x266   : > { %v1896_v56 = vadd.f32 %v1895_v34, %v1894_v47  ;;  %v5422_v34 = vld [vmem:[%s3637_s19 + $0x740] sm:$0xff]  ;;  %v2631_v44 = vadd.f32 %v2630_v1, %v2629_v38  ;;  %v2175_v47 = vmul.f32 %v5230_v50, %v5230_v50  ;;  %v2636_v58 = vsel %vm1447_vm0, %v2174_v41, 0.0 }
 0x267   : > { %v1911_v2 = vsel %vm1447_vm0, %v5422_v34, 0.0 }
 0x268   : > { %v1898_v3 = vadd.f32 %v1897_v40, %v1896_v56  ;;  %v5430_v40 = vld [vmem:[%s3637_s19 + $0x748] sm:$0xff]  ;;  %v2633_v53 = vadd.f32 %v2632_v6, %v2631_v44  ;;  %v2176_v56 = vmul.f32 %v5238_v12, %v5238_v12  ;;  %v2638_v4 = vsel %vm1447_vm0, %v2175_v47, 0.0 }
 0x269   : > { %v1913_v43 = vsel %vm1447_vm0, %v5430_v40, 0.0 }
 0x26a   : > { %v1900_v13 = vadd.f32 %v1899_v46, %v1898_v3  ;;  %v5438_v46 = vld [vmem:[%s3637_s19 + $0x750] sm:$0xff]  ;;  %v2635_v61 = vadd.f32 %v2634_v49, %v2633_v53  ;;  %v2177_v3 = vmul.f32 %v5246_v15, %v5246_v15  ;;  %v2640_v16 = vsel %vm1447_vm0, %v2176_v56, 0.0 }
 0x26b   : > { %v1915_v50 = vsel %vm1447_vm0, %v5438_v46, 0.0 }
 0x26c   : > { %v1902_v23 = vadd.f32 %v1901_v55, %v1900_v13  ;;  %v5446_v55 = vld [vmem:[%s3637_s19 + $0x758] sm:$0xff]  ;;  %v2637_v8 = vadd.f32 %v2636_v58, %v2635_v61  ;;  %v2178_v13 = vmul.f32 %v5254_v18, %v5254_v18  ;;  %v2642_v25 = vsel %vm1447_vm0, %v2177_v3, 0.0 }
 0x26d   : > { %v1917_v12 = vsel %vm1447_vm0, %v5446_v55, 0.0 }
 0x26e   : > { %v1904_v32 = vadd.f32 %v1903_v62, %v1902_v23  ;;  %v5454_v62 = vld [vmem:[%s3637_s19 + $0x760] sm:$0xff]  ;;  %v2639_v20 = vadd.f32 %v2638_v4, %v2637_v8  ;;  %v2179_v23 = vmul.f32 %v5262_v21, %v5262_v21  ;;  %v2644_v35 = vsel %vm1447_vm0, %v2178_v13, 0.0 }
 0x26f   : > { %v1919_v15 = vsel %vm1447_vm0, %v5454_v62, 0.0 }
 0x270   : > { %v1906_v37 = vadd.f32 %v1905_v11, %v1904_v32  ;;  %v5462_v11 = vld [vmem:[%s3637_s19 + $0x768] sm:$0xff]  ;;  %v2641_v29 = vadd.f32 %v2640_v16, %v2639_v20  ;;  %v2180_v32 = vmul.f32 %v5270_v24, %v5270_v24  ;;  %v2646_v38 = vsel %vm1447_vm0, %v2179_v23, 0.0 }
 0x271   : > { %v1921_v18 = vsel %vm1447_vm0, %v5462_v11, 0.0 }
 0x272   : > { %v1908_v9 = vadd.f32 %v1907_v22, %v1906_v37  ;;  %v5470_v22 = vld [vmem:[%s3637_s19 + $0x770] sm:$0xff]  ;;  %v2643_v1 = vadd.f32 %v2642_v25, %v2641_v29  ;;  %v2181_v37 = vmul.f32 %v5278_v27, %v5278_v27  ;;  %v2648_v44 = vsel %vm1447_vm0, %v2180_v32, 0.0 }
 0x273   : > { %v1923_v21 = vsel %vm1447_vm0, %v5470_v22, 0.0 }
 0x274   : > { %v1910_v52 = vadd.f32 %v1909_v31, %v1908_v9  ;;  %v5478_v31 = vld [vmem:[%s3637_s19 + $0x778] sm:$0xff]  ;;  %v2645_v6 = vadd.f32 %v2644_v35, %v2643_v1  ;;  %v2182_v9 = vmul.f32 %v5286_v30, %v5286_v30  ;;  %v2650_v53 = vsel %vm1447_vm0, %v2181_v37, 0.0 }
 0x275   : > { %v1925_v24 = vsel %vm1447_vm0, %v5478_v31, 0.0 }
 0x276   : > { %v1912_v59 = vadd.f32 %v1911_v2, %v1910_v52  ;;  %v5486_v2 = vld [vmem:[%s3637_s19 + $0x780] sm:$0xff]  ;;  %v2647_v49 = vadd.f32 %v2646_v38, %v2645_v6  ;;  %v2183_v52 = vmul.f32 %v5294_v33, %v5294_v33  ;;  %v2652_v61 = vsel %vm1447_vm0, %v2182_v9, 0.0 }
 0x277   : > { %v1927_v27 = vsel %vm1447_vm0, %v5486_v2, 0.0 }
 0x278   : > { %v1914_v7 = vadd.f32 %v1913_v43, %v1912_v59  ;;  %v5494_v43 = vld [vmem:[%s3637_s19 + $0x788] sm:$0xff]  ;;  %v2649_v58 = vadd.f32 %v2648_v44, %v2647_v49  ;;  %v2184_v59 = vmul.f32 %v5302_v36, %v5302_v36  ;;  %v2654_v8 = vsel %vm1447_vm0, %v2183_v52, 0.0 }
 0x279   : > { %v1929_v30 = vsel %vm1447_vm0, %v5494_v43, 0.0 }
 0x27a   : > { %v1916_v17 = vadd.f32 %v1915_v50, %v1914_v7  ;;  %v5502_v50 = vld [vmem:[%s3637_s19 + $0x790] sm:$0xff]  ;;  %v2651_v4 = vadd.f32 %v2650_v53, %v2649_v58  ;;  %v2185_v7 = vmul.f32 %v5310_v39, %v5310_v39  ;;  %v2656_v20 = vsel %vm1447_vm0, %v2184_v59, 0.0 }
 0x27b   : > { %v1931_v33 = vsel %vm1447_vm0, %v5502_v50, 0.0 }
 0x27c   : > { %v1918_v26 = vadd.f32 %v1917_v12, %v1916_v17  ;;  %v5510_v12 = vld [vmem:[%s3637_s19 + $0x798] sm:$0xff]  ;;  %v2653_v16 = vadd.f32 %v2652_v61, %v2651_v4  ;;  %v2186_v17 = vmul.f32 %v5318_v42, %v5318_v42  ;;  %v2658_v29 = vsel %vm1447_vm0, %v2185_v7, 0.0 }
 0x27d   : > { %v1933_v36 = vsel %vm1447_vm0, %v5510_v12, 0.0 }
 0x27e   : > { %v1920_v0 = vadd.f32 %v1919_v15, %v1918_v26  ;;  %v5518_v15 = vld [vmem:[%s3637_s19 + $0x7a0] sm:$0xff]  ;;  %v2655_v25 = vadd.f32 %v2654_v8, %v2653_v16  ;;  %v2187_v26 = vmul.f32 %v5326_v45, %v5326_v45  ;;  %v2660_v1 = vsel %vm1447_vm0, %v2186_v17, 0.0 }
 0x27f   : > { %v1935_v39 = vsel %vm1447_vm0, %v5518_v15, 0.0 }
 0x280   : > { %v1922_v41 = vadd.f32 %v1921_v18, %v1920_v0  ;;  %v5526_v18 = vld [vmem:[%s3637_s19 + $0x7a8] sm:$0xff]  ;;  %v2657_v35 = vadd.f32 %v2656_v20, %v2655_v25  ;;  %v2188_v0 = vmul.f32 %v5334_v48, %v5334_v48  ;;  %v2662_v6 = vsel %vm1447_vm0, %v2187_v26, 0.0 }
 0x281   : > { %v1937_v42 = vsel %vm1447_vm0, %v5526_v18, 0.0 }
 0x282   : > { %v1924_v47 = vadd.f32 %v1923_v21, %v1922_v41  ;;  %v5534_v21 = vld [vmem:[%s3637_s19 + $0x7b0] sm:$0xff]  ;;  %v2659_v38 = vadd.f32 %v2658_v29, %v2657_v35  ;;  %v2189_v41 = vmul.f32 %v5342_v51, %v5342_v51  ;;  %v2664_v49 = vsel %vm1447_vm0, %v2188_v0, 0.0 }
 0x283   : > { %v1939_v45 = vsel %vm1447_vm0, %v5534_v21, 0.0 }
 0x284   : > { %v1926_v56 = vadd.f32 %v1925_v24, %v1924_v47  ;;  %v5542_v24 = vld [vmem:[%s3637_s19 + $0x7b8] sm:$0xff]  ;;  %v2661_v44 = vadd.f32 %v2660_v1, %v2659_v38  ;;  %v2190_v47 = vmul.f32 %v5350_v54, %v5350_v54  ;;  %v2666_v58 = vsel %vm1447_vm0, %v2189_v41, 0.0 }
 0x285   : > { %v1941_v48 = vsel %vm1447_vm0, %v5542_v24, 0.0 }
 0x286   : > { %v1928_v3 = vadd.f32 %v1927_v27, %v1926_v56  ;;  %v5550_v27 = vld [vmem:[%s3637_s19 + $0x7c0] sm:$0xff]  ;;  %v2663_v53 = vadd.f32 %v2662_v6, %v2661_v44  ;;  %v2191_v56 = vmul.f32 %v5358_v57, %v5358_v57  ;;  %v2668_v4 = vsel %vm1447_vm0, %v2190_v47, 0.0 }
 0x287   : > { %v1943_v51 = vsel %vm1447_vm0, %v5550_v27, 0.0 }
 0x288   : > { %v1930_v13 = vadd.f32 %v1929_v30, %v1928_v3  ;;  %v5558_v30 = vld [vmem:[%s3637_s19 + $0x7c8] sm:$0xff]  ;;  %v2665_v61 = vadd.f32 %v2664_v49, %v2663_v53  ;;  %v2192_v3 = vmul.f32 %v5366_v60, %v5366_v60  ;;  %v2670_v16 = vsel %vm1447_vm0, %v2191_v56, 0.0 }
 0x289   : > { %v1945_v54 = vsel %vm1447_vm0, %v5558_v30, 0.0 }
 0x28a   : > { %v1932_v23 = vadd.f32 %v1931_v33, %v1930_v13  ;;  %v5566_v33 = vld [vmem:[%s3637_s19 + $0x7d0] sm:$0xff]  ;;  %v2667_v8 = vadd.f32 %v2666_v58, %v2665_v61  ;;  %v2193_v13 = vmul.f32 %v5374_v63, %v5374_v63  ;;  %v2672_v25 = vsel %vm1447_vm0, %v2192_v3, 0.0 }
 0x28b   : > { %v1947_v57 = vsel %vm1447_vm0, %v5566_v33, 0.0  ;;  %v2199_v58 = vmul.f32 %v5422_v34, %v5422_v34  ;;  %v2202_v34 = vmul.f32 %v5446_v55, %v5446_v55  ;;  %v2205_v55 = vmul.f32 %v5470_v22, %v5470_v22 }
 0x28c   : > { %v1934_v32 = vadd.f32 %v1933_v36, %v1932_v23  ;;  %v5574_v36 = vld [vmem:[%s3637_s19 + $0x7d8] sm:$0xff]  ;;  %v2669_v20 = vadd.f32 %v2668_v4, %v2667_v8  ;;  %v2194_v23 = vmul.f32 %v5382_v5, %v5382_v5  ;;  %v2674_v35 = vsel %vm1447_vm0, %v2193_v13, 0.0 }
 0x28d   : > { %v1949_v60 = vsel %vm1447_vm0, %v5574_v36, 0.0  ;;  %v2686_v8 = vsel %vm1447_vm0, %v2199_v58, 0.0  ;;  %v2698_v22 = vsel %vm1447_vm0, %v2205_v55, 0.0  ;;  %v2214_v58 = vmul.f32 %v5542_v24, %v5542_v24 }
 0x28e   : > { %v1936_v37 = vadd.f32 %v1935_v39, %v1934_v32  ;;  %v5582_v39 = vld [vmem:[%s3637_s19 + $0x7e0] sm:$0xff]  ;;  %v2671_v29 = vadd.f32 %v2670_v16, %v2669_v20  ;;  %v2195_v32 = vmul.f32 %v5390_v10, %v5390_v10  ;;  %v2676_v38 = vsel %vm1447_vm0, %v2194_v23, 0.0 }
 0x28f   : > { %v1951_v63 = vsel %vm1447_vm0, %v5582_v39, 0.0 }
 0x290   : > { %v1938_v9 = vadd.f32 %v1937_v42, %v1936_v37  ;;  %v5590_v42 = vld [vmem:[%s3637_s19 + $0x7e8] sm:$0xff]  ;;  %v2673_v1 = vadd.f32 %v2672_v25, %v2671_v29  ;;  %v2196_v37 = vmul.f32 %v5398_v14, %v5398_v14  ;;  %v2678_v44 = vsel %vm1447_vm0, %v2195_v32, 0.0 }
 0x291   : > { %v1953_v5 = vsel %vm1447_vm0, %v5590_v42, 0.0 }
 0x292   : > { %v1940_v52 = vadd.f32 %v1939_v45, %v1938_v9  ;;  %v5598_v45 = vld [vmem:[%s3637_s19 + $0x7f0] sm:$0xff]  ;;  %v2675_v6 = vadd.f32 %v2674_v35, %v2673_v1  ;;  %v2197_v9 = vmul.f32 %v5406_v19, %v5406_v19  ;;  %v2680_v53 = vsel %vm1447_vm0, %v2196_v37, 0.0 }
 0x293   : > { %v1955_v10 = vsel %vm1447_vm0, %v5598_v45, 0.0 }
 0x294   : > { %v1942_v59 = vadd.f32 %v1941_v48, %v1940_v52  ;;  %v5606_v48 = vld [vmem:[%s3637_s19 + $0x7f8] sm:$0xff]  ;;  %v2677_v49 = vadd.f32 %v2676_v38, %v2675_v6  ;;  %v2198_v52 = vmul.f32 %v5414_v28, %v5414_v28  ;;  %v2682_v19 = vsel %vm1447_vm0, %v2197_v9, 0.0 }
 0x295   : > { %v1957_v14 = vsel %vm1447_vm0, %v5606_v48, 0.0  ;;  %v2201_v28 = vmul.f32 %v5438_v46, %v5438_v46  ;;  %v2204_v46 = vmul.f32 %v5462_v11, %v5462_v11  ;;  %v2208_v38 = vmul.f32 %v5494_v43, %v5494_v43 }
 0x296   : > { %v1944_v7 = vadd.f32 %v1943_v51, %v1942_v59  ;;  %v2679_v56 = vadd.f32 %v2678_v44, %v2677_v49  ;;  %v2684_v3 = vsel %vm1447_vm0, %v2198_v52, 0.0  ;;  %v2209_v6 = vmul.f32 %v5502_v50, %v5502_v50 }
 0x297   : > { %v2696_v1 = vsel %vm1447_vm0, %v2204_v46, 0.0  ;;  %v2210_v44 = vmul.f32 %v5510_v12, %v5510_v12  ;;  %v2211_v49 = vmul.f32 %v5518_v15, %v5518_v15  ;;  %v2212_v52 = vmul.f32 %v5526_v18, %v5526_v18 }
 0x298   : > { %v1946_v17 = vadd.f32 %v1945_v54, %v1944_v7  ;;  %v2681_v61 = vadd.f32 %v2680_v53, %v2679_v56  ;;  %v2200_v54 = vmul.f32 %v5430_v40, %v5430_v40  ;;  %v2203_v40 = vmul.f32 %v5454_v62, %v5454_v62 }
 0x299   : > { %v2706_v43 = vsel %vm1447_vm0, %v2209_v6, 0.0  ;;  %v2708_v50 = vsel %vm1447_vm0, %v2210_v44, 0.0  ;;  %v2710_v12 = vsel %vm1447_vm0, %v2211_v49, 0.0  ;;  %v2712_v15 = vsel %vm1447_vm0, %v2212_v52, 0.0 }
 0x29a   : > { %v1948_v26 = vadd.f32 %v1947_v57, %v1946_v17  ;;  %v2683_v7 = vadd.f32 %v2682_v19, %v2681_v61  ;;  %v2688_v16 = vsel %vm1447_vm0, %v2200_v54, 0.0  ;;  %v2694_v32 = vsel %vm1447_vm0, %v2203_v40, 0.0 }
 0x29b   : > { %v2216_v54 = vmul.f32 %v5558_v30, %v5558_v30 }
 0x29c   : > { %v1950_v0 = vadd.f32 %v1949_v60, %v1948_v26  ;;  %v2685_v13 = vadd.f32 %v2684_v3, %v2683_v7  ;;  %v2690_v60 = vsel %vm1447_vm0, %v2201_v28, 0.0  ;;  %v2692_v26 = vsel %vm1447_vm0, %v2202_v34, 0.0 }
 0x29d   : > { %v2218_v28 = vmul.f32 %v5574_v36, %v5574_v36  ;;  %v2220_v34 = vmul.f32 %v5590_v42, %v5590_v42  ;;  %v2221_v36 = vmul.f32 %v5598_v45, %v5598_v45 }
 0x29e   : > { %v1952_v41 = vadd.f32 %v1951_v63, %v1950_v0  ;;  %v2687_v20 = vadd.f32 %v2686_v8, %v2685_v13  ;;  %v2206_v0 = vmul.f32 %v5478_v31, %v5478_v31 }
 0x29f   : > { %v2728_v40 = vsel %vm1447_vm0, %v2220_v34, 0.0 }
 0x2a0   : > { %v1954_v47 = vadd.f32 %v1953_v5, %v1952_v41  ;;  %v2689_v25 = vadd.f32 %v2688_v16, %v2687_v20  ;;  %v2207_v5 = vmul.f32 %v5486_v2, %v5486_v2  ;;  %v2700_v41 = vsel %vm1447_vm0, %v2206_v0, 0.0 }
 0x2a1   : > { %v2704_v2 = vsel %vm1447_vm0, %v2208_v38, 0.0 }
 0x2a2   : > { %v1956_v51 = vadd.f32 %v1955_v10, %v1954_v47  ;;  %v2691_v63 = vadd.f32 %v2690_v60, %v2689_v25  ;;  %v2702_v10 = vsel %vm1447_vm0, %v2207_v5, 0.0 }
 0x2a4   : > { %v1958_v59 = vadd.f32 %v1957_v14, %v1956_v51  ;;  %v2693_v62 = vadd.f32 %v2692_v26, %v2691_v63  ;;  %v2213_v51 = vmul.f32 %v5534_v21, %v5534_v21  ;;  %v2716_v21 = vsel %vm1447_vm0, %v2214_v58, 0.0 }
 0x2a6   : > { %v1959_v4 = vrot.slane %v1958_v59, 4  ;;  %v2695_v11 = vadd.f32 %v2694_v32, %v2693_v62  ;;  %v2714_v18 = vsel %vm1447_vm0, %v2213_v51, 0.0 }
 0x2a8   : > { %v1960_v57 = vadd.f32 %v1959_v4, %v1958_v59  ;;  %v2697_v37 = vadd.f32 %v2696_v1, %v2695_v11  ;;  %v2215_v59 = vmul.f32 %v5550_v27, %v5550_v27  ;;  %v2217_v4 = vmul.f32 %v5566_v33, %v5566_v33 }
 0x2a9   : > { %v2720_v27 = vsel %vm1447_vm0, %v2216_v54, 0.0  ;;  %v2724_v33 = vsel %vm1447_vm0, %v2218_v28, 0.0 }
 0x2aa   : > { %v1961_v17 = vrot.slane %v1960_v57, 2  ;;  %v2699_v31 = vadd.f32 %v2698_v22, %v2697_v37  ;;  %v2718_v24 = vsel %vm1447_vm0, %v2215_v59, 0.0  ;;  %v2722_v30 = vsel %vm1447_vm0, %v2217_v4, 0.0 }
 0x2ac   : > { %v1962_v23 = vadd.f32 %v1961_v17, %v1960_v57  ;;  %v2701_v9 = vadd.f32 %v2700_v41, %v2699_v31  ;;  %v2219_v57 = vmul.f32 %v5582_v39, %v5582_v39  ;;  %v2222_v39 = vmul.f32 %v5606_v48, %v5606_v48 }
 0x2ae   : > { %v1963_v29 = vrot.slane %v1962_v23, 1  ;;  %v2703_v47 = vadd.f32 %v2702_v10, %v2701_v9  ;;  %v2726_v17 = vsel %vm1447_vm0, %v2219_v57, 0.0  ;;  %v2732_v25 = vsel %vm1447_vm0, %v2222_v39, 0.0 }
 0x2b0   : > { %v1964_v35 = vadd.f32 %v1963_v29, %v1962_v23  ;;  %v2705_v14 = vadd.f32 %v2704_v2, %v2703_v47  ;;  %v2730_v23 = vsel %vm1447_vm0, %v2221_v36, 0.0 }
 0x2b2   : > { %1966 = vst.msk [vmem:[%s5638_s23] sm:$0x1] %vm1965_vm1, %v1964_v35  ;;  %v2707_v53 = vadd.f32 %v2706_v43, %v2705_v14 }
 0x2b4   : > { %v2709_v56 = vadd.f32 %v2708_v50, %v2707_v53 }
 0x2b6   : > { %v2711_v19 = vadd.f32 %v2710_v12, %v2709_v56 }
 0x2b8   : > { %v2713_v61 = vadd.f32 %v2712_v15, %v2711_v19 }
 0x2ba   : > { %v2715_v3 = vadd.f32 %v2714_v18, %v2713_v61 }
 0x2bc   : > { %v2717_v7 = vadd.f32 %v2716_v21, %v2715_v3 }
 0x2be   : > { %v2719_v8 = vadd.f32 %v2718_v24, %v2717_v7 }
 0x2c0   : > { %v2721_v13 = vadd.f32 %v2720_v27, %v2719_v8 }
 0x2c2   : > { %v2723_v16 = vadd.f32 %v2722_v30, %v2721_v13 }
 0x2c4   : > { %v2725_v20 = vadd.f32 %v2724_v33, %v2723_v16 }
 0x2c6   : > { %v2727_v60 = vadd.f32 %v2726_v17, %v2725_v20 }
 0x2c8   : > { %v2729_v42 = vadd.f32 %v2728_v40, %v2727_v60 }
 0x2ca   : > { %v2731_v46 = vadd.f32 %v2730_v23, %v2729_v42 }
 0x2cc   : > { %v2733_v26 = vadd.f32 %v2732_v25, %v2731_v46 }
 0x2ce   : > { %v2734_v45 = vrot.slane %v2733_v26, 4 }
 0x2d0   : > { %v2735_v29 = vadd.f32 %v2734_v45, %v2733_v26 }
 0x2d2   : > { %v2736_v63 = vrot.slane %v2735_v29, 2 }
 0x2d4   : > { %v2737_v55 = vadd.f32 %v2736_v63, %v2735_v29 }
 0x2d6   : > { %v2738_v48 = vrot.slane %v2737_v55, 1 }
 0x2d8   : > { %v2739_v32 = vadd.f32 %v2738_v48, %v2737_v55 }
 0x2da   : > { %2740 = vst.msk [vmem:[%s5638_s23 + $0x1] sm:$0x1] %vm1965_vm1, %v2739_v32 }
 0x2db   : > { %2940 = shalt.err (!%p2937_p7)
}
 0x2dc   : > { %s2941_s14 = scalar_lea.hbm %s2755_s2, 32  ;;  %s2945_s19 = scalar_lea.hbm %s5742_s1, 128 }
 0x2dd   : > { %p2942_p10 = scmp.ne.s32.totalorder %s2755_s2, %s2941_s14  ;;  %p2946_p13 = scmp.lt.s32.totalorder %s2755_s2, %s5742_s1 }
 0x2de   : > { %p2947_p0 = scmp.lt.s32.totalorder %s2945_s19, %s2941_s14 }
 0x2df   : > { %p2943_p11 = pnand %p2942_p10, %p3092_p8 }
 0x2e0   : > { %p2948_p1 = por %p2947_p0, %p2946_p13 }
 0x2e1   : > { %p2944_p12 = pneg %p2943_p11 }
 0x2e3   : > { %p2949_p2 = pnand %p2948_p1, %p2944_p12 }
 0x2e5   : > { %2952 = shalt.err (!%p2949_p2)
}
 0x2e6   : > { %2856 = dma.vmem_to_hbm [thread:$0]  (%p3092_p8), %s2758_s28, 32, %s2755_s2, %s2742_s3  }
 0x2e7 PF: > { %p2862_p3 = scmp.ge.s32.totalorder %s3019_s13, 2  ;;  %s2769_s24 = sand.u32 1, %s2991_s6  }
 0x2e8   : > { %s2770_s26 = scalar_lea.sflag [#allocation4], %s2769_s24 }
 0x2e9   : > { %p2859_p4 = pnand %p2862_p3, %p3096_p9 }
 0x2eb   : > { %p2860_p5 = pneg %p2859_p4 }
 0x2ed   : > { %2986 = dma.done.wait (%p2860_p5), %s2770_s26, 32  }
 0x2ee   : > { %2988 = vsyncadd (%p2860_p5), %s2770_s26, 4294967264  ;;  %s14_s13 = sadd.s32 1, %s3019_s13   ;;  %s5746_s6 = smov %s2995_s7 }
 0x2ef   : > { %p11_p6 = scmp.ge.s32.totalorder %s14_s13, 6   ;;  %s5747_s7 = smov %s2999_s8 }
 0x2f0   : > { %s5748_s8 = smov %s3104_s25  ;;  %s5749_s9 = smov %s3011_s11 }
 0x2f1   : > { %s5750_s10 = smov %s3015_s12  ;;  %s5751_s11 = smov %s5754_s16 }
 0x2f2   : > { %s5752_s12 = smov %s5758_s17  ;;  %13 = sbr.rel (!%p11_p6) target bundleno = 5 (0x5), region = 102 }
 0x2f7   :  { %2775 = vsyncpa [#allocation4], 1 }
 0x2f8   :  { %2777 = vsyncpa [#allocation4 + $0x1], 1 }

</bundles_post_ra>
